<compile_context>
chip_gen: v6e
topology: v6e:2x2x1
jax: 0.10.0
libtpu: 0.0.40
codegen_flags: <defaults>
</compile_context>

<pallas_src>
import functools

import jax
import jax.numpy as jnp
from jax.experimental import pallas as pl
from jax.experimental.pallas import tpu as pltpu


# ----------------------------------------------------------------------------- helpers

def _round_up(x, m):
    return (x + m - 1) // m * m


# ----------------------------------------------------------------------------- Pallas matmul

def _mm_kernel(a_ref, w_ref, b_ref, o_ref, *, relu):
    # a: (TM, K) bf16, w: (K, TN) bf16, b: (1, TN) f32 -> o: (TM, TN) f32
    out = jnp.dot(a_ref[...], w_ref[...], preferred_element_type=jnp.float32)
    out = out + b_ref[...]
    if relu:
        out = jnp.maximum(out, 0.0)
    o_ref[...] = out.astype(o_ref.dtype)


def _mm_res_kernel(a_ref, w_ref, b_ref, r_ref, o_ref, *, relu):
    # residual fused: out = relu(a @ w + b + r)
    out = jnp.dot(a_ref[...], w_ref[...], preferred_element_type=jnp.float32)
    out = out + b_ref[...] + r_ref[...]
    if relu:
        out = jnp.maximum(out, 0.0)
    o_ref[...] = out.astype(o_ref.dtype)


def _pick_tm(M, K, TN, has_res):
    """Largest M tile whose double-buffered VMEM footprint stays under budget."""
    budget = 20 * 1024 * 1024  # leave headroom under the 32 MiB scoped limit we request
    def cost(tm):
        a = tm * K * 2 * 2                      # A block, bf16, double buffered
        wb = K * TN * 2 * 2                     # W block, bf16, double buffered
        o = tm * TN * 4 * 2 * (2 if has_res else 1)  # out (+residual) f32
        return a + wb + o
    if M <= 512 or cost(M) <= budget:
        return M
    for tm in (2048, 1024, 512, 256):
        if tm < M and cost(tm) <= budget:
            return tm
    return 128


def _pallas_matmul(a, w, b, *, relu=False, residual=None):
    """out = epilogue(a @ w + b [+ residual]).

    a: (M, K) bf16, w: (K, Np) bf16 (Np multiple of 128), b: (1, Np) f32,
    residual: optional (M, Np) f32.  Full K as a single block (no K grid axis).
    """
    M, K = a.shape
    _, Np = w.shape
    TN = Np if Np <= 256 else 256
    TM = _pick_tm(M, K, TN, residual is not None)
    gm, gn = pl.cdiv(M, TM), pl.cdiv(Np, TN)

    in_specs = [
        pl.BlockSpec((TM, K), lambda i, j: (i, 0)),
        pl.BlockSpec((K, TN), lambda i, j: (0, j)),
        pl.BlockSpec((1, TN), lambda i, j: (0, j)),
    ]
    args = [a, w, b]
    if residual is not None:
        in_specs.append(pl.BlockSpec((TM, TN), lambda i, j: (i, j)))
        args.append(residual)
        kern = functools.partial(_mm_res_kernel, relu=relu)
    else:
        kern = functools.partial(_mm_kernel, relu=relu)

    return pl.pallas_call(
        kern,
        out_shape=jax.ShapeDtypeStruct((M, Np), jnp.float32),
        grid_spec=pltpu.PrefetchScalarGridSpec(
            num_scalar_prefetch=0,
            grid=(gm, gn),
            in_specs=in_specs,
            out_specs=pl.BlockSpec((TM, TN), lambda i, j: (i, j)),
        ),
        compiler_params=pltpu.CompilerParams(
            dimension_semantics=("parallel", "parallel"),
            vmem_limit_bytes=32 * 1024 * 1024,
        ),
    )(*args)


# ----------------------------------------------------------------------------- conv / glue

@functools.partial(jax.jit, static_argnames=("n_true", "stride", "padding", "relu"))
def conv2d(x, w4, b, n_true, stride=1, padding=0, relu=False, residual=None):
    """x: NHWC f32.  w4: (kh, kw, cin, Np) bf16 (Np = round_up(cout,128)), b: (1, Np) f32.
    Optional fused residual add (+ReLU) when Np == n_true."""
    Nb, H, W, Cin = x.shape
    kh, kw, _, Np = w4.shape
    xb = x.astype(jnp.bfloat16)
    if padding:
        xb = jnp.pad(xb, ((0, 0), (padding, padding), (padding, padding), (0, 0)))
    Ho = (H + 2 * padding - kh) // stride + 1
    Wo = (W + 2 * padding - kw) // stride + 1
    M = Nb * Ho * Wo

    if kh == 1 and kw == 1 and stride == 1 and padding == 0:
        patches = xb.reshape(M, Cin)
    else:
        # TODO(synk): implicit im2col via BlockSpec index_maps over the kh*kw taps.
        cols = [
            xb[:, i:i + stride * (Ho - 1) + 1:stride,
                  j:j + stride * (Wo - 1) + 1:stride, :]
            for i in range(kh) for j in range(kw)
        ]
        patches = jnp.concatenate(cols, axis=-1).reshape(M, kh * kw * Cin)

    wmat = w4.reshape(kh * kw * Cin, Np)
    fuse_res = (residual is not None) and (Np == n_true)
    res2d = residual.reshape(M, Np) if fuse_res else None
    mm_relu = relu if (residual is None or fuse_res) else False

    out = _pallas_matmul(patches, wmat, b, relu=mm_relu, residual=res2d)
    if Np != n_true:
        out = out[:, :n_true]
    out = out.reshape(Nb, Ho, Wo, n_true)

    if residual is not None and not fuse_res:
        out = out + residual
        if relu:
            out = jnp.maximum(out, 0.0)
    return out


def conv(x, p, stride=1, padding=0, relu=False, residual=None):
    return conv2d(x, p["w"], p["b"], p["n"], stride=stride, padding=padding,
                  relu=relu, residual=residual)


@functools.partial(jax.jit, static_argnames=("n_true",))
def packed_conv3x3(feats_tuple, w4, b, n_true):
    """One Pallas matmul for a 3x3/pad1/stride1 conv applied to several feature maps
    (the 5 pyramid levels of the parsing head): im2col per level, concat along M."""
    patches, shapes = [], []
    for x in feats_tuple:
        Nb, H, W, C = x.shape
        xb = jnp.pad(x.astype(jnp.bfloat16), ((0, 0), (1, 1), (1, 1), (0, 0)))
        cols = [xb[:, i:i + H, j:j + W, :] for i in range(3) for j in range(3)]
        patches.append(jnp.concatenate(cols, axis=-1).reshape(Nb * H * W, 9 * C))
        shapes.append((Nb, H, W))
    big = jnp.concatenate(patches, axis=0)
    Np = w4.shape[-1]
    out = _pallas_matmul(big, w4.reshape(-1, Np), b, relu=False)
    if Np != n_true:
        out = out[:, :n_true]
    outs, off = [], 0
    for (Nb, H, W) in shapes:
        sz = Nb * H * W
        outs.append(out[off:off + sz].reshape(Nb, H, W, n_true))
        off += sz
    return tuple(outs)


def packed_conv3x3_list(x_list, p):
    return list(packed_conv3x3(tuple(x_list), p["w"], p["b"], p["n"]))


@functools.partial(jax.jit, static_argnames=("groups",))
def gn_relu(x, gamma, beta, groups=32, eps=1e-5):
    N, H, W, C = x.shape
    xg = x.reshape(N, H * W, groups, C // groups)
    mean = xg.mean(axis=(1, 3), keepdims=True)
    var = ((xg - mean) ** 2).mean(axis=(1, 3), keepdims=True)
    xn = ((xg - mean) * jax.lax.rsqrt(var + eps)).reshape(N, H, W, C)
    return jnp.maximum(xn * gamma + beta, 0.0)


def max_pool(x, k, s, p):
    return jax.lax.reduce_window(
        x, -jnp.inf, jax.lax.max, (1, k, k, 1), (1, s, s, 1),
        [(0, 0), (p, p), (p, p), (0, 0)]
    )


@jax.jit
def cate_eval_post(c):
    """sigmoid + points-NMS (matches torch max_pool2d(heat,2,1,pad=1)[..., :-1, :-1])."""
    heat = jax.nn.sigmoid(c)
    hmax = jax.lax.reduce_window(
        heat, -jnp.inf, jax.lax.max, (1, 2, 2, 1), (1, 1, 1, 1),
        [(0, 0), (1, 0), (1, 0), (0, 0)]
    )
    return heat * (hmax == heat).astype(heat.dtype)


def upsample2x(x):
    N, H, W, C = x.shape
    y = jnp.broadcast_to(x[:, :, None, :, None, :], (N, H, 2, W, 2, C))
    return y.reshape(N, 2 * H, 2 * W, C)


def resize_bilinear(x, size):
    N, _, _, C = x.shape
    return jax.image.resize(x, (N, size[0], size[1], C), method="bilinear",
                            antialias=False)


def coord_feature(N, H, W, dtype):
    x_range = jnp.linspace(-1.0, 1.0, W, dtype=dtype)
    y_range = jnp.linspace(-1.0, 1.0, H, dtype=dtype)
    yy, xx = jnp.meshgrid(y_range, x_range, indexing="ij")
    coord = jnp.stack([xx, yy], axis=-1)  # (H, W, 2) channel order [x, y]
    return jnp.broadcast_to(coord[None], (N, H, W, 2))


# ----------------------------------------------------------------------------- parameters

def pack_conv(w, b):
    """PyTorch (Cout,Cin,kh,kw) weight -> bf16 (kh,kw,cin,Np) with lane-dense Np."""
    cout, cin, kh, kw = w.shape
    npad = _round_up(cout, 128)
    wmat = jnp.transpose(w, (2, 3, 1, 0))                       # (kh, kw, cin, cout)
    wmat = jnp.pad(wmat, ((0, 0), (0, 0), (0, 0), (0, npad - cout))).astype(jnp.bfloat16)
    brow = jnp.pad(b, (0, npad - cout)).reshape(1, npad).astype(jnp.float32)
    return {"w": wmat, "b": brow, "n": cout}


def pad_cin_packed(p, extra):
    """Zero-pad the input-channel dim of a packed conv weight (ignore trailing channels)."""
    w = jnp.pad(p["w"], ((0, 0), (0, 0), (0, extra), (0, 0)))
    return {"w": w, "b": p["b"], "n": p["n"]}


def fuse_packed(ps):
    """Concat packed conv params along output channels (for convs sharing the same input)."""
    ws = [p["w"][..., :p["n"]] for p in ps]
    bs = [p["b"][:, :p["n"]] for p in ps]
    n = sum(p["n"] for p in ps)
    npad = _round_up(n, 128)
    w = jnp.concatenate(ws, axis=-1)
    w = jnp.pad(w, ((0, 0), (0, 0), (0, 0), (0, npad - n))).astype(jnp.bfloat16)
    b = jnp.concatenate(bs, axis=-1)
    b = jnp.pad(b, ((0, 0), (0, npad - n))).astype(jnp.float32)
    return {"w": w, "b": b, "n": n}


class ParamGen:
    def __init__(self, seed=0):
        self._key = jax.random.PRNGKey(seed)

    def _next(self):
        self._key, k = jax.random.split(self._key)
        return k

    def conv(self, cout, cin, k):
        fan = cin * k * k
        w = jax.random.normal(self._next(), (cout, cin, k, k), jnp.float32) * (2.0 / fan) ** 0.5
        return pack_conv(w, jnp.zeros((cout,), jnp.float32))

    def gn(self, c):
        return {"g": jnp.ones((c,), jnp.float32), "b": jnp.zeros((c,), jnp.float32)}


def make_backbone_params(pg):
    # ResNet-34 BasicBlock config; BN folded into conv bias (identity affine here).
    cfg = [(64, 3, 1), (128, 4, 2), (256, 6, 2), (512, 3, 2)]
    params = {"stem": pg.conv(64, 3, 7), "layers": []}
    cin = 64
    for cout, nblocks, stride in cfg:
        blocks = []
        for bi in range(nblocks):
            s = stride if bi == 0 else 1
            blk = {"conv1": pg.conv(cout, cin, 3), "conv2": pg.conv(cout, cout, 3), "stride": s}
            if s != 1 or cin != cout:
                blk["down"] = pg.conv(cout, cin, 1)
            blocks.append(blk)
            cin = cout
        params["layers"].append(blocks)
    return params


def make_fpn_params(pg):
    return {
        "p5_1": pg.conv(256, 512, 1), "p5_2": pg.conv(256, 256, 3),
        "p4_1": pg.conv(256, 256, 1), "p4_2": pg.conv(256, 256, 3),
        "p3_1": pg.conv(256, 128, 1), "p3_2": pg.conv(256, 256, 3),
        "p2_2": pg.conv(256, 256, 3), "m2": pg.conv(256, 256, 3),
        "p6": pg.conv(256, 512, 3), "p7": pg.conv(256, 256, 3),
    }


def make_parsing_head_params(pg, num_classes, in_channels=256, seg_ch=256,
                             stacked_convs=2, ins_out_channels=128):
    cate_convs, kernel_convs = [], []
    for i in range(stacked_convs):
        cin = in_channels if i == 0 else seg_ch
        cate_convs.append({"conv": pg.conv(seg_ch, cin, 3), "gn": pg.gn(seg_ch)})
        kin = in_channels + 2 if i == 0 else seg_ch
        kernel_convs.append({"conv": pg.conv(seg_ch, kin, 3), "gn": pg.gn(seg_ch)})
    return {
        "cate_convs": cate_convs,
        "kernel_convs": kernel_convs,
        "solo_cate": pg.conv(num_classes - 1, seg_ch, 3),
        "solo_kernel": pg.conv(ins_out_channels, seg_ch, 3),
    }


def make_mask_feat_head_params(pg, in_channels=256, out_channels=128, num_classes=128):
    return {
        "lvl0": {"conv": pg.conv(out_channels, in_channels, 3), "gn": pg.gn(out_channels)},
        "lvl1": {"conv": pg.conv(out_channels, in_channels + 2, 3), "gn": pg.gn(out_channels)},
        "pred": {"conv": pg.conv(num_classes, out_channels, 1), "gn": pg.gn(num_classes)},
    }


def add_fused_params(params):
    """Pre-concatenate (along the output-channel dim) the convs of the two heads that
    consume identical inputs, so one Pallas matmul serves both heads."""
    ph, hh = params["parts_head"], params["human_head"]
    fused = {}
    # layer-0 of both heads, both branches: [parts_kernel, human_kernel, parts_cate, human_cate]
    fused["head_l0"] = fuse_packed([
        ph["kernel_convs"][0]["conv"], hh["kernel_convs"][0]["conv"],
        pad_cin_packed(ph["cate_convs"][0]["conv"], 2),   # ignore the 2 coord channels
        pad_cin_packed(hh["cate_convs"][0]["conv"], 2),
    ])
    fused["head_l0_gn_g"] = jnp.concatenate([
        ph["kernel_convs"][0]["gn"]["g"], hh["kernel_convs"][0]["gn"]["g"],
        ph["cate_convs"][0]["gn"]["g"], hh["cate_convs"][0]["gn"]["g"]])
    fused["head_l0_gn_b"] = jnp.concatenate([
        ph["kernel_convs"][0]["gn"]["b"], hh["kernel_convs"][0]["gn"]["b"],
        ph["cate_convs"][0]["gn"]["b"], hh["cate_convs"][0]["gn"]["b"]])

    pm, hm = params["parts_mask_head"], params["human_mask_head"]
    fused["mask_l0"] = fuse_packed([pm["lvl0"]["conv"], hm["lvl0"]["conv"]])
    fused["mask_l0_gn_g"] = jnp.concatenate([pm["lvl0"]["gn"]["g"], hm["lvl0"]["gn"]["g"]])
    fused["mask_l0_gn_b"] = jnp.concatenate([pm["lvl0"]["gn"]["b"], hm["lvl0"]["gn"]["b"]])
    fused["mask_l1"] = fuse_packed([pm["lvl1"]["conv"], hm["lvl1"]["conv"]])
    fused["mask_l1_gn_g"] = jnp.concatenate([pm["lvl1"]["gn"]["g"], hm["lvl1"]["gn"]["g"]])
    fused["mask_l1_gn_b"] = jnp.concatenate([pm["lvl1"]["gn"]["b"], hm["lvl1"]["gn"]["b"]])
    params["fused"] = fused
    return params


def make_model_params(seed=0, num_of_classes=59):
    pg = ParamGen(seed)
    params = {
        "backbone": make_backbone_params(pg),
        "fpn": make_fpn_params(pg),
        "parts_head": make_parsing_head_params(pg, num_of_classes),
        "parts_mask_head": make_mask_feat_head_params(pg),
        "human_head": make_parsing_head_params(pg, 2),
        "human_mask_head": make_mask_feat_head_params(pg),
    }
    return add_fused_params(params)


# ----------------------------------------------------------------------------- forward pieces

def basic_block(x, blk):
    s = blk["stride"]
    if "down" in blk:
        identity = conv(x, blk["down"], stride=s, padding=0, relu=False)
    else:
        identity = x
    out = conv(x, blk["conv1"], stride=s, padding=1, relu=True)
    # residual add + final ReLU fused into the matmul epilogue (when Cout lane-aligned).
    return conv(out, blk["conv2"], stride=1, padding=1, relu=True, residual=identity)


def backbone_forward(params, x):
    x = conv(x, params["stem"], stride=2, padding=3, relu=True)
    x = max_pool(x, 3, 2, 1)
    feats = []
    for blocks in params["layers"]:
        for blk in blocks:
            x = basic_block(x, blk)
        feats.append(x)
    # feats = [C2(64), C3(128), C4(256), C5(512)]; PyramidFeatures consumes C3..C5.
    return feats[1], feats[2], feats[3]


def fpn_forward(p, c3, c4, c5):
    p5_x = conv(c5, p["p5_1"])
    p5 = conv(p5_x, p["p5_2"], padding=1)
    p4_x = conv(c4, p["p4_1"]) + upsample2x(p5_x)
    p4 = conv(p4_x, p["p4_2"], padding=1)
    p3_x = conv(c3, p["p3_1"]) + upsample2x(p4_x)
    p3 = conv(p3_x, p["p3_2"], padding=1)
    # TODO(synk): exact P2 / M2 construction of PyramidFeatures not given in the reference;
    # P2 is built by 2x upsampling the P3 lateral + 3x3 smoothing, M2 by a further 3x3 conv.
    p2_x = upsample2x(p3_x)
    p2 = conv(p2_x, p["p2_2"], padding=1)
    m2 = conv(p2, p["m2"], padding=1)
    p6 = conv(c5, p["p6"], stride=2, padding=1)
    p7 = conv(jnp.maximum(p6, 0.0), p["p7"], stride=2, padding=1)
    return {"P2": p2, "P3": p3, "P4": p4, "P5": p5, "P6": p6, "P7": p7, "M2": m2}


NUM_GRIDS = [40, 36, 24, 16, 12]


@jax.jit
def prepare_head_inputs(p2, p3, p4, p5, p6):
    """Shared (parts + human) head input prep: level resizes + coord concat + S x S resize.
    The cate branch consumes the same tensors (its fused weights zero out the coords)."""
    new_feats = [
        resize_bilinear(p2, (p2.shape[1] // 2, p2.shape[2] // 2)),
        p3, p4, p5,
        resize_bilinear(p6, (p5.shape[1], p5.shape[2])),
    ]
    kernel_feats = []
    for idx, feat in enumerate(new_feats):
        N, H, W, _ = feat.shape
        ins = jnp.concatenate([feat, coord_feature(N, H, W, feat.dtype)], axis=-1)
        S = NUM_GRIDS[idx]
        kernel_feats.append(resize_bilinear(ins, (S, S)))
    return tuple(kernel_feats)


def dual_parsing_heads_forward(parts_p, human_p, fused_p, kernel_feats, eval_mode=True):
    """Both ParsingHeads (parts + human). Layer-0 of all four branch/head combinations is
    one fused Pallas matmul over one shared im2col slab; later layers run per branch."""
    seg_ch = parts_p["cate_convs"][0]["gn"]["g"].shape[0]

    lay0 = packed_conv3x3_list(list(kernel_feats), fused_p["head_l0"])
    lay0 = [gn_relu(o, fused_p["head_l0_gn_g"], fused_p["head_l0_gn_b"], groups=4 * 32)
            for o in lay0]

    pk_in = [o[..., 0 * seg_ch:1 * seg_ch] for o in lay0]   # parts  / kernel branch
    hk_in = [o[..., 1 * seg_ch:2 * seg_ch] for o in lay0]   # human  / kernel branch
    pc_in = [o[..., 2 * seg_ch:3 * seg_ch] for o in lay0]   # parts  / cate branch
    hc_in = [o[..., 3 * seg_ch:4 * seg_ch] for o in lay0]   # human  / cate branch

    def branch(feats, rest_convs, final_conv):
        for layer in rest_convs:
            feats = packed_conv3x3_list(feats, layer["conv"])
            feats = [gn_relu(o, layer["gn"]["g"], layer["gn"]["b"]) for o in feats]
        return packed_conv3x3_list(feats, final_conv)

    parts_kern = branch(pk_in, parts_p["kernel_convs"][1:], parts_p["solo_kernel"])
    human_kern = branch(hk_in, human_p["kernel_convs"][1:], human_p["solo_kernel"])
    parts_cate = branch(pc_in, parts_p["cate_convs"][1:], parts_p["solo_cate"])
    human_cate = branch(hc_in, human_p["cate_convs"][1:], human_p["solo_cate"])

    if eval_mode:
        parts_cate = [cate_eval_post(c) for c in parts_cate]
        human_cate = [cate_eval_post(c) for c in human_cate]
    return (parts_cate, parts_kern), (human_cate, human_kern)


def dual_mask_feat_head_forward(parts_p, human_p, fused_p, inputs):
    """Both MaskFeatHeads; their level convs share inputs so they run as one fused conv."""
    f0 = conv(inputs[0], fused_p["mask_l0"], padding=1)
    f0 = gn_relu(f0, fused_p["mask_l0_gn_g"], fused_p["mask_l0_gn_b"], groups=2 * 32)

    x1 = inputs[1]
    N, H, W, _ = x1.shape
    x1 = jnp.concatenate([x1, coord_feature(N, H, W, x1.dtype)], axis=-1)
    f1 = conv(x1, fused_p["mask_l1"], padding=1)
    f1 = gn_relu(f1, fused_p["mask_l1_gn_g"], fused_p["mask_l1_gn_b"], groups=2 * 32)
    f1 = resize_bilinear(f1, f0.shape[1:3])

    feat = f0 + f1
    pc = parts_p["lvl0"]["conv"]["n"]
    parts_out = conv(feat[..., :pc], parts_p["pred"]["conv"], padding=0)
    parts_out = gn_relu(parts_out, parts_p["pred"]["gn"]["g"], parts_p["pred"]["gn"]["b"])
    human_out = conv(feat[..., pc:], human_p["pred"]["conv"], padding=0)
    human_out = gn_relu(human_out, human_p["pred"]["gn"]["g"], human_p["pred"]["gn"]["b"])
    return parts_out, human_out


# ----------------------------------------------------------------------------- get_seg (Pallas)

def _seg_kernel(k_ref, f_ref, o_ref):
    # k: (1, TM, Cm) bf16, f: (1, Cm, TN) bf16 -> sigmoid(k @ f) f32, fused epilogue.
    s = jnp.einsum("bmc,bcn->bmn", k_ref[...], f_ref[...],
                   preferred_element_type=jnp.float32)
    o_ref[...] = 1.0 / (1.0 + jnp.exp(-s))


@jax.jit
def _seg_masks(kern_flat, mask_feat):
    """kern_flat: (B, Mk, Cm) f32, mask_feat: (B, Hm, Wm, Cm) f32 -> (B, Mk, Hm, Wm) f32."""
    B, Mk, Cm = kern_flat.shape
    _, Hm, Wm, _ = mask_feat.shape
    HW = Hm * Wm
    a = kern_flat.astype(jnp.bfloat16)
    f = mask_feat.reshape(B, HW, Cm).transpose(0, 2, 1).astype(jnp.bfloat16)  # (B, Cm, HW)

    TM = Mk if Mk <= 512 else 512
    TN = HW if HW <= 512 else 512
    grid = (B, pl.cdiv(Mk, TM), pl.cdiv(HW, TN))

    out = pl.pallas_call(
        _seg_kernel,
        out_shape=jax.ShapeDtypeStruct((B, Mk, HW), jnp.float32),
        grid_spec=pltpu.PrefetchScalarGridSpec(
            num_scalar_prefetch=0,
            grid=grid,
            in_specs=[
                pl.BlockSpec((1, TM, Cm), lambda b, i, j: (b, i, 0)),
                pl.BlockSpec((1, Cm, TN), lambda b, i, j: (b, 0, j)),
            ],
            out_specs=pl.BlockSpec((1, TM, TN), lambda b, i, j: (b, i, j)),
        ),
        compiler_params=pltpu.CompilerParams(
            dimension_semantics=("parallel", "parallel", "parallel")
        ),
    )(a, f)
    return out.reshape(B, Mk, Hm, Wm)


def get_seg(cate_preds, kernel_preds, mask_feat, test_cfg):
    """Dynamic 1x1 conv of every predicted kernel with the mask features, batched over
    images in a single Pallas matmul with a fused sigmoid epilogue.
    TODO(synk): SOLOv2 matrix-NMS, score_thr/mask_thr filtering and per-image top-k are
    data dependent (dynamic shapes) and not implemented."""
    B = mask_feat.shape[0]
    cate_flat = jnp.concatenate([c.reshape(B, -1, c.shape[-1]) for c in cate_preds], axis=1)
    kern_flat = jnp.concatenate([k.reshape(B, -1, k.shape[-1]) for k in kernel_preds], axis=1)
    seg = _seg_masks(kern_flat, mask_feat)  # (B, num_kernels, Hm, Wm), already sigmoid-ed
    return [{"cate_scores": cate_flat[n], "seg_masks": seg[n]} for n in range(B)]


TEST_CFG = dict(nms_pre=500, score_thr=0.1, mask_thr=0.5, update_thr=0.05,
                kernel="gaussian", sigma=2.0, max_per_img=30)


# ----------------------------------------------------------------------------- full forward

def mhparsnet_forward(params, image_inputs, img_meta=None, operation_mode="evaluate"):
    if operation_mode not in ("train", "evaluate"):
        raise ValueError("Invalid operation mode. Only `train` and `evaluate` modes are allowed.")
    if operation_mode == "train":
        # TODO(synk): SOLO training losses (target assignment + dice/focal) not implemented.
        raise NotImplementedError("train mode not implemented in this synthetic kernel")
    if image_inputs is None or img_meta is None:
        raise ValueError("There is data for `image_inputs` or `img`")

    x = jnp.transpose(image_inputs, (0, 2, 3, 1))  # NCHW -> NHWC
    c3, c4, c5 = backbone_forward(params["backbone"], x)
    pyr = fpn_forward(params["fpn"], c3, c4, c5)
    feats = (pyr["P2"], pyr["P3"], pyr["P4"], pyr["P5"], pyr["P6"])

    # head inputs (resizes, coord features) are identical for both heads -> compute once.
    kernel_feats = prepare_head_inputs(*feats)

    (parts_cate, parts_kern), (human_cate, human_kern) = dual_parsing_heads_forward(
        params["parts_head"], params["human_head"], params["fused"], kernel_feats,
        eval_mode=True)

    parts_mask_feat, human_mask_feat = dual_mask_feat_head_forward(
        params["parts_mask_head"], params["human_mask_head"], params["fused"], feats[0:2])

    parts_seg_result = get_seg(parts_cate, parts_kern, parts_mask_feat, TEST_CFG)
    human_seg_result = get_seg(human_cate, human_kern, human_mask_feat, TEST_CFG)

    return parts_seg_result, human_seg_result


# ----------------------------------------------------------------------------- main

if __name__ == "__main__":
    key = jax.random.PRNGKey(0)
    image_inputs = jax.random.normal(key, (2, 3, 64, 64), jnp.float32)  # NCHW
    img_meta = [{"ori_shape": (64, 64, 3), "img_shape": (64, 64, 3), "scale_factor": 1.0}] * 2

    params = make_model_params(seed=0, num_of_classes=59)

    parts_seg, human_seg = mhparsnet_forward(
        params, image_inputs, img_meta=img_meta, operation_mode="evaluate"
    )
    jax.block_until_ready((parts_seg, human_seg))
    print("KERNEL_OK")
</pallas_src>

<mosaic_0001>
module attributes {stable_mosaic.version = 11 : i64} {
  func.func @_mm_kernel(%arg0: i32, %arg1: i32, %arg2: memref<2048x147xbf16, #tpu.memory_space<vmem>>, %arg3: memref<147x128xbf16, #tpu.memory_space<vmem>>, %arg4: memref<1x128xf32, #tpu.memory_space<vmem>>, %arg5: memref<2048x128xf32, #tpu.memory_space<vmem>>) attributes {dimension_semantics = [#tpu.dimension_semantics<parallel>, #tpu.dimension_semantics<parallel>], iteration_bounds = array<i64: 1, 1>, scalar_prefetch = 0 : i64, scratch_operands = 0 : i64, tpu.core_type = #tpu.core_type<tc>, window_params = [{transform_indices = @transform_0, window_bounds = array<i64: 2048, 147>}, {transform_indices = @transform_1, window_bounds = array<i64: 147, 128>}, {transform_indices = @transform_2, window_bounds = array<i64: 1, 128>}, {transform_indices = @transform_3, window_bounds = array<i64: 2048, 128>}]} {
    %c0 = arith.constant 0 : index
    %c0_0 = arith.constant 0 : index
    %0 = vector.load %arg2[%c0, %c0_0] : memref<2048x147xbf16, #tpu.memory_space<vmem>>, vector<2048x147xbf16>
    %c0_1 = arith.constant 0 : index
    %c0_2 = arith.constant 0 : index
    %1 = vector.load %arg3[%c0_1, %c0_2] : memref<147x128xbf16, #tpu.memory_space<vmem>>, vector<147x128xbf16>
    %cst = arith.constant dense<0.000000e+00> : vector<2048x128xf32>
    %2 = tpu.matmul %0, %1, %cst {dimension_numbers = #tpu.dot_dimension_numbers<[1], [0], [0], [1], [0, 0, 1, 1], [], []>} : vector<2048x147xbf16>, vector<147x128xbf16>, vector<2048x128xf32> -> vector<2048x128xf32>
    %c0_3 = arith.constant 0 : index
    %c0_4 = arith.constant 0 : index
    %3 = vector.load %arg4[%c0_3, %c0_4] : memref<1x128xf32, #tpu.memory_space<vmem>>, vector<1x128xf32>
    %4 = vector.broadcast %3 : vector<1x128xf32> to vector<2048x128xf32>
    %5 = arith.addf %2, %4 : vector<2048x128xf32>
    %cst_5 = arith.constant 0.000000e+00 : f32
    %6 = vector.broadcast %cst_5 : f32 to vector<2048x128xf32>
    %7 = arith.maximumf %5, %6 : vector<2048x128xf32>
    %c0_6 = arith.constant 0 : index
    %c0_7 = arith.constant 0 : index
    %8 = vector.load %arg5[%c0_6, %c0_7] : memref<2048x128xf32, #tpu.memory_space<vmem>>, vector<2048x128xf32>
    tpu.vector_store %arg5[%c0_6, %c0_7], %7 {strides = array<i32>} : memref<2048x128xf32, #tpu.memory_space<vmem>>, vector<2048x128xf32>,
    return
  }
  func.func @transform_0(%arg0: i32, %arg1: i32) -> (i32, i32) {
    %c0_i32 = arith.constant 0 : i32
    %c0_i32_0 = arith.constant 0 : i32
    return %arg0, %c0_i32 : i32, i32
  }
  func.func @transform_1(%arg0: i32, %arg1: i32) -> (i32, i32) {
    %c0_i32 = arith.constant 0 : i32
    %c0_i32_0 = arith.constant 0 : i32
    return %c0_i32, %arg1 : i32, i32
  }
  func.func @transform_2(%arg0: i32, %arg1: i32) -> (i32, i32) {
    %c0_i32 = arith.constant 0 : i32
    %c0_i32_0 = arith.constant 0 : i32
    return %c0_i32, %arg1 : i32, i32
  }
  func.func @transform_3(%arg0: i32, %arg1: i32) -> (i32, i32) {
    %c0_i32 = arith.constant 0 : i32
    return %arg0, %arg1 : i32, i32
  }
}

</mosaic_0001>

<bundles_post_ra>
// kernel: conv2d.1
= control target key start
LH: loop header
LB: loop body
LE: loop exit
PB: predicated region body
PF: predicated region fallthrough
CT: control target
= control target key end

     0   :  { %v4323_v1 = vmov 0   ;;  %vm1507_vm0 = vcmask 154624   ;;  %vm1892_vm1 = vcmask 1040384   ;;  %vm1893_vm2 = vcmask 1041408   ;;  %s5543_s0 = inlined_call_operand.vmem [shape: bf16[2048,147], index: 0, kind: input, shape index: {}]   ;;  %s5544_s1 = inlined_call_operand.vmem [shape: bf16[147,128], index: 1, kind: input, shape index: {}]   ;;  %s5545_s2 = inlined_call_operand.vmem [shape: f32[1,128], index: 2, kind: input, shape index: {}]   ;;  %s5546_s3 = inlined_call_operand.hbm [shape: f32[2048,128], index: 3, kind: output, shape index: {}]  }
   0x1   :  { %v3904_v0 = vld [vmem:[%s5544_s1 + $0x38] sm:$0xff]   ;;  %1899 = vmatprep.subr.bf16.mxu0 %v4323_v1  ;;  %3879 = vmatprep.subr.bf16.mxu1 %v4323_v1  ;;  %v3905_v2 = vld [vmem:[%s5544_s1 + $0x30] sm:$0xff]   ;;  %v3906_v3 = vld [vmem:[%s5544_s1 + $0x28] sm:$0xff]   ;;  %v4324_v10 = vmov 65535  }
   0x2   :  { %1900 = vmatpush1.bf16.msra.mxu0 %v3904_v0  ;;  %3889 = vmatpush1.bf16.msra.mxu1 %v3904_v0  ;;  %v3907_v4 = vld [vmem:[%s5544_s1 + $0x20] sm:$0xff]   ;;  %v3908_v7 = vld [vmem:[%s5544_s1 + $0x18] sm:$0xff]   ;;  %v3909_v8 = vld [vmem:[%s5544_s1 + $0x10] sm:$0xff]   ;;  %v1894_v11 = vsel %vm1892_vm1, 4294967295, %v4324_v10 }
   0x3   :  { %1901 = vmatprep.subr.bf16.mxu0 %v4323_v1  ;;  %3880 = vmatprep.subr.bf16.mxu1 %v4323_v1  ;;  %v3916_v5 = vld [vmem:[%s5543_s0 + $0x4] ss:$8 sps:$4 sm:$0xff]   ;;  %v3912_v13 = vld [vmem:[%s5544_s1 + $0x48] ss:$0 sps:$4 sm:$0x33]   ;;  %v1895_v14 = vsel %vm1893_vm2, %v1894_v11, 0 }
   0x4   :  { %3751 = vmatprep.mubr.msk.bf16.mxu0 %vm1507_vm0, %v3916_v5  ;;  %v3919_v6 = vld [vmem:[%s5543_s0 + $0x404] ss:$8 sps:$4 sm:$0xff]   ;;  %v1897_v15 = vand.u32 %v3912_v13, %v1895_v14  ;;  %v3914_v17 = vld [vmem:[%s5543_s0] ss:$8 sps:$4 sm:$0xff]   ;;  %v3920_v19 = vld [vmem:[%s5543_s0 + $0x14] ss:$8 sps:$4 sm:$0xff]  }
   0x5   :  { %3815 = vmatprep.mubr.msk.bf16.mxu1 %vm1507_vm0, %v3919_v6  ;;  %v3910_v9 = vld [vmem:[%s5544_s1 + $0x8] sm:$0xff]   ;;  %v3911_v12 = vld [vmem:[%s5544_s1] sm:$0xff]   ;;  %v3922_v20 = vld [vmem:[%s5543_s0 + $0x414] ss:$8 sps:$4 sm:$0xff]  }
   0x6   :  { %1902 = vmatpush1.bf16.msra.mxu0 %v3905_v2  ;;  %3890 = vmatpush1.bf16.msra.mxu1 %v3905_v2  ;;  %v3913_v16 = vld [vmem:[%s5544_s1 + $0x40] sm:$0xff]   ;;  %v3924_v21 = vld [vmem:[%s5543_s0 + $0x10] ss:$8 sps:$4 sm:$0xff]   ;;  %v3932_v27 = vld [vmem:[%s5543_s0 + $0x34] ss:$8 sps:$4 sm:$0xff]  }
   0x7   :  { %1903 = vmatprep.subr.bf16.mxu0 %v4323_v1  ;;  %3881 = vmatprep.subr.bf16.mxu1 %v4323_v1  ;;  %v3917_v18 = vld [vmem:[%s5543_s0 + $0x400] ss:$8 sps:$4 sm:$0xff]   ;;  %v3925_v22 = vld [vmem:[%s5543_s0 + $0x410] ss:$8 sps:$4 sm:$0xff]   ;;  %v3926_v23 = vld [vmem:[%s5543_s0 + $0x24] ss:$8 sps:$4 sm:$0xff]  }
   0x8   :  { %v3928_v24 = vld [vmem:[%s5543_s0 + $0x424] ss:$8 sps:$4 sm:$0xff]   ;;  %v3930_v25 = vld [vmem:[%s5543_s0 + $0x20] ss:$8 sps:$4 sm:$0xff]   ;;  %v3934_v28 = vld [vmem:[%s5543_s0 + $0x434] ss:$8 sps:$4 sm:$0xff]  }
   0x9   :  { %v3931_v26 = vld [vmem:[%s5543_s0 + $0x420] ss:$8 sps:$4 sm:$0xff]   ;;  %v3936_v29 = vld [vmem:[%s5543_s0 + $0x30] ss:$8 sps:$4 sm:$0xff]   ;;  %v3938_v31 = vld [vmem:[%s5543_s0 + $0x44] ss:$8 sps:$4 sm:$0xff]  }
   0xa   :  { %1904 = vmatpush1.bf16.msra.mxu0 %v3906_v3  ;;  %3891 = vmatpush1.bf16.msra.mxu1 %v3906_v3  ;;  %v3937_v30 = vld [vmem:[%s5543_s0 + $0x430] ss:$8 sps:$4 sm:$0xff]   ;;  %v3940_v32 = vld [vmem:[%s5543_s0 + $0x444] ss:$8 sps:$4 sm:$0xff]   ;;  %v3942_v33 = vld [vmem:[%s5543_s0 + $0x40] ss:$8 sps:$4 sm:$0xff]  }
   0xb   :  { %1905 = vmatprep.subr.bf16.mxu0 %v4323_v1  ;;  %3882 = vmatprep.subr.bf16.mxu1 %v4323_v1  ;;  %v3943_v34 = vld [vmem:[%s5543_s0 + $0x440] ss:$8 sps:$4 sm:$0xff]   ;;  %v3944_v35 = vld [vmem:[%s5543_s0 + $0x54] ss:$8 sps:$4 sm:$0xff]   ;;  %v3948_v37 = vld [vmem:[%s5543_s0 + $0x50] ss:$8 sps:$4 sm:$0xff]  }
   0xc   :  { %v3946_v36 = vld [vmem:[%s5543_s0 + $0x454] ss:$8 sps:$4 sm:$0xff]   ;;  %v3949_v38 = vld [vmem:[%s5543_s0 + $0x450] ss:$8 sps:$4 sm:$0xff]   ;;  %v3950_v39 = vld [vmem:[%s5543_s0 + $0x64] ss:$8 sps:$4 sm:$0xff]  }
   0xd   :  { %v3952_v40 = vld [vmem:[%s5543_s0 + $0x464] ss:$8 sps:$4 sm:$0xff]   ;;  %v3954_v41 = vld [vmem:[%s5543_s0 + $0x60] ss:$8 sps:$4 sm:$0xff]   ;;  %v3956_v43 = vld [vmem:[%s5543_s0 + $0x74] ss:$8 sps:$4 sm:$0xff]  }
   0xe   :  { %1906 = vmatpush1.bf16.msra.mxu0 %v3907_v4  ;;  %3892 = vmatpush1.bf16.msra.mxu1 %v3907_v4  ;;  %v3955_v42 = vld [vmem:[%s5543_s0 + $0x460] ss:$8 sps:$4 sm:$0xff]   ;;  %v3958_v44 = vld [vmem:[%s5543_s0 + $0x474] ss:$8 sps:$4 sm:$0xff]   ;;  %v3960_v45 = vld [vmem:[%s5543_s0 + $0x70] ss:$8 sps:$4 sm:$0xff]  }
   0xf   :  { %1907 = vmatprep.subr.bf16.mxu0 %v4323_v1  ;;  %3883 = vmatprep.subr.bf16.mxu1 %v4323_v1  ;;  %v3961_v46 = vld [vmem:[%s5543_s0 + $0x470] ss:$8 sps:$4 sm:$0xff]   ;;  %v3962_v47 = vld [vmem:[%s5543_s0 + $0x84] ss:$8 sps:$4 sm:$0xff]   ;;  %v3966_v49 = vld [vmem:[%s5543_s0 + $0x80] ss:$8 sps:$4 sm:$0xff]  }
  0x10   :  { %v3964_v48 = vld [vmem:[%s5543_s0 + $0x484] ss:$8 sps:$4 sm:$0xff]   ;;  %v3967_v50 = vld [vmem:[%s5543_s0 + $0x480] ss:$8 sps:$4 sm:$0xff]   ;;  %v3968_v51 = vld [vmem:[%s5543_s0 + $0x94] ss:$8 sps:$4 sm:$0xff]  }
  0x11   :  { %v3970_v52 = vld [vmem:[%s5543_s0 + $0x494] ss:$8 sps:$4 sm:$0xff]   ;;  %v3972_v53 = vld [vmem:[%s5543_s0 + $0x90] ss:$8 sps:$4 sm:$0xff]   ;;  %v3974_v55 = vld [vmem:[%s5543_s0 + $0xa4] ss:$8 sps:$4 sm:$0xff]  }
  0x12   :  { %1908 = vmatpush1.bf16.msra.mxu0 %v3908_v7  ;;  %3893 = vmatpush1.bf16.msra.mxu1 %v3908_v7  ;;  %v3973_v54 = vld [vmem:[%s5543_s0 + $0x490] ss:$8 sps:$4 sm:$0xff]   ;;  %v3976_v56 = vld [vmem:[%s5543_s0 + $0x4a4] ss:$8 sps:$4 sm:$0xff]   ;;  %v3978_v57 = vld [vmem:[%s5543_s0 + $0xa0] ss:$8 sps:$4 sm:$0xff]  }
  0x13   :  { %1909 = vmatprep.subr.bf16.mxu0 %v4323_v1  ;;  %3884 = vmatprep.subr.bf16.mxu1 %v4323_v1  ;;  %v3979_v58 = vld [vmem:[%s5543_s0 + $0x4a0] ss:$8 sps:$4 sm:$0xff]   ;;  %v3980_v59 = vld [vmem:[%s5543_s0 + $0xb4] ss:$8 sps:$4 sm:$0xff]   ;;  %v3984_v61 = vld [vmem:[%s5543_s0 + $0xb0] ss:$8 sps:$4 sm:$0xff]  }
  0x14   :  { %v3982_v60 = vld [vmem:[%s5543_s0 + $0x4b4] ss:$8 sps:$4 sm:$0xff]   ;;  %v3985_v62 = vld [vmem:[%s5543_s0 + $0x4b0] ss:$8 sps:$4 sm:$0xff]   ;;  %v3986_v63 = vld [vmem:[%s5543_s0 + $0xc4] ss:$8 sps:$4 sm:$0xff]  }
  0x15   :  { %v3988_v0 = vld [vmem:[%s5543_s0 + $0x4c4] ss:$8 sps:$4 sm:$0xff]  }
  0x16   :  { %1910 = vmatpush1.bf16.msra.mxu0 %v3909_v8  ;;  %3894 = vmatpush1.bf16.msra.mxu1 %v3909_v8 }
  0x17   :  { %1911 = vmatprep.subr.bf16.mxu0 %v4323_v1  ;;  %3885 = vmatprep.subr.bf16.mxu1 %v4323_v1 }
  0x1a   :  { %1912 = vmatpush1.bf16.msra.mxu0 %v3910_v9  ;;  %3895 = vmatpush1.bf16.msra.mxu1 %v3910_v9 }
  0x1b   :  { %1913 = vmatprep.subr.bf16.mxu0 %v4323_v1  ;;  %3886 = vmatprep.subr.bf16.mxu1 %v4323_v1 }
  0x1e   :  { %1914 = vmatpush1.bf16.msra.mxu0 %v3911_v12  ;;  %3896 = vmatpush1.bf16.msra.mxu1 %v3911_v12 }
  0x1f   :  { %1927 = vmatprep.subr.bf16.mxu0 %v4323_v1  ;;  %3887 = vmatprep.subr.bf16.mxu1 %v4323_v1 }
  0x22   :  { %1928 = vmatpush2.bf16.msra.mxu0 %v1897_v15  ;;  %3897 = vmatpush2.bf16.msra.mxu1 %v1897_v15 }
  0x23   :  { %1929 = vmatprep.subr.bf16.mxu0 %v4323_v1  ;;  %3888 = vmatprep.subr.bf16.mxu1 %v4323_v1 }
  0x26   :  { %1930 = vmatpush2.bf16.msra.mxu0 %v3913_v16  ;;  %3898 = vmatpush2.bf16.msra.mxu1 %v3913_v16 }
  0x29   :  { %1932 = vmatmul.mubr.bf16.vlgmr.msra.gmra.mxu0 %v3914_v17  ;;  %2444 = vmatmul.mubr.bf16.vlgmr.msra.gmra.mxu1 %v3917_v18 }
  0x2a   :  { %3752 = vmatprep.mubr.msk.bf16.mxu0 %vm1507_vm0, %v3920_v19  ;;  %3816 = vmatprep.mubr.msk.bf16.mxu1 %vm1507_vm0, %v3922_v20 }
  0x31   :  { %1940 = vmatmul.mubr.bf16.gmra.mxu0 %v3924_v21  ;;  %2452 = vmatmul.mubr.bf16.gmra.mxu1 %v3925_v22 }
  0x32   :  { %3753 = vmatprep.mubr.msk.bf16.mxu0 %vm1507_vm0, %v3926_v23  ;;  %3817 = vmatprep.mubr.msk.bf16.mxu1 %vm1507_vm0, %v3928_v24 }
  0x39   :  { %1948 = vmatmul.mubr.bf16.gmra.mxu0 %v3930_v25  ;;  %2460 = vmatmul.mubr.bf16.gmra.mxu1 %v3931_v26 }
  0x3a   :  { %3754 = vmatprep.mubr.msk.bf16.mxu0 %vm1507_vm0, %v3932_v27  ;;  %3818 = vmatprep.mubr.msk.bf16.mxu1 %vm1507_vm0, %v3934_v28 }
  0x41   :  { %1956 = vmatmul.mubr.bf16.gmra.mxu0 %v3936_v29  ;;  %2468 = vmatmul.mubr.bf16.gmra.mxu1 %v3937_v30 }
  0x42   :  { %3755 = vmatprep.mubr.msk.bf16.mxu0 %vm1507_vm0, %v3938_v31  ;;  %3819 = vmatprep.mubr.msk.bf16.mxu1 %vm1507_vm0, %v3940_v32 }
  0x49   :  { %1964 = vmatmul.mubr.bf16.gmra.mxu0 %v3942_v33  ;;  %2476 = vmatmul.mubr.bf16.gmra.mxu1 %v3943_v34 }
  0x4a   :  { %3756 = vmatprep.mubr.msk.bf16.mxu0 %vm1507_vm0, %v3944_v35  ;;  %3820 = vmatprep.mubr.msk.bf16.mxu1 %vm1507_vm0, %v3946_v36 }
  0x51   :  { %1972 = vmatmul.mubr.bf16.gmra.mxu0 %v3948_v37  ;;  %2484 = vmatmul.mubr.bf16.gmra.mxu1 %v3949_v38 }
  0x52   :  { %3757 = vmatprep.mubr.msk.bf16.mxu0 %vm1507_vm0, %v3950_v39  ;;  %3821 = vmatprep.mubr.msk.bf16.mxu1 %vm1507_vm0, %v3952_v40 }
  0x59   :  { %1980 = vmatmul.mubr.bf16.gmra.mxu0 %v3954_v41  ;;  %2492 = vmatmul.mubr.bf16.gmra.mxu1 %v3955_v42 }
  0x5a   :  { %3758 = vmatprep.mubr.msk.bf16.mxu0 %vm1507_vm0, %v3956_v43  ;;  %3822 = vmatprep.mubr.msk.bf16.mxu1 %vm1507_vm0, %v3958_v44 }
  0x61   :  { %1988 = vmatmul.mubr.bf16.gmra.mxu0 %v3960_v45  ;;  %2500 = vmatmul.mubr.bf16.gmra.mxu1 %v3961_v46 }
  0x62   :  { %3759 = vmatprep.mubr.msk.bf16.mxu0 %vm1507_vm0, %v3962_v47  ;;  %3823 = vmatprep.mubr.msk.bf16.mxu1 %vm1507_vm0, %v3964_v48 }
  0x69   :  { %1996 = vmatmul.mubr.bf16.gmra.mxu0 %v3966_v49  ;;  %2508 = vmatmul.mubr.bf16.gmra.mxu1 %v3967_v50 }
  0x6a   :  { %3760 = vmatprep.mubr.msk.bf16.mxu0 %vm1507_vm0, %v3968_v51  ;;  %3824 = vmatprep.mubr.msk.bf16.mxu1 %vm1507_vm0, %v3970_v52 }
  0x71   :  { %2004 = vmatmul.mubr.bf16.gmra.mxu0 %v3972_v53  ;;  %2516 = vmatmul.mubr.bf16.gmra.mxu1 %v3973_v54 }
  0x72   :  { %3761 = vmatprep.mubr.msk.bf16.mxu0 %vm1507_vm0, %v3974_v55  ;;  %3825 = vmatprep.mubr.msk.bf16.mxu1 %vm1507_vm0, %v3976_v56 }
  0x79   :  { %2012 = vmatmul.mubr.bf16.gmra.mxu0 %v3978_v57  ;;  %2524 = vmatmul.mubr.bf16.gmra.mxu1 %v3979_v58 }
  0x7a   :  { %3762 = vmatprep.mubr.msk.bf16.mxu0 %vm1507_vm0, %v3980_v59  ;;  %3826 = vmatprep.mubr.msk.bf16.mxu1 %vm1507_vm0, %v3982_v60 }
  0x81   :  { %2020 = vmatmul.mubr.bf16.gmra.mxu0 %v3984_v61  ;;  %2532 = vmatmul.mubr.bf16.gmra.mxu1 %v3985_v62 }
  0x82   :  { %3763 = vmatprep.mubr.msk.bf16.mxu0 %vm1507_vm0, %v3986_v63  ;;  %3827 = vmatprep.mubr.msk.bf16.mxu1 %vm1507_vm0, %v3988_v0 }
  0x83   :  { %8 = vsyncpa [#allocation3], 0  ;;  %v3990_v1 = vld [vmem:[%s5543_s0 + $0xc0] ss:$8 sps:$4 sm:$0xff]   ;;  %v3992_v3 = vld [vmem:[%s5543_s0 + $0xd4] ss:$8 sps:$4 sm:$0xff]  }
  0x84   :  { %v3991_v2 = vld [vmem:[%s5543_s0 + $0x4c0] ss:$8 sps:$4 sm:$0xff]   ;;  %v3994_v4 = vld [vmem:[%s5543_s0 + $0x4d4] ss:$8 sps:$4 sm:$0xff]   ;;  %v3996_v5 = vld [vmem:[%s5543_s0 + $0xd0] ss:$8 sps:$4 sm:$0xff]  }
  0x85   :  { %v3997_v6 = vld [vmem:[%s5543_s0 + $0x4d0] ss:$8 sps:$4 sm:$0xff]   ;;  %v3998_v7 = vld [vmem:[%s5543_s0 + $0xe4] ss:$8 sps:$4 sm:$0xff]   ;;  %v4002_v9 = vld [vmem:[%s5543_s0 + $0xe0] ss:$8 sps:$4 sm:$0xff]  }
  0x86   :  { %v4000_v8 = vld [vmem:[%s5543_s0 + $0x4e4] ss:$8 sps:$4 sm:$0xff]   ;;  %v4003_v10 = vld [vmem:[%s5543_s0 + $0x4e0] ss:$8 sps:$4 sm:$0xff]   ;;  %v4004_v11 = vld [vmem:[%s5543_s0 + $0xf4] ss:$8 sps:$4 sm:$0xff]  }
  0x87   :  { %v4006_v12 = vld [vmem:[%s5543_s0 + $0x4f4] ss:$8 sps:$4 sm:$0xff]   ;;  %v4008_v13 = vld [vmem:[%s5543_s0 + $0xf0] ss:$8 sps:$4 sm:$0xff]   ;;  %v4010_v15 = vld [vmem:[%s5543_s0 + $0x104] ss:$8 sps:$4 sm:$0xff]  }
  0x88   :  { %v4009_v14 = vld [vmem:[%s5543_s0 + $0x4f0] ss:$8 sps:$4 sm:$0xff]   ;;  %v4012_v16 = vld [vmem:[%s5543_s0 + $0x504] ss:$8 sps:$4 sm:$0xff]   ;;  %v4014_v17 = vld [vmem:[%s5543_s0 + $0x100] ss:$8 sps:$4 sm:$0xff]  }
  0x89   :  { %2028 = vmatmul.mubr.bf16.gmra.mxu0 %v3990_v1  ;;  %2540 = vmatmul.mubr.bf16.gmra.mxu1 %v3991_v2  ;;  %v4015_v18 = vld [vmem:[%s5543_s0 + $0x500] ss:$8 sps:$4 sm:$0xff]   ;;  %v4016_v19 = vld [vmem:[%s5543_s0 + $0x114] ss:$8 sps:$4 sm:$0xff]   ;;  %v4020_v21 = vld [vmem:[%s5543_s0 + $0x110] ss:$8 sps:$4 sm:$0xff]  }
  0x8a   :  { %3764 = vmatprep.mubr.msk.bf16.mxu0 %vm1507_vm0, %v3992_v3  ;;  %3828 = vmatprep.mubr.msk.bf16.mxu1 %vm1507_vm0, %v3994_v4  ;;  %v4018_v20 = vld [vmem:[%s5543_s0 + $0x514] ss:$8 sps:$4 sm:$0xff]   ;;  %v4021_v22 = vld [vmem:[%s5543_s0 + $0x510] ss:$8 sps:$4 sm:$0xff]   ;;  %v4022_v23 = vld [vmem:[%s5543_s0 + $0x124] ss:$8 sps:$4 sm:$0xff]  }
  0x8b   :  { %v4024_v24 = vld [vmem:[%s5543_s0 + $0x524] ss:$8 sps:$4 sm:$0xff]   ;;  %v4026_v25 = vld [vmem:[%s5543_s0 + $0x120] ss:$8 sps:$4 sm:$0xff]   ;;  %v4028_v27 = vld [vmem:[%s5543_s0 + $0x134] ss:$8 sps:$4 sm:$0xff]  }
  0x8c   :  { %v4027_v26 = vld [vmem:[%s5543_s0 + $0x520] ss:$8 sps:$4 sm:$0xff]   ;;  %v4030_v28 = vld [vmem:[%s5543_s0 + $0x534] ss:$8 sps:$4 sm:$0xff]   ;;  %v4032_v29 = vld [vmem:[%s5543_s0 + $0x130] ss:$8 sps:$4 sm:$0xff]  }
  0x8d   :  { %v4033_v30 = vld [vmem:[%s5543_s0 + $0x530] ss:$8 sps:$4 sm:$0xff]   ;;  %v4034_v31 = vld [vmem:[%s5543_s0 + $0x144] ss:$8 sps:$4 sm:$0xff]   ;;  %v4038_v33 = vld [vmem:[%s5543_s0 + $0x140] ss:$8 sps:$4 sm:$0xff]  }
  0x8e   :  { %v4036_v32 = vld [vmem:[%s5543_s0 + $0x544] ss:$8 sps:$4 sm:$0xff]   ;;  %v4039_v34 = vld [vmem:[%s5543_s0 + $0x540] ss:$8 sps:$4 sm:$0xff]   ;;  %v4040_v35 = vld [vmem:[%s5543_s0 + $0x154] ss:$8 sps:$4 sm:$0xff]  }
  0x8f   :  { %v4042_v36 = vld [vmem:[%s5543_s0 + $0x554] ss:$8 sps:$4 sm:$0xff]   ;;  %v4044_v37 = vld [vmem:[%s5543_s0 + $0x150] ss:$8 sps:$4 sm:$0xff]   ;;  %v4046_v39 = vld [vmem:[%s5543_s0 + $0x164] ss:$8 sps:$4 sm:$0xff]  }
  0x90   :  { %v4045_v38 = vld [vmem:[%s5543_s0 + $0x550] ss:$8 sps:$4 sm:$0xff]   ;;  %v4048_v40 = vld [vmem:[%s5543_s0 + $0x564] ss:$8 sps:$4 sm:$0xff]   ;;  %v4050_v41 = vld [vmem:[%s5543_s0 + $0x160] ss:$8 sps:$4 sm:$0xff]  }
  0x91   :  { %2036 = vmatmul.mubr.bf16.gmra.mxu0 %v3996_v5  ;;  %2548 = vmatmul.mubr.bf16.gmra.mxu1 %v3997_v6  ;;  %v4051_v42 = vld [vmem:[%s5543_s0 + $0x560] ss:$8 sps:$4 sm:$0xff]   ;;  %v4052_v43 = vld [vmem:[%s5543_s0 + $0x174] ss:$8 sps:$4 sm:$0xff]   ;;  %v4056_v45 = vld [vmem:[%s5543_s0 + $0x170] ss:$8 sps:$4 sm:$0xff]  }
  0x92   :  { %3765 = vmatprep.mubr.msk.bf16.mxu0 %vm1507_vm0, %v3998_v7  ;;  %3829 = vmatprep.mubr.msk.bf16.mxu1 %vm1507_vm0, %v4000_v8  ;;  %v4054_v44 = vld [vmem:[%s5543_s0 + $0x574] ss:$8 sps:$4 sm:$0xff]   ;;  %v4057_v46 = vld [vmem:[%s5543_s0 + $0x570] ss:$8 sps:$4 sm:$0xff]   ;;  %v4058_v47 = vld [vmem:[%s5543_s0 + $0x184] ss:$8 sps:$4 sm:$0xff]  }
  0x93   :  { %v4060_v48 = vld [vmem:[%s5543_s0 + $0x584] ss:$8 sps:$4 sm:$0xff]   ;;  %v4062_v49 = vld [vmem:[%s5543_s0 + $0x180] ss:$8 sps:$4 sm:$0xff]   ;;  %v4064_v51 = vld [vmem:[%s5543_s0 + $0x194] ss:$8 sps:$4 sm:$0xff]  }
  0x94   :  { %v4063_v50 = vld [vmem:[%s5543_s0 + $0x580] ss:$8 sps:$4 sm:$0xff]   ;;  %v4066_v52 = vld [vmem:[%s5543_s0 + $0x594] ss:$8 sps:$4 sm:$0xff]   ;;  %v4068_v0 = vld [vmem:[%s5543_s0 + $0x190] ss:$8 sps:$4 sm:$0xff]  }
  0x95   :  { %v4737_v53 = vld [vmem:[%s5545_s2] ss:$0 sm:$0xff]  ;;  %v4069_v1 = vld [vmem:[%s5543_s0 + $0x590] ss:$8 sps:$4 sm:$0xff]   ;;  %v4070_v4 = vld [vmem:[%s5543_s0 + $0x1a4] ss:$8 sps:$4 sm:$0xff]  }
  0x96   :  { %v4072_v5 = vld [vmem:[%s5543_s0 + $0x5a4] ss:$8 sps:$4 sm:$0xff]  }
  0x99   :  { %2044 = vmatmul.mubr.bf16.gmra.mxu0 %v4002_v9  ;;  %2556 = vmatmul.mubr.bf16.gmra.mxu1 %v4003_v10 }
  0x9a   :  { %3766 = vmatprep.mubr.msk.bf16.mxu0 %vm1507_vm0, %v4004_v11  ;;  %3830 = vmatprep.mubr.msk.bf16.mxu1 %vm1507_vm0, %v4006_v12 }
  0xa1   :  { %2052 = vmatmul.mubr.bf16.gmra.mxu0 %v4008_v13  ;;  %2564 = vmatmul.mubr.bf16.gmra.mxu1 %v4009_v14 }
  0xa2   :  { %3767 = vmatprep.mubr.msk.bf16.mxu0 %vm1507_vm0, %v4010_v15  ;;  %3831 = vmatprep.mubr.msk.bf16.mxu1 %vm1507_vm0, %v4012_v16 }
  0xa9   :  { %2060 = vmatmul.mubr.bf16.gmra.mxu0 %v4014_v17  ;;  %2572 = vmatmul.mubr.bf16.gmra.mxu1 %v4015_v18 }
  0xaa   :  { %3768 = vmatprep.mubr.msk.bf16.mxu0 %vm1507_vm0, %v4016_v19  ;;  %3832 = vmatprep.mubr.msk.bf16.mxu1 %vm1507_vm0, %v4018_v20  ;;  %v4074_v20 = vld [vmem:[%s5543_s0 + $0x1a0] ss:$8 sps:$4 sm:$0xff]  }
  0xb1   :  { %2068 = vmatmul.mubr.bf16.gmra.mxu0 %v4020_v21  ;;  %2580 = vmatmul.mubr.bf16.gmra.mxu1 %v4021_v22  ;;  %v4075_v21 = vld [vmem:[%s5543_s0 + $0x5a0] ss:$8 sps:$4 sm:$0xff]  }
  0xb2   :  { %3769 = vmatprep.mubr.msk.bf16.mxu0 %vm1507_vm0, %v4022_v23  ;;  %3833 = vmatprep.mubr.msk.bf16.mxu1 %vm1507_vm0, %v4024_v24  ;;  %v4076_v24 = vld [vmem:[%s5543_s0 + $0x1b4] ss:$8 sps:$4 sm:$0xff]  }
  0xb9   :  { %2076 = vmatmul.mubr.bf16.gmra.mxu0 %v4026_v25  ;;  %2588 = vmatmul.mubr.bf16.gmra.mxu1 %v4027_v26  ;;  %v4078_v25 = vld [vmem:[%s5543_s0 + $0x5b4] ss:$8 sps:$4 sm:$0xff]  }
  0xba   :  { %3770 = vmatprep.mubr.msk.bf16.mxu0 %vm1507_vm0, %v4028_v27  ;;  %3834 = vmatprep.mubr.msk.bf16.mxu1 %vm1507_vm0, %v4030_v28 }
  0xc1   :  { %2084 = vmatmul.mubr.bf16.gmra.mxu0 %v4032_v29  ;;  %2596 = vmatmul.mubr.bf16.gmra.mxu1 %v4033_v30 }
  0xc2   :  { %3771 = vmatprep.mubr.msk.bf16.mxu0 %vm1507_vm0, %v4034_v31  ;;  %3835 = vmatprep.mubr.msk.bf16.mxu1 %vm1507_vm0, %v4036_v32 }
  0xc9   :  { %2092 = vmatmul.mubr.bf16.gmra.mxu0 %v4038_v33  ;;  %2604 = vmatmul.mubr.bf16.gmra.mxu1 %v4039_v34 }
  0xca   :  { %3772 = vmatprep.mubr.msk.bf16.mxu0 %vm1507_vm0, %v4040_v35  ;;  %3836 = vmatprep.mubr.msk.bf16.mxu1 %vm1507_vm0, %v4042_v36 }
  0xd1   :  { %2100 = vmatmul.mubr.bf16.gmra.mxu0 %v4044_v37  ;;  %2612 = vmatmul.mubr.bf16.gmra.mxu1 %v4045_v38 }
  0xd2   :  { %3773 = vmatprep.mubr.msk.bf16.mxu0 %vm1507_vm0, %v4046_v39  ;;  %3837 = vmatprep.mubr.msk.bf16.mxu1 %vm1507_vm0, %v4048_v40  ;;  %v4080_v40 = vld [vmem:[%s5543_s0 + $0x1b0] ss:$8 sps:$4 sm:$0xff]  }
  0xd9   :  { %2108 = vmatmul.mubr.bf16.gmra.mxu0 %v4050_v41  ;;  %2620 = vmatmul.mubr.bf16.gmra.mxu1 %v4051_v42  ;;  %v4081_v41 = vld [vmem:[%s5543_s0 + $0x5b0] ss:$8 sps:$4 sm:$0xff]  }
  0xda   :  { %3774 = vmatprep.mubr.msk.bf16.mxu0 %vm1507_vm0, %v4052_v43  ;;  %3838 = vmatprep.mubr.msk.bf16.mxu1 %vm1507_vm0, %v4054_v44  ;;  %v4082_v44 = vld [vmem:[%s5543_s0 + $0x1c4] ss:$8 sps:$4 sm:$0xff]  }
  0xe1   :  { %2116 = vmatmul.mubr.bf16.gmra.mxu0 %v4056_v45  ;;  %2628 = vmatmul.mubr.bf16.gmra.mxu1 %v4057_v46  ;;  %v4084_v45 = vld [vmem:[%s5543_s0 + $0x5c4] ss:$8 sps:$4 sm:$0xff]  }
  0xe2   :  { %3775 = vmatprep.mubr.msk.bf16.mxu0 %vm1507_vm0, %v4058_v47  ;;  %3839 = vmatprep.mubr.msk.bf16.mxu1 %vm1507_vm0, %v4060_v48 }
  0xe9   :  { %v1933_v54 = vpop.f32.mrf.mxu0  ;;  %2124 = vmatmul.mubr.bf16.gmra.mxu0 %v4062_v49  ;;  %v2445_v55 = vpop.f32.mrf.mxu1  ;;  %2636 = vmatmul.mubr.bf16.gmra.mxu1 %v4063_v50 }
  0xea   :  { %v1934_v56 = vadd.f32 %v4737_v53, %v1933_v54  ;;  %v2446_v57 = vadd.f32 %v4737_v53, %v2445_v55  ;;  %3776 = vmatprep.mubr.msk.bf16.mxu0 %vm1507_vm0, %v4064_v51  ;;  %3840 = vmatprep.mubr.msk.bf16.mxu1 %vm1507_vm0, %v4066_v52 }
  0xeb   :  { %v1935_v58 = vpop.f32.mrf.mxu0  ;;  %v2447_v59 = vpop.f32.mrf.mxu1 }
  0xec   :  { %v2956_v60 = vmax.f32 %v1934_v56, 0.0  ;;  %v3084_v61 = vmax.f32 %v2446_v57, 0.0 }
  0xed   :  { %v1936_v62 = vpop.f32.mrf.mxu0  ;;  %v2448_v63 = vpop.f32.mrf.mxu1 }
  0xee   :  { %3212 = vst [vmem:[#allocation2] sm:$0xff] %v2956_v60  ;;  %3340 = vst [vmem:[#allocation2 + $0x400] sm:$0xff] %v3084_v61  ;;  %v1937_v2 = vadd.f32 %v4737_v53, %v1936_v62  ;;  %v2449_v3 = vadd.f32 %v4737_v53, %v2448_v63  ;;  %v4086_v61 = vld [vmem:[%s5543_s0 + $0x1c0] ss:$8 sps:$4 sm:$0xff]  }
  0xef   :  { %v1938_v6 = vpop.f32.mrf.mxu0  ;;  %v2450_v7 = vpop.f32.mrf.mxu1  ;;  %v4087_v62 = vld [vmem:[%s5543_s0 + $0x5c0] ss:$8 sps:$4 sm:$0xff]  }
  0xf0   :  { %v2957_v8 = vmax.f32 %v1937_v2, 0.0  ;;  %v3085_v9 = vmax.f32 %v2449_v3, 0.0  ;;  %v4090_v2 = vld [vmem:[%s5543_s0 + $0x5d4] ss:$8 sps:$4 sm:$0xff]  }
  0xf1   :  { %v1941_v10 = vpop.f32.mrf.mxu0  ;;  %2132 = vmatmul.mubr.bf16.gmra.mxu0 %v4068_v0  ;;  %v2453_v11 = vpop.f32.mrf.mxu1  ;;  %2644 = vmatmul.mubr.bf16.gmra.mxu1 %v4069_v1  ;;  %v4088_v1 = vld [vmem:[%s5543_s0 + $0x1d4] ss:$8 sps:$4 sm:$0xff]  }
  0xf2   :  { %3213 = vst [vmem:[#allocation2 + $0x8] sm:$0xff] %v2957_v8  ;;  %3341 = vst [vmem:[#allocation2 + $0x408] sm:$0xff] %v3085_v9  ;;  %v1942_v12 = vadd.f32 %v4737_v53, %v1941_v10  ;;  %v2454_v13 = vadd.f32 %v4737_v53, %v2453_v11  ;;  %3777 = vmatprep.mubr.msk.bf16.mxu0 %vm1507_vm0, %v4070_v4  ;;  %3841 = vmatprep.mubr.msk.bf16.mxu1 %vm1507_vm0, %v4072_v5 }
  0xf3   :  { %v1943_v14 = vpop.f32.mrf.mxu0  ;;  %v2455_v15 = vpop.f32.mrf.mxu1 }
  0xf4   :  { %v2958_v16 = vmax.f32 %v1942_v12, 0.0  ;;  %v3086_v17 = vmax.f32 %v2454_v13, 0.0 }
  0xf5   :  { %v1944_v18 = vpop.f32.mrf.mxu0  ;;  %v2456_v19 = vpop.f32.mrf.mxu1 }
  0xf6   :  { %3214 = vst [vmem:[#allocation2 + $0x10] sm:$0xff] %v2958_v16  ;;  %3342 = vst [vmem:[#allocation2 + $0x410] sm:$0xff] %v3086_v17  ;;  %v1945_v22 = vadd.f32 %v4737_v53, %v1944_v18  ;;  %v2457_v23 = vadd.f32 %v4737_v53, %v2456_v19  ;;  %v4092_v17 = vld [vmem:[%s5543_s0 + $0x1d0] ss:$8 sps:$4 sm:$0xff]  }
  0xf7   :  { %v1946_v26 = vpop.f32.mrf.mxu0  ;;  %v2458_v27 = vpop.f32.mrf.mxu1  ;;  %v4093_v18 = vld [vmem:[%s5543_s0 + $0x5d0] ss:$8 sps:$4 sm:$0xff]  }
  0xf8   :  { %v2959_v28 = vmax.f32 %v1945_v22, 0.0  ;;  %v3087_v29 = vmax.f32 %v2457_v23, 0.0  ;;  %v4096_v22 = vld [vmem:[%s5543_s0 + $0x5e4] ss:$8 sps:$4 sm:$0xff]  }
  0xf9   :  { %v1949_v30 = vpop.f32.mrf.mxu0  ;;  %2140 = vmatmul.mubr.bf16.gmra.mxu0 %v4074_v20  ;;  %v2461_v31 = vpop.f32.mrf.mxu1  ;;  %2652 = vmatmul.mubr.bf16.gmra.mxu1 %v4075_v21  ;;  %v4094_v21 = vld [vmem:[%s5543_s0 + $0x1e4] ss:$8 sps:$4 sm:$0xff]  }
  0xfa   :  { %3215 = vst [vmem:[#allocation2 + $0x18] sm:$0xff] %v2959_v28  ;;  %3343 = vst [vmem:[#allocation2 + $0x418] sm:$0xff] %v3087_v29  ;;  %v1950_v32 = vadd.f32 %v4737_v53, %v1949_v30  ;;  %v2462_v33 = vadd.f32 %v4737_v53, %v2461_v31  ;;  %3778 = vmatprep.mubr.msk.bf16.mxu0 %vm1507_vm0, %v4076_v24  ;;  %3842 = vmatprep.mubr.msk.bf16.mxu1 %vm1507_vm0, %v4078_v25 }
  0xfb   :  { %v1951_v34 = vpop.f32.mrf.mxu0  ;;  %v2463_v35 = vpop.f32.mrf.mxu1 }
  0xfc   :  { %v2960_v36 = vmax.f32 %v1950_v32, 0.0  ;;  %v3088_v37 = vmax.f32 %v2462_v33, 0.0 }
  0xfd   :  { %v1952_v38 = vpop.f32.mrf.mxu0  ;;  %v2464_v39 = vpop.f32.mrf.mxu1 }
  0xfe   :  { %3216 = vst [vmem:[#allocation2 + $0x20] sm:$0xff] %v2960_v36  ;;  %3344 = vst [vmem:[#allocation2 + $0x420] sm:$0xff] %v3088_v37  ;;  %v1953_v42 = vadd.f32 %v4737_v53, %v1952_v38  ;;  %v2465_v43 = vadd.f32 %v4737_v53, %v2464_v39  ;;  %v4098_v37 = vld [vmem:[%s5543_s0 + $0x1e0] ss:$8 sps:$4 sm:$0xff]  }
  0xff   :  { %v1954_v46 = vpop.f32.mrf.mxu0  ;;  %v2466_v47 = vpop.f32.mrf.mxu1  ;;  %v4099_v38 = vld [vmem:[%s5543_s0 + $0x5e0] ss:$8 sps:$4 sm:$0xff]  }
 0x100   :  { %v2961_v48 = vmax.f32 %v1953_v42, 0.0  ;;  %v3089_v49 = vmax.f32 %v2465_v43, 0.0  ;;  %v4102_v42 = vld [vmem:[%s5543_s0 + $0x5f4] ss:$8 sps:$4 sm:$0xff]  }
 0x101   :  { %v1957_v50 = vpop.f32.mrf.mxu0  ;;  %2148 = vmatmul.mubr.bf16.gmra.mxu0 %v4080_v40  ;;  %v2469_v51 = vpop.f32.mrf.mxu1  ;;  %2660 = vmatmul.mubr.bf16.gmra.mxu1 %v4081_v41  ;;  %v4100_v41 = vld [vmem:[%s5543_s0 + $0x1f4] ss:$8 sps:$4 sm:$0xff]  }
 0x102   :  { %3217 = vst [vmem:[#allocation2 + $0x28] sm:$0xff] %v2961_v48  ;;  %3345 = vst [vmem:[#allocation2 + $0x428] sm:$0xff] %v3089_v49  ;;  %v1958_v52 = vadd.f32 %v4737_v53, %v1957_v50  ;;  %v2470_v54 = vadd.f32 %v4737_v53, %v2469_v51  ;;  %3779 = vmatprep.mubr.msk.bf16.mxu0 %vm1507_vm0, %v4082_v44  ;;  %3843 = vmatprep.mubr.msk.bf16.mxu1 %vm1507_vm0, %v4084_v45 }
 0x103   :  { %v1959_v55 = vpop.f32.mrf.mxu0  ;;  %v2471_v56 = vpop.f32.mrf.mxu1 }
 0x104   :  { %v2962_v57 = vmax.f32 %v1958_v52, 0.0  ;;  %v3090_v58 = vmax.f32 %v2470_v54, 0.0 }
 0x105   :  { %v1960_v59 = vpop.f32.mrf.mxu0  ;;  %v2472_v60 = vpop.f32.mrf.mxu1 }
 0x106   :  { %3218 = vst [vmem:[#allocation2 + $0x30] sm:$0xff] %v2962_v57  ;;  %3346 = vst [vmem:[#allocation2 + $0x430] sm:$0xff] %v3090_v58  ;;  %v1961_v63 = vadd.f32 %v4737_v53, %v1960_v59  ;;  %v2473_v0 = vadd.f32 %v4737_v53, %v2472_v60  ;;  %v4104_v58 = vld [vmem:[%s5543_s0 + $0x1f0] ss:$8 sps:$4 sm:$0xff]  }
 0x107   :  { %v1962_v3 = vpop.f32.mrf.mxu0  ;;  %v2474_v4 = vpop.f32.mrf.mxu1  ;;  %v4105_v59 = vld [vmem:[%s5543_s0 + $0x5f0] ss:$8 sps:$4 sm:$0xff]  }
 0x108   :  { %v2963_v5 = vmax.f32 %v1961_v63, 0.0  ;;  %v3091_v6 = vmax.f32 %v2473_v0, 0.0  ;;  %v4108_v63 = vld [vmem:[%s5543_s0 + $0x604] ss:$8 sps:$4 sm:$0xff]  }
 0x109   :  { %v1965_v7 = vpop.f32.mrf.mxu0  ;;  %2156 = vmatmul.mubr.bf16.gmra.mxu0 %v4086_v61  ;;  %v2477_v8 = vpop.f32.mrf.mxu1  ;;  %2668 = vmatmul.mubr.bf16.gmra.mxu1 %v4087_v62  ;;  %v4106_v62 = vld [vmem:[%s5543_s0 + $0x204] ss:$8 sps:$4 sm:$0xff]  }
 0x10a   :  { %3219 = vst [vmem:[#allocation2 + $0x38] sm:$0xff] %v2963_v5  ;;  %3347 = vst [vmem:[#allocation2 + $0x438] sm:$0xff] %v3091_v6  ;;  %v1966_v9 = vadd.f32 %v4737_v53, %v1965_v7  ;;  %v2478_v10 = vadd.f32 %v4737_v53, %v2477_v8  ;;  %3780 = vmatprep.mubr.msk.bf16.mxu0 %vm1507_vm0, %v4088_v1  ;;  %3844 = vmatprep.mubr.msk.bf16.mxu1 %vm1507_vm0, %v4090_v2 }
 0x10b   :  { %v1967_v11 = vpop.f32.mrf.mxu0  ;;  %v2479_v12 = vpop.f32.mrf.mxu1 }
 0x10c   :  { %v2964_v13 = vmax.f32 %v1966_v9, 0.0  ;;  %v3092_v14 = vmax.f32 %v2478_v10, 0.0 }
 0x10d   :  { %v1968_v15 = vpop.f32.mrf.mxu0  ;;  %v2480_v16 = vpop.f32.mrf.mxu1 }
 0x10e   :  { %3220 = vst [vmem:[#allocation2 + $0x40] sm:$0xff] %v2964_v13  ;;  %3348 = vst [vmem:[#allocation2 + $0x440] sm:$0xff] %v3092_v14  ;;  %v1969_v19 = vadd.f32 %v4737_v53, %v1968_v15  ;;  %v2481_v20 = vadd.f32 %v4737_v53, %v2480_v16  ;;  %v4110_v14 = vld [vmem:[%s5543_s0 + $0x200] ss:$8 sps:$4 sm:$0xff]  }
 0x10f   :  { %v1970_v23 = vpop.f32.mrf.mxu0  ;;  %v2482_v24 = vpop.f32.mrf.mxu1  ;;  %v4111_v15 = vld [vmem:[%s5543_s0 + $0x600] ss:$8 sps:$4 sm:$0xff]  }
 0x110   :  { %v2965_v25 = vmax.f32 %v1969_v19, 0.0  ;;  %v3093_v26 = vmax.f32 %v2481_v20, 0.0  ;;  %v4114_v19 = vld [vmem:[%s5543_s0 + $0x614] ss:$8 sps:$4 sm:$0xff]  }
 0x111   :  { %v1973_v27 = vpop.f32.mrf.mxu0  ;;  %2164 = vmatmul.mubr.bf16.gmra.mxu0 %v4092_v17  ;;  %v2485_v28 = vpop.f32.mrf.mxu1  ;;  %2676 = vmatmul.mubr.bf16.gmra.mxu1 %v4093_v18  ;;  %v4112_v18 = vld [vmem:[%s5543_s0 + $0x214] ss:$8 sps:$4 sm:$0xff]  }
 0x112   :  { %3221 = vst [vmem:[#allocation2 + $0x48] sm:$0xff] %v2965_v25  ;;  %3349 = vst [vmem:[#allocation2 + $0x448] sm:$0xff] %v3093_v26  ;;  %v1974_v29 = vadd.f32 %v4737_v53, %v1973_v27  ;;  %v2486_v30 = vadd.f32 %v4737_v53, %v2485_v28  ;;  %3781 = vmatprep.mubr.msk.bf16.mxu0 %vm1507_vm0, %v4094_v21  ;;  %3845 = vmatprep.mubr.msk.bf16.mxu1 %vm1507_vm0, %v4096_v22 }
 0x113   :  { %v1975_v31 = vpop.f32.mrf.mxu0  ;;  %v2487_v32 = vpop.f32.mrf.mxu1 }
 0x114   :  { %v2966_v33 = vmax.f32 %v1974_v29, 0.0  ;;  %v3094_v34 = vmax.f32 %v2486_v30, 0.0 }
 0x115   :  { %v1976_v35 = vpop.f32.mrf.mxu0  ;;  %v2488_v36 = vpop.f32.mrf.mxu1 }
 0x116   :  { %3222 = vst [vmem:[#allocation2 + $0x50] sm:$0xff] %v2966_v33  ;;  %3350 = vst [vmem:[#allocation2 + $0x450] sm:$0xff] %v3094_v34  ;;  %v1977_v39 = vadd.f32 %v4737_v53, %v1976_v35  ;;  %v2489_v40 = vadd.f32 %v4737_v53, %v2488_v36  ;;  %v4116_v34 = vld [vmem:[%s5543_s0 + $0x210] ss:$8 sps:$4 sm:$0xff]  }
 0x117   :  { %v1978_v43 = vpop.f32.mrf.mxu0  ;;  %v2490_v44 = vpop.f32.mrf.mxu1  ;;  %v4117_v35 = vld [vmem:[%s5543_s0 + $0x610] ss:$8 sps:$4 sm:$0xff]  }
 0x118   :  { %v2967_v45 = vmax.f32 %v1977_v39, 0.0  ;;  %v3095_v46 = vmax.f32 %v2489_v40, 0.0  ;;  %v4120_v39 = vld [vmem:[%s5543_s0 + $0x624] ss:$8 sps:$4 sm:$0xff]  }
 0x119   :  { %v1981_v47 = vpop.f32.mrf.mxu0  ;;  %2172 = vmatmul.mubr.bf16.gmra.mxu0 %v4098_v37  ;;  %v2493_v48 = vpop.f32.mrf.mxu1  ;;  %2684 = vmatmul.mubr.bf16.gmra.mxu1 %v4099_v38  ;;  %v4118_v38 = vld [vmem:[%s5543_s0 + $0x224] ss:$8 sps:$4 sm:$0xff]  }
 0x11a   :  { %3223 = vst [vmem:[#allocation2 + $0x58] sm:$0xff] %v2967_v45  ;;  %3351 = vst [vmem:[#allocation2 + $0x458] sm:$0xff] %v3095_v46  ;;  %v1982_v49 = vadd.f32 %v4737_v53, %v1981_v47  ;;  %v2494_v50 = vadd.f32 %v4737_v53, %v2493_v48  ;;  %3782 = vmatprep.mubr.msk.bf16.mxu0 %vm1507_vm0, %v4100_v41  ;;  %3846 = vmatprep.mubr.msk.bf16.mxu1 %vm1507_vm0, %v4102_v42 }
 0x11b   :  { %v1983_v51 = vpop.f32.mrf.mxu0  ;;  %v2495_v52 = vpop.f32.mrf.mxu1 }
 0x11c   :  { %v2968_v54 = vmax.f32 %v1982_v49, 0.0  ;;  %v3096_v55 = vmax.f32 %v2494_v50, 0.0 }
 0x11d   :  { %v1984_v56 = vpop.f32.mrf.mxu0  ;;  %v2496_v57 = vpop.f32.mrf.mxu1 }
 0x11e   :  { %3224 = vst [vmem:[#allocation2 + $0x60] sm:$0xff] %v2968_v54  ;;  %3352 = vst [vmem:[#allocation2 + $0x460] sm:$0xff] %v3096_v55  ;;  %v1985_v60 = vadd.f32 %v4737_v53, %v1984_v56  ;;  %v2497_v61 = vadd.f32 %v4737_v53, %v2496_v57  ;;  %v4122_v55 = vld [vmem:[%s5543_s0 + $0x220] ss:$8 sps:$4 sm:$0xff]  }
 0x11f   :  { %v1986_v0 = vpop.f32.mrf.mxu0  ;;  %v2498_v1 = vpop.f32.mrf.mxu1  ;;  %v4123_v56 = vld [vmem:[%s5543_s0 + $0x620] ss:$8 sps:$4 sm:$0xff]  }
 0x120   :  { %v2969_v2 = vmax.f32 %v1985_v60, 0.0  ;;  %v3097_v3 = vmax.f32 %v2497_v61, 0.0  ;;  %v4126_v60 = vld [vmem:[%s5543_s0 + $0x634] ss:$8 sps:$4 sm:$0xff]  }
 0x121   :  { %v1989_v4 = vpop.f32.mrf.mxu0  ;;  %2180 = vmatmul.mubr.bf16.gmra.mxu0 %v4104_v58  ;;  %v2501_v5 = vpop.f32.mrf.mxu1  ;;  %2692 = vmatmul.mubr.bf16.gmra.mxu1 %v4105_v59  ;;  %v4124_v59 = vld [vmem:[%s5543_s0 + $0x234] ss:$8 sps:$4 sm:$0xff]  }
 0x122   :  { %3225 = vst [vmem:[#allocation2 + $0x68] sm:$0xff] %v2969_v2  ;;  %3353 = vst [vmem:[#allocation2 + $0x468] sm:$0xff] %v3097_v3  ;;  %v1990_v6 = vadd.f32 %v4737_v53, %v1989_v4  ;;  %v2502_v7 = vadd.f32 %v4737_v53, %v2501_v5  ;;  %3783 = vmatprep.mubr.msk.bf16.mxu0 %vm1507_vm0, %v4106_v62  ;;  %3847 = vmatprep.mubr.msk.bf16.mxu1 %vm1507_vm0, %v4108_v63 }
 0x123   :  { %v1991_v8 = vpop.f32.mrf.mxu0  ;;  %v2503_v9 = vpop.f32.mrf.mxu1 }
 0x124   :  { %v2970_v10 = vmax.f32 %v1990_v6, 0.0  ;;  %v3098_v11 = vmax.f32 %v2502_v7, 0.0 }
 0x125   :  { %v1992_v12 = vpop.f32.mrf.mxu0  ;;  %v2504_v13 = vpop.f32.mrf.mxu1 }
 0x126   :  { %3226 = vst [vmem:[#allocation2 + $0x70] sm:$0xff] %v2970_v10  ;;  %3354 = vst [vmem:[#allocation2 + $0x470] sm:$0xff] %v3098_v11  ;;  %v1993_v16 = vadd.f32 %v4737_v53, %v1992_v12  ;;  %v2505_v17 = vadd.f32 %v4737_v53, %v2504_v13  ;;  %v4128_v11 = vld [vmem:[%s5543_s0 + $0x230] ss:$8 sps:$4 sm:$0xff]  }
 0x127   :  { %v1994_v20 = vpop.f32.mrf.mxu0  ;;  %v2506_v21 = vpop.f32.mrf.mxu1  ;;  %v4129_v12 = vld [vmem:[%s5543_s0 + $0x630] ss:$8 sps:$4 sm:$0xff]  }
 0x128   :  { %v2971_v22 = vmax.f32 %v1993_v16, 0.0  ;;  %v3099_v23 = vmax.f32 %v2505_v17, 0.0  ;;  %v4132_v16 = vld [vmem:[%s5543_s0 + $0x644] ss:$8 sps:$4 sm:$0xff]  }
 0x129   :  { %v1997_v24 = vpop.f32.mrf.mxu0  ;;  %2188 = vmatmul.mubr.bf16.gmra.mxu0 %v4110_v14  ;;  %v2509_v25 = vpop.f32.mrf.mxu1  ;;  %2700 = vmatmul.mubr.bf16.gmra.mxu1 %v4111_v15  ;;  %v4130_v15 = vld [vmem:[%s5543_s0 + $0x244] ss:$8 sps:$4 sm:$0xff]  }
 0x12a   :  { %3227 = vst [vmem:[#allocation2 + $0x78] sm:$0xff] %v2971_v22  ;;  %3355 = vst [vmem:[#allocation2 + $0x478] sm:$0xff] %v3099_v23  ;;  %v1998_v26 = vadd.f32 %v4737_v53, %v1997_v24  ;;  %v2510_v27 = vadd.f32 %v4737_v53, %v2509_v25  ;;  %3784 = vmatprep.mubr.msk.bf16.mxu0 %vm1507_vm0, %v4112_v18  ;;  %3848 = vmatprep.mubr.msk.bf16.mxu1 %vm1507_vm0, %v4114_v19 }
 0x12b   :  { %v1999_v28 = vpop.f32.mrf.mxu0  ;;  %v2511_v29 = vpop.f32.mrf.mxu1 }
 0x12c   :  { %v2972_v30 = vmax.f32 %v1998_v26, 0.0  ;;  %v3100_v31 = vmax.f32 %v2510_v27, 0.0 }
 0x12d   :  { %v2000_v32 = vpop.f32.mrf.mxu0  ;;  %v2512_v33 = vpop.f32.mrf.mxu1 }
 0x12e   :  { %3228 = vst [vmem:[#allocation2 + $0x80] sm:$0xff] %v2972_v30  ;;  %3356 = vst [vmem:[#allocation2 + $0x480] sm:$0xff] %v3100_v31  ;;  %v2001_v36 = vadd.f32 %v4737_v53, %v2000_v32  ;;  %v2513_v37 = vadd.f32 %v4737_v53, %v2512_v33  ;;  %v4134_v31 = vld [vmem:[%s5543_s0 + $0x240] ss:$8 sps:$4 sm:$0xff]  }
 0x12f   :  { %v2002_v40 = vpop.f32.mrf.mxu0  ;;  %v2514_v41 = vpop.f32.mrf.mxu1  ;;  %v4135_v32 = vld [vmem:[%s5543_s0 + $0x640] ss:$8 sps:$4 sm:$0xff]  }
 0x130   :  { %v2973_v42 = vmax.f32 %v2001_v36, 0.0  ;;  %v3101_v43 = vmax.f32 %v2513_v37, 0.0  ;;  %v4138_v36 = vld [vmem:[%s5543_s0 + $0x654] ss:$8 sps:$4 sm:$0xff]  }
 0x131   :  { %v2005_v44 = vpop.f32.mrf.mxu0  ;;  %2196 = vmatmul.mubr.bf16.gmra.mxu0 %v4116_v34  ;;  %v2517_v45 = vpop.f32.mrf.mxu1  ;;  %2708 = vmatmul.mubr.bf16.gmra.mxu1 %v4117_v35  ;;  %v4136_v35 = vld [vmem:[%s5543_s0 + $0x254] ss:$8 sps:$4 sm:$0xff]  }
 0x132   :  { %3229 = vst [vmem:[#allocation2 + $0x88] sm:$0xff] %v2973_v42  ;;  %3357 = vst [vmem:[#allocation2 + $0x488] sm:$0xff] %v3101_v43  ;;  %v2006_v46 = vadd.f32 %v4737_v53, %v2005_v44  ;;  %v2518_v47 = vadd.f32 %v4737_v53, %v2517_v45  ;;  %3785 = vmatprep.mubr.msk.bf16.mxu0 %vm1507_vm0, %v4118_v38  ;;  %3849 = vmatprep.mubr.msk.bf16.mxu1 %vm1507_vm0, %v4120_v39 }
 0x133   :  { %v2007_v48 = vpop.f32.mrf.mxu0  ;;  %v2519_v49 = vpop.f32.mrf.mxu1 }
 0x134   :  { %v2974_v50 = vmax.f32 %v2006_v46, 0.0  ;;  %v3102_v51 = vmax.f32 %v2518_v47, 0.0 }
 0x135   :  { %v2008_v52 = vpop.f32.mrf.mxu0  ;;  %v2520_v54 = vpop.f32.mrf.mxu1 }
 0x136   :  { %3230 = vst [vmem:[#allocation2 + $0x90] sm:$0xff] %v2974_v50  ;;  %3358 = vst [vmem:[#allocation2 + $0x490] sm:$0xff] %v3102_v51  ;;  %v2009_v57 = vadd.f32 %v4737_v53, %v2008_v52  ;;  %v2521_v58 = vadd.f32 %v4737_v53, %v2520_v54  ;;  %v4140_v51 = vld [vmem:[%s5543_s0 + $0x250] ss:$8 sps:$4 sm:$0xff]  }
 0x137   :  { %v2010_v61 = vpop.f32.mrf.mxu0  ;;  %v2522_v62 = vpop.f32.mrf.mxu1  ;;  %v4141_v52 = vld [vmem:[%s5543_s0 + $0x650] ss:$8 sps:$4 sm:$0xff]  }
 0x138   :  { %v2975_v63 = vmax.f32 %v2009_v57, 0.0  ;;  %v3103_v0 = vmax.f32 %v2521_v58, 0.0  ;;  %v4144_v57 = vld [vmem:[%s5543_s0 + $0x664] ss:$8 sps:$4 sm:$0xff]  }
 0x139   :  { %v2013_v1 = vpop.f32.mrf.mxu0  ;;  %2204 = vmatmul.mubr.bf16.gmra.mxu0 %v4122_v55  ;;  %v2525_v2 = vpop.f32.mrf.mxu1  ;;  %2716 = vmatmul.mubr.bf16.gmra.mxu1 %v4123_v56  ;;  %v4142_v56 = vld [vmem:[%s5543_s0 + $0x264] ss:$8 sps:$4 sm:$0xff]  }
 0x13a   :  { %3231 = vst [vmem:[#allocation2 + $0x98] sm:$0xff] %v2975_v63  ;;  %3359 = vst [vmem:[#allocation2 + $0x498] sm:$0xff] %v3103_v0  ;;  %v2014_v3 = vadd.f32 %v4737_v53, %v2013_v1  ;;  %v2526_v4 = vadd.f32 %v4737_v53, %v2525_v2  ;;  %3786 = vmatprep.mubr.msk.bf16.mxu0 %vm1507_vm0, %v4124_v59  ;;  %3850 = vmatprep.mubr.msk.bf16.mxu1 %vm1507_vm0, %v4126_v60 }
 0x13b   :  { %v2015_v5 = vpop.f32.mrf.mxu0  ;;  %v2527_v6 = vpop.f32.mrf.mxu1 }
 0x13c   :  { %v2976_v7 = vmax.f32 %v2014_v3, 0.0  ;;  %v3104_v8 = vmax.f32 %v2526_v4, 0.0 }
 0x13d   :  { %v2016_v9 = vpop.f32.mrf.mxu0  ;;  %v2528_v10 = vpop.f32.mrf.mxu1 }
 0x13e   :  { %3232 = vst [vmem:[#allocation2 + $0xa0] sm:$0xff] %v2976_v7  ;;  %3360 = vst [vmem:[#allocation2 + $0x4a0] sm:$0xff] %v3104_v8  ;;  %v2017_v13 = vadd.f32 %v4737_v53, %v2016_v9  ;;  %v2529_v14 = vadd.f32 %v4737_v53, %v2528_v10  ;;  %v4146_v8 = vld [vmem:[%s5543_s0 + $0x260] ss:$8 sps:$4 sm:$0xff]  }
 0x13f   :  { %v2018_v17 = vpop.f32.mrf.mxu0  ;;  %v2530_v18 = vpop.f32.mrf.mxu1  ;;  %v4147_v9 = vld [vmem:[%s5543_s0 + $0x660] ss:$8 sps:$4 sm:$0xff]  }
 0x140   :  { %v2977_v19 = vmax.f32 %v2017_v13, 0.0  ;;  %v3105_v20 = vmax.f32 %v2529_v14, 0.0  ;;  %v4150_v13 = vld [vmem:[%s5543_s0 + $0x674] ss:$8 sps:$4 sm:$0xff]  }
 0x141   :  { %v2021_v21 = vpop.f32.mrf.mxu0  ;;  %2212 = vmatmul.mubr.bf16.gmra.mxu0 %v4128_v11  ;;  %v2533_v22 = vpop.f32.mrf.mxu1  ;;  %2724 = vmatmul.mubr.bf16.gmra.mxu1 %v4129_v12  ;;  %v4148_v12 = vld [vmem:[%s5543_s0 + $0x274] ss:$8 sps:$4 sm:$0xff]  }
 0x142   :  { %3233 = vst [vmem:[#allocation2 + $0xa8] sm:$0xff] %v2977_v19  ;;  %3361 = vst [vmem:[#allocation2 + $0x4a8] sm:$0xff] %v3105_v20  ;;  %v2022_v23 = vadd.f32 %v4737_v53, %v2021_v21  ;;  %v2534_v24 = vadd.f32 %v4737_v53, %v2533_v22  ;;  %3787 = vmatprep.mubr.msk.bf16.mxu0 %vm1507_vm0, %v4130_v15  ;;  %3851 = vmatprep.mubr.msk.bf16.mxu1 %vm1507_vm0, %v4132_v16 }
 0x143   :  { %v2023_v25 = vpop.f32.mrf.mxu0  ;;  %v2535_v26 = vpop.f32.mrf.mxu1 }
 0x144   :  { %v2978_v27 = vmax.f32 %v2022_v23, 0.0  ;;  %v3106_v28 = vmax.f32 %v2534_v24, 0.0 }
 0x145   :  { %v2024_v29 = vpop.f32.mrf.mxu0  ;;  %v2536_v30 = vpop.f32.mrf.mxu1 }
 0x146   :  { %3234 = vst [vmem:[#allocation2 + $0xb0] sm:$0xff] %v2978_v27  ;;  %3362 = vst [vmem:[#allocation2 + $0x4b0] sm:$0xff] %v3106_v28  ;;  %v2025_v33 = vadd.f32 %v4737_v53, %v2024_v29  ;;  %v2537_v34 = vadd.f32 %v4737_v53, %v2536_v30  ;;  %v4152_v28 = vld [vmem:[%s5543_s0 + $0x270] ss:$8 sps:$4 sm:$0xff]  }
 0x147   :  { %v2026_v37 = vpop.f32.mrf.mxu0  ;;  %v2538_v38 = vpop.f32.mrf.mxu1  ;;  %v4153_v29 = vld [vmem:[%s5543_s0 + $0x670] ss:$8 sps:$4 sm:$0xff]  }
 0x148   :  { %v2979_v39 = vmax.f32 %v2025_v33, 0.0  ;;  %v3107_v40 = vmax.f32 %v2537_v34, 0.0  ;;  %v4156_v33 = vld [vmem:[%s5543_s0 + $0x684] ss:$8 sps:$4 sm:$0xff]  }
 0x149   :  { %v2029_v41 = vpop.f32.mrf.mxu0  ;;  %2220 = vmatmul.mubr.bf16.gmra.mxu0 %v4134_v31  ;;  %v2541_v42 = vpop.f32.mrf.mxu1  ;;  %2732 = vmatmul.mubr.bf16.gmra.mxu1 %v4135_v32  ;;  %v4154_v32 = vld [vmem:[%s5543_s0 + $0x284] ss:$8 sps:$4 sm:$0xff]  }
 0x14a   :  { %3235 = vst [vmem:[#allocation2 + $0xb8] sm:$0xff] %v2979_v39  ;;  %3363 = vst [vmem:[#allocation2 + $0x4b8] sm:$0xff] %v3107_v40  ;;  %v2030_v43 = vadd.f32 %v4737_v53, %v2029_v41  ;;  %v2542_v44 = vadd.f32 %v4737_v53, %v2541_v42  ;;  %3788 = vmatprep.mubr.msk.bf16.mxu0 %vm1507_vm0, %v4136_v35  ;;  %3852 = vmatprep.mubr.msk.bf16.mxu1 %vm1507_vm0, %v4138_v36 }
 0x14b   :  { %v2031_v45 = vpop.f32.mrf.mxu0  ;;  %v2543_v46 = vpop.f32.mrf.mxu1 }
 0x14c   :  { %v2980_v47 = vmax.f32 %v2030_v43, 0.0  ;;  %v3108_v48 = vmax.f32 %v2542_v44, 0.0 }
 0x14d   :  { %v2032_v49 = vpop.f32.mrf.mxu0  ;;  %v2544_v50 = vpop.f32.mrf.mxu1 }
 0x14e   :  { %3236 = vst [vmem:[#allocation2 + $0xc0] sm:$0xff] %v2980_v47  ;;  %3364 = vst [vmem:[#allocation2 + $0x4c0] sm:$0xff] %v3108_v48  ;;  %v2033_v54 = vadd.f32 %v4737_v53, %v2032_v49  ;;  %v2545_v55 = vadd.f32 %v4737_v53, %v2544_v50  ;;  %v4158_v48 = vld [vmem:[%s5543_s0 + $0x280] ss:$8 sps:$4 sm:$0xff]  }
 0x14f   :  { %v2034_v58 = vpop.f32.mrf.mxu0  ;;  %v2546_v59 = vpop.f32.mrf.mxu1  ;;  %v4159_v49 = vld [vmem:[%s5543_s0 + $0x680] ss:$8 sps:$4 sm:$0xff]  }
 0x150   :  { %v2981_v60 = vmax.f32 %v2033_v54, 0.0  ;;  %v3109_v61 = vmax.f32 %v2545_v55, 0.0  ;;  %v4162_v54 = vld [vmem:[%s5543_s0 + $0x694] ss:$8 sps:$4 sm:$0xff]  }
 0x151   :  { %v2037_v62 = vpop.f32.mrf.mxu0  ;;  %2228 = vmatmul.mubr.bf16.gmra.mxu0 %v4140_v51  ;;  %v2549_v63 = vpop.f32.mrf.mxu1  ;;  %2740 = vmatmul.mubr.bf16.gmra.mxu1 %v4141_v52  ;;  %v4160_v52 = vld [vmem:[%s5543_s0 + $0x294] ss:$8 sps:$4 sm:$0xff]  }
 0x152   :  { %3237 = vst [vmem:[#allocation2 + $0xc8] sm:$0xff] %v2981_v60  ;;  %3365 = vst [vmem:[#allocation2 + $0x4c8] sm:$0xff] %v3109_v61  ;;  %v2038_v0 = vadd.f32 %v4737_v53, %v2037_v62  ;;  %v2550_v1 = vadd.f32 %v4737_v53, %v2549_v63  ;;  %3789 = vmatprep.mubr.msk.bf16.mxu0 %vm1507_vm0, %v4142_v56  ;;  %3853 = vmatprep.mubr.msk.bf16.mxu1 %vm1507_vm0, %v4144_v57 }
 0x153   :  { %v2039_v2 = vpop.f32.mrf.mxu0  ;;  %v2551_v3 = vpop.f32.mrf.mxu1 }
 0x154   :  { %v2982_v4 = vmax.f32 %v2038_v0, 0.0  ;;  %v3110_v5 = vmax.f32 %v2550_v1, 0.0 }
 0x155   :  { %v2040_v6 = vpop.f32.mrf.mxu0  ;;  %v2552_v7 = vpop.f32.mrf.mxu1 }
 0x156   :  { %3238 = vst [vmem:[#allocation2 + $0xd0] sm:$0xff] %v2982_v4  ;;  %3366 = vst [vmem:[#allocation2 + $0x4d0] sm:$0xff] %v3110_v5  ;;  %v2041_v10 = vadd.f32 %v4737_v53, %v2040_v6  ;;  %v2553_v11 = vadd.f32 %v4737_v53, %v2552_v7  ;;  %v4164_v5 = vld [vmem:[%s5543_s0 + $0x290] ss:$8 sps:$4 sm:$0xff]  }
 0x157   :  { %v2042_v14 = vpop.f32.mrf.mxu0  ;;  %v2554_v15 = vpop.f32.mrf.mxu1  ;;  %v4165_v6 = vld [vmem:[%s5543_s0 + $0x690] ss:$8 sps:$4 sm:$0xff]  }
 0x158   :  { %v2983_v16 = vmax.f32 %v2041_v10, 0.0  ;;  %v3111_v17 = vmax.f32 %v2553_v11, 0.0  ;;  %v4168_v10 = vld [vmem:[%s5543_s0 + $0x6a4] ss:$8 sps:$4 sm:$0xff]  }
 0x159   :  { %v2045_v18 = vpop.f32.mrf.mxu0  ;;  %2236 = vmatmul.mubr.bf16.gmra.mxu0 %v4146_v8  ;;  %v2557_v19 = vpop.f32.mrf.mxu1  ;;  %2748 = vmatmul.mubr.bf16.gmra.mxu1 %v4147_v9  ;;  %v4166_v9 = vld [vmem:[%s5543_s0 + $0x2a4] ss:$8 sps:$4 sm:$0xff]  }
 0x15a   :  { %3239 = vst [vmem:[#allocation2 + $0xd8] sm:$0xff] %v2983_v16  ;;  %3367 = vst [vmem:[#allocation2 + $0x4d8] sm:$0xff] %v3111_v17  ;;  %v2046_v20 = vadd.f32 %v4737_v53, %v2045_v18  ;;  %v2558_v21 = vadd.f32 %v4737_v53, %v2557_v19  ;;  %3790 = vmatprep.mubr.msk.bf16.mxu0 %vm1507_vm0, %v4148_v12  ;;  %3854 = vmatprep.mubr.msk.bf16.mxu1 %vm1507_vm0, %v4150_v13 }
 0x15b   :  { %v2047_v22 = vpop.f32.mrf.mxu0  ;;  %v2559_v23 = vpop.f32.mrf.mxu1 }
 0x15c   :  { %v2984_v24 = vmax.f32 %v2046_v20, 0.0  ;;  %v3112_v25 = vmax.f32 %v2558_v21, 0.0 }
 0x15d   :  { %v2048_v26 = vpop.f32.mrf.mxu0  ;;  %v2560_v27 = vpop.f32.mrf.mxu1 }
 0x15e   :  { %3240 = vst [vmem:[#allocation2 + $0xe0] sm:$0xff] %v2984_v24  ;;  %3368 = vst [vmem:[#allocation2 + $0x4e0] sm:$0xff] %v3112_v25  ;;  %v2049_v30 = vadd.f32 %v4737_v53, %v2048_v26  ;;  %v2561_v31 = vadd.f32 %v4737_v53, %v2560_v27  ;;  %v4170_v25 = vld [vmem:[%s5543_s0 + $0x2a0] ss:$8 sps:$4 sm:$0xff]  }
 0x15f   :  { %v2050_v34 = vpop.f32.mrf.mxu0  ;;  %v2562_v35 = vpop.f32.mrf.mxu1  ;;  %v4171_v26 = vld [vmem:[%s5543_s0 + $0x6a0] ss:$8 sps:$4 sm:$0xff]  }
 0x160   :  { %v2985_v36 = vmax.f32 %v2049_v30, 0.0  ;;  %v3113_v37 = vmax.f32 %v2561_v31, 0.0  ;;  %v4174_v30 = vld [vmem:[%s5543_s0 + $0x6b4] ss:$8 sps:$4 sm:$0xff]  }
 0x161   :  { %v2053_v38 = vpop.f32.mrf.mxu0  ;;  %2244 = vmatmul.mubr.bf16.gmra.mxu0 %v4152_v28  ;;  %v2565_v39 = vpop.f32.mrf.mxu1  ;;  %2756 = vmatmul.mubr.bf16.gmra.mxu1 %v4153_v29  ;;  %v4172_v29 = vld [vmem:[%s5543_s0 + $0x2b4] ss:$8 sps:$4 sm:$0xff]  }
 0x162   :  { %3241 = vst [vmem:[#allocation2 + $0xe8] sm:$0xff] %v2985_v36  ;;  %3369 = vst [vmem:[#allocation2 + $0x4e8] sm:$0xff] %v3113_v37  ;;  %v2054_v40 = vadd.f32 %v4737_v53, %v2053_v38  ;;  %v2566_v41 = vadd.f32 %v4737_v53, %v2565_v39  ;;  %3791 = vmatprep.mubr.msk.bf16.mxu0 %vm1507_vm0, %v4154_v32  ;;  %3855 = vmatprep.mubr.msk.bf16.mxu1 %vm1507_vm0, %v4156_v33 }
 0x163   :  { %v2055_v42 = vpop.f32.mrf.mxu0  ;;  %v2567_v43 = vpop.f32.mrf.mxu1 }
 0x164   :  { %v2986_v44 = vmax.f32 %v2054_v40, 0.0  ;;  %v3114_v45 = vmax.f32 %v2566_v41, 0.0 }
 0x165   :  { %v2056_v46 = vpop.f32.mrf.mxu0  ;;  %v2568_v47 = vpop.f32.mrf.mxu1 }
 0x166   :  { %3242 = vst [vmem:[#allocation2 + $0xf0] sm:$0xff] %v2986_v44  ;;  %3370 = vst [vmem:[#allocation2 + $0x4f0] sm:$0xff] %v3114_v45  ;;  %v2057_v50 = vadd.f32 %v4737_v53, %v2056_v46  ;;  %v2569_v51 = vadd.f32 %v4737_v53, %v2568_v47  ;;  %v4176_v45 = vld [vmem:[%s5543_s0 + $0x2b0] ss:$8 sps:$4 sm:$0xff]  }
 0x167   :  { %v2058_v55 = vpop.f32.mrf.mxu0  ;;  %v2570_v56 = vpop.f32.mrf.mxu1  ;;  %v4177_v46 = vld [vmem:[%s5543_s0 + $0x6b0] ss:$8 sps:$4 sm:$0xff]  }
 0x168   :  { %v2987_v57 = vmax.f32 %v2057_v50, 0.0  ;;  %v3115_v58 = vmax.f32 %v2569_v51, 0.0  ;;  %v4180_v50 = vld [vmem:[%s5543_s0 + $0x6c4] ss:$8 sps:$4 sm:$0xff]  }
 0x169   :  { %v2061_v59 = vpop.f32.mrf.mxu0  ;;  %2252 = vmatmul.mubr.bf16.gmra.mxu0 %v4158_v48  ;;  %v2573_v60 = vpop.f32.mrf.mxu1  ;;  %2764 = vmatmul.mubr.bf16.gmra.mxu1 %v4159_v49  ;;  %v4178_v49 = vld [vmem:[%s5543_s0 + $0x2c4] ss:$8 sps:$4 sm:$0xff]  }
 0x16a   :  { %3243 = vst [vmem:[#allocation2 + $0xf8] sm:$0xff] %v2987_v57  ;;  %3371 = vst [vmem:[#allocation2 + $0x4f8] sm:$0xff] %v3115_v58  ;;  %v2062_v61 = vadd.f32 %v4737_v53, %v2061_v59  ;;  %v2574_v62 = vadd.f32 %v4737_v53, %v2573_v60  ;;  %3792 = vmatprep.mubr.msk.bf16.mxu0 %vm1507_vm0, %v4160_v52  ;;  %3856 = vmatprep.mubr.msk.bf16.mxu1 %vm1507_vm0, %v4162_v54 }
 0x16b   :  { %v2063_v63 = vpop.f32.mrf.mxu0  ;;  %v2575_v0 = vpop.f32.mrf.mxu1 }
 0x16c   :  { %v2988_v1 = vmax.f32 %v2062_v61, 0.0  ;;  %v3116_v2 = vmax.f32 %v2574_v62, 0.0 }
 0x16d   :  { %v2064_v3 = vpop.f32.mrf.mxu0  ;;  %v2576_v4 = vpop.f32.mrf.mxu1 }
 0x16e   :  { %3244 = vst [vmem:[#allocation2 + $0x100] sm:$0xff] %v2988_v1  ;;  %3372 = vst [vmem:[#allocation2 + $0x500] sm:$0xff] %v3116_v2  ;;  %v2065_v7 = vadd.f32 %v4737_v53, %v2064_v3  ;;  %v2577_v8 = vadd.f32 %v4737_v53, %v2576_v4  ;;  %v4182_v2 = vld [vmem:[%s5543_s0 + $0x2c0] ss:$8 sps:$4 sm:$0xff]  }
 0x16f   :  { %v2066_v11 = vpop.f32.mrf.mxu0  ;;  %v2578_v12 = vpop.f32.mrf.mxu1  ;;  %v4183_v3 = vld [vmem:[%s5543_s0 + $0x6c0] ss:$8 sps:$4 sm:$0xff]  }
 0x170   :  { %v2989_v13 = vmax.f32 %v2065_v7, 0.0  ;;  %v3117_v14 = vmax.f32 %v2577_v8, 0.0  ;;  %v4186_v7 = vld [vmem:[%s5543_s0 + $0x6d4] ss:$8 sps:$4 sm:$0xff]  }
 0x171   :  { %v2069_v15 = vpop.f32.mrf.mxu0  ;;  %2260 = vmatmul.mubr.bf16.gmra.mxu0 %v4164_v5  ;;  %v2581_v16 = vpop.f32.mrf.mxu1  ;;  %2772 = vmatmul.mubr.bf16.gmra.mxu1 %v4165_v6  ;;  %v4184_v6 = vld [vmem:[%s5543_s0 + $0x2d4] ss:$8 sps:$4 sm:$0xff]  }
 0x172   :  { %3245 = vst [vmem:[#allocation2 + $0x108] sm:$0xff] %v2989_v13  ;;  %3373 = vst [vmem:[#allocation2 + $0x508] sm:$0xff] %v3117_v14  ;;  %v2070_v17 = vadd.f32 %v4737_v53, %v2069_v15  ;;  %v2582_v18 = vadd.f32 %v4737_v53, %v2581_v16  ;;  %3793 = vmatprep.mubr.msk.bf16.mxu0 %vm1507_vm0, %v4166_v9  ;;  %3857 = vmatprep.mubr.msk.bf16.mxu1 %vm1507_vm0, %v4168_v10 }
 0x173   :  { %v2071_v19 = vpop.f32.mrf.mxu0  ;;  %v2583_v20 = vpop.f32.mrf.mxu1 }
 0x174   :  { %v2990_v21 = vmax.f32 %v2070_v17, 0.0  ;;  %v3118_v22 = vmax.f32 %v2582_v18, 0.0 }
 0x175   :  { %v2072_v23 = vpop.f32.mrf.mxu0  ;;  %v2584_v24 = vpop.f32.mrf.mxu1 }
 0x176   :  { %3246 = vst [vmem:[#allocation2 + $0x110] sm:$0xff] %v2990_v21  ;;  %3374 = vst [vmem:[#allocation2 + $0x510] sm:$0xff] %v3118_v22  ;;  %v2073_v27 = vadd.f32 %v4737_v53, %v2072_v23  ;;  %v2585_v28 = vadd.f32 %v4737_v53, %v2584_v24  ;;  %v4188_v22 = vld [vmem:[%s5543_s0 + $0x2d0] ss:$8 sps:$4 sm:$0xff]  }
 0x177   :  { %v2074_v31 = vpop.f32.mrf.mxu0  ;;  %v2586_v32 = vpop.f32.mrf.mxu1  ;;  %v4189_v23 = vld [vmem:[%s5543_s0 + $0x6d0] ss:$8 sps:$4 sm:$0xff]  }
 0x178   :  { %v2991_v33 = vmax.f32 %v2073_v27, 0.0  ;;  %v3119_v34 = vmax.f32 %v2585_v28, 0.0  ;;  %v4192_v27 = vld [vmem:[%s5543_s0 + $0x6e4] ss:$8 sps:$4 sm:$0xff]  }
 0x179   :  { %v2077_v35 = vpop.f32.mrf.mxu0  ;;  %2268 = vmatmul.mubr.bf16.gmra.mxu0 %v4170_v25  ;;  %v2589_v36 = vpop.f32.mrf.mxu1  ;;  %2780 = vmatmul.mubr.bf16.gmra.mxu1 %v4171_v26  ;;  %v4190_v26 = vld [vmem:[%s5543_s0 + $0x2e4] ss:$8 sps:$4 sm:$0xff]  }
 0x17a   :  { %3247 = vst [vmem:[#allocation2 + $0x118] sm:$0xff] %v2991_v33  ;;  %3375 = vst [vmem:[#allocation2 + $0x518] sm:$0xff] %v3119_v34  ;;  %v2078_v37 = vadd.f32 %v4737_v53, %v2077_v35  ;;  %v2590_v38 = vadd.f32 %v4737_v53, %v2589_v36  ;;  %3794 = vmatprep.mubr.msk.bf16.mxu0 %vm1507_vm0, %v4172_v29  ;;  %3858 = vmatprep.mubr.msk.bf16.mxu1 %vm1507_vm0, %v4174_v30  ;;  %v5076_v53 = vld [vmem:[%s5545_s2] ss:$0 sm:$0xff] }
 0x17b   :  { %v2079_v39 = vpop.f32.mrf.mxu0  ;;  %v2591_v40 = vpop.f32.mrf.mxu1 }
 0x17c   :  { %v2992_v41 = vmax.f32 %v2078_v37, 0.0  ;;  %v3120_v42 = vmax.f32 %v2590_v38, 0.0 }
 0x17d   :  { %v2080_v43 = vpop.f32.mrf.mxu0  ;;  %v2592_v44 = vpop.f32.mrf.mxu1 }
 0x17e   :  { %3248 = vst [vmem:[#allocation2 + $0x120] sm:$0xff] %v2992_v41  ;;  %3376 = vst [vmem:[#allocation2 + $0x520] sm:$0xff] %v3120_v42  ;;  %v2081_v47 = vadd.f32 %v5076_v53, %v2080_v43  ;;  %v2593_v48 = vadd.f32 %v5076_v53, %v2592_v44  ;;  %v4194_v42 = vld [vmem:[%s5543_s0 + $0x2e0] ss:$8 sps:$4 sm:$0xff]  }
 0x17f   :  { %v2082_v51 = vpop.f32.mrf.mxu0  ;;  %v2594_v52 = vpop.f32.mrf.mxu1  ;;  %v4195_v43 = vld [vmem:[%s5543_s0 + $0x6e0] ss:$8 sps:$4 sm:$0xff]  }
 0x180   :  { %v2993_v54 = vmax.f32 %v2081_v47, 0.0  ;;  %v3121_v55 = vmax.f32 %v2593_v48, 0.0  ;;  %v4198_v47 = vld [vmem:[%s5543_s0 + $0x6f4] ss:$8 sps:$4 sm:$0xff]  }
 0x181   :  { %v2085_v56 = vpop.f32.mrf.mxu0  ;;  %2276 = vmatmul.mubr.bf16.gmra.mxu0 %v4176_v45  ;;  %v2597_v57 = vpop.f32.mrf.mxu1  ;;  %2788 = vmatmul.mubr.bf16.gmra.mxu1 %v4177_v46  ;;  %v4196_v46 = vld [vmem:[%s5543_s0 + $0x2f4] ss:$8 sps:$4 sm:$0xff]  }
 0x182   :  { %3249 = vst [vmem:[#allocation2 + $0x128] sm:$0xff] %v2993_v54  ;;  %3377 = vst [vmem:[#allocation2 + $0x528] sm:$0xff] %v3121_v55  ;;  %v2086_v58 = vadd.f32 %v5076_v53, %v2085_v56  ;;  %v2598_v59 = vadd.f32 %v5076_v53, %v2597_v57  ;;  %3795 = vmatprep.mubr.msk.bf16.mxu0 %vm1507_vm0, %v4178_v49  ;;  %3859 = vmatprep.mubr.msk.bf16.mxu1 %vm1507_vm0, %v4180_v50 }
 0x183   :  { %v2087_v60 = vpop.f32.mrf.mxu0  ;;  %v2599_v61 = vpop.f32.mrf.mxu1 }
 0x184   :  { %v2994_v62 = vmax.f32 %v2086_v58, 0.0  ;;  %v3122_v63 = vmax.f32 %v2598_v59, 0.0 }
 0x185   :  { %v2088_v0 = vpop.f32.mrf.mxu0  ;;  %v2600_v1 = vpop.f32.mrf.mxu1 }
 0x186   :  { %3250 = vst [vmem:[#allocation2 + $0x130] sm:$0xff] %v2994_v62  ;;  %3378 = vst [vmem:[#allocation2 + $0x530] sm:$0xff] %v3122_v63  ;;  %v2089_v4 = vadd.f32 %v5076_v53, %v2088_v0  ;;  %v2601_v5 = vadd.f32 %v5076_v53, %v2600_v1  ;;  %v4200_v63 = vld [vmem:[%s5543_s0 + $0x2f0] ss:$8 sps:$4 sm:$0xff]  }
 0x187   :  { %v2090_v8 = vpop.f32.mrf.mxu0  ;;  %v2602_v9 = vpop.f32.mrf.mxu1  ;;  %v4201_v0 = vld [vmem:[%s5543_s0 + $0x6f0] ss:$8 sps:$4 sm:$0xff]  }
 0x188   :  { %v2995_v10 = vmax.f32 %v2089_v4, 0.0  ;;  %v3123_v11 = vmax.f32 %v2601_v5, 0.0  ;;  %v4204_v4 = vld [vmem:[%s5543_s0 + $0x704] ss:$8 sps:$4 sm:$0xff]  }
 0x189   :  { %v2093_v12 = vpop.f32.mrf.mxu0  ;;  %2284 = vmatmul.mubr.bf16.gmra.mxu0 %v4182_v2  ;;  %v2605_v13 = vpop.f32.mrf.mxu1  ;;  %2796 = vmatmul.mubr.bf16.gmra.mxu1 %v4183_v3  ;;  %v4202_v3 = vld [vmem:[%s5543_s0 + $0x304] ss:$8 sps:$4 sm:$0xff]  }
 0x18a   :  { %3251 = vst [vmem:[#allocation2 + $0x138] sm:$0xff] %v2995_v10  ;;  %3379 = vst [vmem:[#allocation2 + $0x538] sm:$0xff] %v3123_v11  ;;  %v2094_v14 = vadd.f32 %v5076_v53, %v2093_v12  ;;  %v2606_v15 = vadd.f32 %v5076_v53, %v2605_v13  ;;  %3796 = vmatprep.mubr.msk.bf16.mxu0 %vm1507_vm0, %v4184_v6  ;;  %3860 = vmatprep.mubr.msk.bf16.mxu1 %vm1507_vm0, %v4186_v7 }
 0x18b   :  { %v2095_v16 = vpop.f32.mrf.mxu0  ;;  %v2607_v17 = vpop.f32.mrf.mxu1 }
 0x18c   :  { %v2996_v18 = vmax.f32 %v2094_v14, 0.0  ;;  %v3124_v19 = vmax.f32 %v2606_v15, 0.0 }
 0x18d   :  { %v2096_v20 = vpop.f32.mrf.mxu0  ;;  %v2608_v21 = vpop.f32.mrf.mxu1 }
 0x18e   :  { %3252 = vst [vmem:[#allocation2 + $0x140] sm:$0xff] %v2996_v18  ;;  %3380 = vst [vmem:[#allocation2 + $0x540] sm:$0xff] %v3124_v19  ;;  %v2097_v24 = vadd.f32 %v5076_v53, %v2096_v20  ;;  %v2609_v25 = vadd.f32 %v5076_v53, %v2608_v21  ;;  %v4206_v19 = vld [vmem:[%s5543_s0 + $0x300] ss:$8 sps:$4 sm:$0xff]  }
 0x18f   :  { %v2098_v28 = vpop.f32.mrf.mxu0  ;;  %v2610_v29 = vpop.f32.mrf.mxu1  ;;  %v4207_v20 = vld [vmem:[%s5543_s0 + $0x700] ss:$8 sps:$4 sm:$0xff]  }
 0x190   :  { %v2997_v30 = vmax.f32 %v2097_v24, 0.0  ;;  %v3125_v31 = vmax.f32 %v2609_v25, 0.0  ;;  %v4210_v24 = vld [vmem:[%s5543_s0 + $0x714] ss:$8 sps:$4 sm:$0xff]  }
 0x191   :  { %v2101_v32 = vpop.f32.mrf.mxu0  ;;  %2292 = vmatmul.mubr.bf16.gmra.mxu0 %v4188_v22  ;;  %v2613_v33 = vpop.f32.mrf.mxu1  ;;  %2804 = vmatmul.mubr.bf16.gmra.mxu1 %v4189_v23  ;;  %v4208_v23 = vld [vmem:[%s5543_s0 + $0x314] ss:$8 sps:$4 sm:$0xff]  }
 0x192   :  { %3253 = vst [vmem:[#allocation2 + $0x148] sm:$0xff] %v2997_v30  ;;  %3381 = vst [vmem:[#allocation2 + $0x548] sm:$0xff] %v3125_v31  ;;  %v2102_v34 = vadd.f32 %v5076_v53, %v2101_v32  ;;  %v2614_v35 = vadd.f32 %v5076_v53, %v2613_v33  ;;  %3797 = vmatprep.mubr.msk.bf16.mxu0 %vm1507_vm0, %v4190_v26  ;;  %3861 = vmatprep.mubr.msk.bf16.mxu1 %vm1507_vm0, %v4192_v27 }
 0x193   :  { %v2103_v36 = vpop.f32.mrf.mxu0  ;;  %v2615_v37 = vpop.f32.mrf.mxu1 }
 0x194   :  { %v2998_v38 = vmax.f32 %v2102_v34, 0.0  ;;  %v3126_v39 = vmax.f32 %v2614_v35, 0.0 }
 0x195   :  { %v2104_v40 = vpop.f32.mrf.mxu0  ;;  %v2616_v41 = vpop.f32.mrf.mxu1 }
 0x196   :  { %3254 = vst [vmem:[#allocation2 + $0x150] sm:$0xff] %v2998_v38  ;;  %3382 = vst [vmem:[#allocation2 + $0x550] sm:$0xff] %v3126_v39  ;;  %v2105_v44 = vadd.f32 %v5076_v53, %v2104_v40  ;;  %v2617_v45 = vadd.f32 %v5076_v53, %v2616_v41  ;;  %v4212_v39 = vld [vmem:[%s5543_s0 + $0x310] ss:$8 sps:$4 sm:$0xff]  }
 0x197   :  { %v2106_v48 = vpop.f32.mrf.mxu0  ;;  %v2618_v49 = vpop.f32.mrf.mxu1  ;;  %v4213_v40 = vld [vmem:[%s5543_s0 + $0x710] ss:$8 sps:$4 sm:$0xff]  }
 0x198   :  { %v2999_v50 = vmax.f32 %v2105_v44, 0.0  ;;  %v3127_v51 = vmax.f32 %v2617_v45, 0.0  ;;  %v4216_v44 = vld [vmem:[%s5543_s0 + $0x724] ss:$8 sps:$4 sm:$0xff]  }
 0x199   :  { %v2109_v52 = vpop.f32.mrf.mxu0  ;;  %2300 = vmatmul.mubr.bf16.gmra.mxu0 %v4194_v42  ;;  %v2621_v54 = vpop.f32.mrf.mxu1  ;;  %2812 = vmatmul.mubr.bf16.gmra.mxu1 %v4195_v43  ;;  %v4214_v43 = vld [vmem:[%s5543_s0 + $0x324] ss:$8 sps:$4 sm:$0xff]  }
 0x19a   :  { %3255 = vst [vmem:[#allocation2 + $0x158] sm:$0xff] %v2999_v50  ;;  %3383 = vst [vmem:[#allocation2 + $0x558] sm:$0xff] %v3127_v51  ;;  %v2110_v55 = vadd.f32 %v5076_v53, %v2109_v52  ;;  %v2622_v56 = vadd.f32 %v5076_v53, %v2621_v54  ;;  %3798 = vmatprep.mubr.msk.bf16.mxu0 %vm1507_vm0, %v4196_v46  ;;  %3862 = vmatprep.mubr.msk.bf16.mxu1 %vm1507_vm0, %v4198_v47 }
 0x19b   :  { %v2111_v57 = vpop.f32.mrf.mxu0  ;;  %v2623_v58 = vpop.f32.mrf.mxu1 }
 0x19c   :  { %v3000_v59 = vmax.f32 %v2110_v55, 0.0  ;;  %v3128_v60 = vmax.f32 %v2622_v56, 0.0 }
 0x19d   :  { %v2112_v61 = vpop.f32.mrf.mxu0  ;;  %v2624_v62 = vpop.f32.mrf.mxu1 }
 0x19e   :  { %3256 = vst [vmem:[#allocation2 + $0x160] sm:$0xff] %v3000_v59  ;;  %3384 = vst [vmem:[#allocation2 + $0x560] sm:$0xff] %v3128_v60  ;;  %v2113_v1 = vadd.f32 %v5076_v53, %v2112_v61  ;;  %v2625_v2 = vadd.f32 %v5076_v53, %v2624_v62  ;;  %v4218_v60 = vld [vmem:[%s5543_s0 + $0x320] ss:$8 sps:$4 sm:$0xff]  }
 0x19f   :  { %v2114_v5 = vpop.f32.mrf.mxu0  ;;  %v2626_v6 = vpop.f32.mrf.mxu1  ;;  %v4219_v61 = vld [vmem:[%s5543_s0 + $0x720] ss:$8 sps:$4 sm:$0xff]  }
 0x1a0   :  { %v3001_v7 = vmax.f32 %v2113_v1, 0.0  ;;  %v3129_v8 = vmax.f32 %v2625_v2, 0.0  ;;  %v4222_v1 = vld [vmem:[%s5543_s0 + $0x734] ss:$8 sps:$4 sm:$0xff]  }
 0x1a1   :  { %v2117_v9 = vpop.f32.mrf.mxu0  ;;  %2308 = vmatmul.mubr.bf16.gmra.mxu0 %v4200_v63  ;;  %v2629_v10 = vpop.f32.mrf.mxu1  ;;  %2820 = vmatmul.mubr.bf16.gmra.mxu1 %v4201_v0  ;;  %v4220_v0 = vld [vmem:[%s5543_s0 + $0x334] ss:$8 sps:$4 sm:$0xff]  }
 0x1a2   :  { %3257 = vst [vmem:[#allocation2 + $0x168] sm:$0xff] %v3001_v7  ;;  %3385 = vst [vmem:[#allocation2 + $0x568] sm:$0xff] %v3129_v8  ;;  %v2118_v11 = vadd.f32 %v5076_v53, %v2117_v9  ;;  %v2630_v12 = vadd.f32 %v5076_v53, %v2629_v10  ;;  %3799 = vmatprep.mubr.msk.bf16.mxu0 %vm1507_vm0, %v4202_v3  ;;  %3863 = vmatprep.mubr.msk.bf16.mxu1 %vm1507_vm0, %v4204_v4 }
 0x1a3   :  { %v2119_v13 = vpop.f32.mrf.mxu0  ;;  %v2631_v14 = vpop.f32.mrf.mxu1 }
 0x1a4   :  { %v3002_v15 = vmax.f32 %v2118_v11, 0.0  ;;  %v3130_v16 = vmax.f32 %v2630_v12, 0.0 }
 0x1a5   :  { %v2120_v17 = vpop.f32.mrf.mxu0  ;;  %v2632_v18 = vpop.f32.mrf.mxu1 }
 0x1a6   :  { %3258 = vst [vmem:[#allocation2 + $0x170] sm:$0xff] %v3002_v15  ;;  %3386 = vst [vmem:[#allocation2 + $0x570] sm:$0xff] %v3130_v16  ;;  %v2121_v21 = vadd.f32 %v5076_v53, %v2120_v17  ;;  %v2633_v22 = vadd.f32 %v5076_v53, %v2632_v18  ;;  %v4224_v16 = vld [vmem:[%s5543_s0 + $0x330] ss:$8 sps:$4 sm:$0xff]  }
 0x1a7   :  { %v2122_v25 = vpop.f32.mrf.mxu0  ;;  %v2634_v26 = vpop.f32.mrf.mxu1  ;;  %v4225_v17 = vld [vmem:[%s5543_s0 + $0x730] ss:$8 sps:$4 sm:$0xff]  }
 0x1a8   :  { %v3003_v27 = vmax.f32 %v2121_v21, 0.0  ;;  %v3131_v28 = vmax.f32 %v2633_v22, 0.0  ;;  %v4228_v21 = vld [vmem:[%s5543_s0 + $0x744] ss:$8 sps:$4 sm:$0xff]  }
 0x1a9   :  { %v2125_v29 = vpop.f32.mrf.mxu0  ;;  %2316 = vmatmul.mubr.bf16.gmra.mxu0 %v4206_v19  ;;  %v2637_v30 = vpop.f32.mrf.mxu1  ;;  %2828 = vmatmul.mubr.bf16.gmra.mxu1 %v4207_v20  ;;  %v4226_v20 = vld [vmem:[%s5543_s0 + $0x344] ss:$8 sps:$4 sm:$0xff]  }
 0x1aa   :  { %3259 = vst [vmem:[#allocation2 + $0x178] sm:$0xff] %v3003_v27  ;;  %3387 = vst [vmem:[#allocation2 + $0x578] sm:$0xff] %v3131_v28  ;;  %v2126_v31 = vadd.f32 %v5076_v53, %v2125_v29  ;;  %v2638_v32 = vadd.f32 %v5076_v53, %v2637_v30  ;;  %3800 = vmatprep.mubr.msk.bf16.mxu0 %vm1507_vm0, %v4208_v23  ;;  %3864 = vmatprep.mubr.msk.bf16.mxu1 %vm1507_vm0, %v4210_v24 }
 0x1ab   :  { %v2127_v33 = vpop.f32.mrf.mxu0  ;;  %v2639_v34 = vpop.f32.mrf.mxu1 }
 0x1ac   :  { %v3004_v35 = vmax.f32 %v2126_v31, 0.0  ;;  %v3132_v36 = vmax.f32 %v2638_v32, 0.0 }
 0x1ad   :  { %v2128_v37 = vpop.f32.mrf.mxu0  ;;  %v2640_v38 = vpop.f32.mrf.mxu1 }
 0x1ae   :  { %3260 = vst [vmem:[#allocation2 + $0x180] sm:$0xff] %v3004_v35  ;;  %3388 = vst [vmem:[#allocation2 + $0x580] sm:$0xff] %v3132_v36  ;;  %v2129_v41 = vadd.f32 %v5076_v53, %v2128_v37  ;;  %v2641_v42 = vadd.f32 %v5076_v53, %v2640_v38  ;;  %v4230_v36 = vld [vmem:[%s5543_s0 + $0x340] ss:$8 sps:$4 sm:$0xff]  }
 0x1af   :  { %v2130_v45 = vpop.f32.mrf.mxu0  ;;  %v2642_v46 = vpop.f32.mrf.mxu1  ;;  %v4231_v37 = vld [vmem:[%s5543_s0 + $0x740] ss:$8 sps:$4 sm:$0xff]  }
 0x1b0   :  { %v3005_v47 = vmax.f32 %v2129_v41, 0.0  ;;  %v3133_v48 = vmax.f32 %v2641_v42, 0.0  ;;  %v4234_v41 = vld [vmem:[%s5543_s0 + $0x754] ss:$8 sps:$4 sm:$0xff]  }
 0x1b1   :  { %v2133_v49 = vpop.f32.mrf.mxu0  ;;  %2324 = vmatmul.mubr.bf16.gmra.mxu0 %v4212_v39  ;;  %v2645_v50 = vpop.f32.mrf.mxu1  ;;  %2836 = vmatmul.mubr.bf16.gmra.mxu1 %v4213_v40  ;;  %v4232_v40 = vld [vmem:[%s5543_s0 + $0x354] ss:$8 sps:$4 sm:$0xff]  }
 0x1b2   :  { %3261 = vst [vmem:[#allocation2 + $0x188] sm:$0xff] %v3005_v47  ;;  %3389 = vst [vmem:[#allocation2 + $0x588] sm:$0xff] %v3133_v48  ;;  %v2134_v51 = vadd.f32 %v5076_v53, %v2133_v49  ;;  %v2646_v52 = vadd.f32 %v5076_v53, %v2645_v50  ;;  %3801 = vmatprep.mubr.msk.bf16.mxu0 %vm1507_vm0, %v4214_v43  ;;  %3865 = vmatprep.mubr.msk.bf16.mxu1 %vm1507_vm0, %v4216_v44 }
 0x1b3   :  { %v2135_v54 = vpop.f32.mrf.mxu0  ;;  %v2647_v55 = vpop.f32.mrf.mxu1 }
 0x1b4   :  { %v3006_v56 = vmax.f32 %v2134_v51, 0.0  ;;  %v3134_v57 = vmax.f32 %v2646_v52, 0.0 }
 0x1b5   :  { %v2136_v58 = vpop.f32.mrf.mxu0  ;;  %v2648_v59 = vpop.f32.mrf.mxu1 }
 0x1b6   :  { %3262 = vst [vmem:[#allocation2 + $0x190] sm:$0xff] %v3006_v56  ;;  %3390 = vst [vmem:[#allocation2 + $0x590] sm:$0xff] %v3134_v57  ;;  %v2137_v62 = vadd.f32 %v5076_v53, %v2136_v58  ;;  %v2649_v63 = vadd.f32 %v5076_v53, %v2648_v59  ;;  %v4236_v57 = vld [vmem:[%s5543_s0 + $0x350] ss:$8 sps:$4 sm:$0xff]  }
 0x1b7   :  { %v2138_v2 = vpop.f32.mrf.mxu0  ;;  %v2650_v3 = vpop.f32.mrf.mxu1  ;;  %v4237_v58 = vld [vmem:[%s5543_s0 + $0x750] ss:$8 sps:$4 sm:$0xff]  }
 0x1b8   :  { %v3007_v4 = vmax.f32 %v2137_v62, 0.0  ;;  %v3135_v5 = vmax.f32 %v2649_v63, 0.0  ;;  %v4240_v62 = vld [vmem:[%s5543_s0 + $0x764] ss:$8 sps:$4 sm:$0xff]  }
 0x1b9   :  { %v2141_v6 = vpop.f32.mrf.mxu0  ;;  %2332 = vmatmul.mubr.bf16.gmra.mxu0 %v4218_v60  ;;  %v2653_v7 = vpop.f32.mrf.mxu1  ;;  %2844 = vmatmul.mubr.bf16.gmra.mxu1 %v4219_v61  ;;  %v4238_v61 = vld [vmem:[%s5543_s0 + $0x364] ss:$8 sps:$4 sm:$0xff]  }
 0x1ba   :  { %3263 = vst [vmem:[#allocation2 + $0x198] sm:$0xff] %v3007_v4  ;;  %3391 = vst [vmem:[#allocation2 + $0x598] sm:$0xff] %v3135_v5  ;;  %v2142_v8 = vadd.f32 %v5076_v53, %v2141_v6  ;;  %v2654_v9 = vadd.f32 %v5076_v53, %v2653_v7  ;;  %3802 = vmatprep.mubr.msk.bf16.mxu0 %vm1507_vm0, %v4220_v0  ;;  %3866 = vmatprep.mubr.msk.bf16.mxu1 %vm1507_vm0, %v4222_v1 }
 0x1bb   :  { %v2143_v10 = vpop.f32.mrf.mxu0  ;;  %v2655_v11 = vpop.f32.mrf.mxu1 }
 0x1bc   :  { %v3008_v12 = vmax.f32 %v2142_v8, 0.0  ;;  %v3136_v13 = vmax.f32 %v2654_v9, 0.0 }
 0x1bd   :  { %v2144_v14 = vpop.f32.mrf.mxu0  ;;  %v2656_v15 = vpop.f32.mrf.mxu1 }
 0x1be   :  { %3264 = vst [vmem:[#allocation2 + $0x1a0] sm:$0xff] %v3008_v12  ;;  %3392 = vst [vmem:[#allocation2 + $0x5a0] sm:$0xff] %v3136_v13  ;;  %v2145_v18 = vadd.f32 %v5076_v53, %v2144_v14  ;;  %v2657_v19 = vadd.f32 %v5076_v53, %v2656_v15  ;;  %v4242_v13 = vld [vmem:[%s5543_s0 + $0x360] ss:$8 sps:$4 sm:$0xff]  }
 0x1bf   :  { %v2146_v22 = vpop.f32.mrf.mxu0  ;;  %v2658_v23 = vpop.f32.mrf.mxu1  ;;  %v4243_v14 = vld [vmem:[%s5543_s0 + $0x760] ss:$8 sps:$4 sm:$0xff]  }
 0x1c0   :  { %v3009_v24 = vmax.f32 %v2145_v18, 0.0  ;;  %v3137_v25 = vmax.f32 %v2657_v19, 0.0  ;;  %v4246_v18 = vld [vmem:[%s5543_s0 + $0x774] ss:$8 sps:$4 sm:$0xff]  }
 0x1c1   :  { %v2149_v26 = vpop.f32.mrf.mxu0  ;;  %2340 = vmatmul.mubr.bf16.gmra.mxu0 %v4224_v16  ;;  %v2661_v27 = vpop.f32.mrf.mxu1  ;;  %2852 = vmatmul.mubr.bf16.gmra.mxu1 %v4225_v17  ;;  %v4244_v17 = vld [vmem:[%s5543_s0 + $0x374] ss:$8 sps:$4 sm:$0xff]  }
 0x1c2   :  { %3265 = vst [vmem:[#allocation2 + $0x1a8] sm:$0xff] %v3009_v24  ;;  %3393 = vst [vmem:[#allocation2 + $0x5a8] sm:$0xff] %v3137_v25  ;;  %v2150_v28 = vadd.f32 %v5076_v53, %v2149_v26  ;;  %v2662_v29 = vadd.f32 %v5076_v53, %v2661_v27  ;;  %3803 = vmatprep.mubr.msk.bf16.mxu0 %vm1507_vm0, %v4226_v20  ;;  %3867 = vmatprep.mubr.msk.bf16.mxu1 %vm1507_vm0, %v4228_v21 }
 0x1c3   :  { %v2151_v30 = vpop.f32.mrf.mxu0  ;;  %v2663_v31 = vpop.f32.mrf.mxu1 }
 0x1c4   :  { %v3010_v32 = vmax.f32 %v2150_v28, 0.0  ;;  %v3138_v33 = vmax.f32 %v2662_v29, 0.0 }
 0x1c5   :  { %v2152_v34 = vpop.f32.mrf.mxu0  ;;  %v2664_v35 = vpop.f32.mrf.mxu1 }
 0x1c6   :  { %3266 = vst [vmem:[#allocation2 + $0x1b0] sm:$0xff] %v3010_v32  ;;  %3394 = vst [vmem:[#allocation2 + $0x5b0] sm:$0xff] %v3138_v33  ;;  %v2153_v38 = vadd.f32 %v5076_v53, %v2152_v34  ;;  %v2665_v39 = vadd.f32 %v5076_v53, %v2664_v35  ;;  %v4248_v33 = vld [vmem:[%s5543_s0 + $0x370] ss:$8 sps:$4 sm:$0xff]  }
 0x1c7   :  { %v2154_v42 = vpop.f32.mrf.mxu0  ;;  %v2666_v43 = vpop.f32.mrf.mxu1  ;;  %v4249_v34 = vld [vmem:[%s5543_s0 + $0x770] ss:$8 sps:$4 sm:$0xff]  }
 0x1c8   :  { %v3011_v44 = vmax.f32 %v2153_v38, 0.0  ;;  %v3139_v45 = vmax.f32 %v2665_v39, 0.0  ;;  %v4252_v38 = vld [vmem:[%s5543_s0 + $0x784] ss:$8 sps:$4 sm:$0xff]  }
 0x1c9   :  { %v2157_v46 = vpop.f32.mrf.mxu0  ;;  %2348 = vmatmul.mubr.bf16.gmra.mxu0 %v4230_v36  ;;  %v2669_v47 = vpop.f32.mrf.mxu1  ;;  %2860 = vmatmul.mubr.bf16.gmra.mxu1 %v4231_v37  ;;  %v4250_v37 = vld [vmem:[%s5543_s0 + $0x384] ss:$8 sps:$4 sm:$0xff]  }
 0x1ca   :  { %3267 = vst [vmem:[#allocation2 + $0x1b8] sm:$0xff] %v3011_v44  ;;  %3395 = vst [vmem:[#allocation2 + $0x5b8] sm:$0xff] %v3139_v45  ;;  %v2158_v48 = vadd.f32 %v5076_v53, %v2157_v46  ;;  %v2670_v49 = vadd.f32 %v5076_v53, %v2669_v47  ;;  %3804 = vmatprep.mubr.msk.bf16.mxu0 %vm1507_vm0, %v4232_v40  ;;  %3868 = vmatprep.mubr.msk.bf16.mxu1 %vm1507_vm0, %v4234_v41 }
 0x1cb   :  { %v2159_v50 = vpop.f32.mrf.mxu0  ;;  %v2671_v51 = vpop.f32.mrf.mxu1 }
 0x1cc   :  { %v3012_v52 = vmax.f32 %v2158_v48, 0.0  ;;  %v3140_v54 = vmax.f32 %v2670_v49, 0.0 }
 0x1cd   :  { %v2160_v55 = vpop.f32.mrf.mxu0  ;;  %v2672_v56 = vpop.f32.mrf.mxu1 }
 0x1ce   :  { %3268 = vst [vmem:[#allocation2 + $0x1c0] sm:$0xff] %v3012_v52  ;;  %3396 = vst [vmem:[#allocation2 + $0x5c0] sm:$0xff] %v3140_v54  ;;  %v2161_v59 = vadd.f32 %v5076_v53, %v2160_v55  ;;  %v2673_v60 = vadd.f32 %v5076_v53, %v2672_v56  ;;  %v4254_v54 = vld [vmem:[%s5543_s0 + $0x380] ss:$8 sps:$4 sm:$0xff]  }
 0x1cf   :  { %v2162_v63 = vpop.f32.mrf.mxu0  ;;  %v2674_v0 = vpop.f32.mrf.mxu1  ;;  %v4255_v55 = vld [vmem:[%s5543_s0 + $0x780] ss:$8 sps:$4 sm:$0xff]  }
 0x1d0   :  { %v3013_v1 = vmax.f32 %v2161_v59, 0.0  ;;  %v3141_v2 = vmax.f32 %v2673_v60, 0.0  ;;  %v4258_v59 = vld [vmem:[%s5543_s0 + $0x794] ss:$8 sps:$4 sm:$0xff]  }
 0x1d1   :  { %v2165_v3 = vpop.f32.mrf.mxu0  ;;  %2356 = vmatmul.mubr.bf16.gmra.mxu0 %v4236_v57  ;;  %v2677_v4 = vpop.f32.mrf.mxu1  ;;  %2868 = vmatmul.mubr.bf16.gmra.mxu1 %v4237_v58  ;;  %v4256_v58 = vld [vmem:[%s5543_s0 + $0x394] ss:$8 sps:$4 sm:$0xff]  }
 0x1d2   :  { %3269 = vst [vmem:[#allocation2 + $0x1c8] sm:$0xff] %v3013_v1  ;;  %3397 = vst [vmem:[#allocation2 + $0x5c8] sm:$0xff] %v3141_v2  ;;  %v2166_v5 = vadd.f32 %v5076_v53, %v2165_v3  ;;  %v2678_v6 = vadd.f32 %v5076_v53, %v2677_v4  ;;  %3805 = vmatprep.mubr.msk.bf16.mxu0 %vm1507_vm0, %v4238_v61  ;;  %3869 = vmatprep.mubr.msk.bf16.mxu1 %vm1507_vm0, %v4240_v62 }
 0x1d3   :  { %v2167_v7 = vpop.f32.mrf.mxu0  ;;  %v2679_v8 = vpop.f32.mrf.mxu1 }
 0x1d4   :  { %v3014_v9 = vmax.f32 %v2166_v5, 0.0  ;;  %v3142_v10 = vmax.f32 %v2678_v6, 0.0 }
 0x1d5   :  { %v2168_v11 = vpop.f32.mrf.mxu0  ;;  %v2680_v12 = vpop.f32.mrf.mxu1 }
 0x1d6   :  { %3270 = vst [vmem:[#allocation2 + $0x1d0] sm:$0xff] %v3014_v9  ;;  %3398 = vst [vmem:[#allocation2 + $0x5d0] sm:$0xff] %v3142_v10  ;;  %v2169_v15 = vadd.f32 %v5076_v53, %v2168_v11  ;;  %v2681_v16 = vadd.f32 %v5076_v53, %v2680_v12  ;;  %v4260_v10 = vld [vmem:[%s5543_s0 + $0x390] ss:$8 sps:$4 sm:$0xff]  }
 0x1d7   :  { %v2170_v19 = vpop.f32.mrf.mxu0  ;;  %v2682_v20 = vpop.f32.mrf.mxu1  ;;  %v4261_v11 = vld [vmem:[%s5543_s0 + $0x790] ss:$8 sps:$4 sm:$0xff]  }
 0x1d8   :  { %v3015_v21 = vmax.f32 %v2169_v15, 0.0  ;;  %v3143_v22 = vmax.f32 %v2681_v16, 0.0  ;;  %v4264_v15 = vld [vmem:[%s5543_s0 + $0x7a4] ss:$8 sps:$4 sm:$0xff]  }
 0x1d9   :  { %v2173_v23 = vpop.f32.mrf.mxu0  ;;  %2364 = vmatmul.mubr.bf16.gmra.mxu0 %v4242_v13  ;;  %v2685_v24 = vpop.f32.mrf.mxu1  ;;  %2876 = vmatmul.mubr.bf16.gmra.mxu1 %v4243_v14  ;;  %v4262_v14 = vld [vmem:[%s5543_s0 + $0x3a4] ss:$8 sps:$4 sm:$0xff]  }
 0x1da   :  { %3271 = vst [vmem:[#allocation2 + $0x1d8] sm:$0xff] %v3015_v21  ;;  %3399 = vst [vmem:[#allocation2 + $0x5d8] sm:$0xff] %v3143_v22  ;;  %v2174_v25 = vadd.f32 %v5076_v53, %v2173_v23  ;;  %v2686_v26 = vadd.f32 %v5076_v53, %v2685_v24  ;;  %3806 = vmatprep.mubr.msk.bf16.mxu0 %vm1507_vm0, %v4244_v17  ;;  %3870 = vmatprep.mubr.msk.bf16.mxu1 %vm1507_vm0, %v4246_v18 }
 0x1db   :  { %v2175_v27 = vpop.f32.mrf.mxu0  ;;  %v2687_v28 = vpop.f32.mrf.mxu1 }
 0x1dc   :  { %v3016_v29 = vmax.f32 %v2174_v25, 0.0  ;;  %v3144_v30 = vmax.f32 %v2686_v26, 0.0 }
 0x1dd   :  { %v2176_v31 = vpop.f32.mrf.mxu0  ;;  %v2688_v32 = vpop.f32.mrf.mxu1 }
 0x1de   :  { %3272 = vst [vmem:[#allocation2 + $0x1e0] sm:$0xff] %v3016_v29  ;;  %3400 = vst [vmem:[#allocation2 + $0x5e0] sm:$0xff] %v3144_v30  ;;  %v2177_v35 = vadd.f32 %v5076_v53, %v2176_v31  ;;  %v2689_v36 = vadd.f32 %v5076_v53, %v2688_v32  ;;  %v4266_v30 = vld [vmem:[%s5543_s0 + $0x3a0] ss:$8 sps:$4 sm:$0xff]  }
 0x1df   :  { %v2178_v39 = vpop.f32.mrf.mxu0  ;;  %v2690_v40 = vpop.f32.mrf.mxu1  ;;  %v4267_v31 = vld [vmem:[%s5543_s0 + $0x7a0] ss:$8 sps:$4 sm:$0xff]  }
 0x1e0   :  { %v3017_v41 = vmax.f32 %v2177_v35, 0.0  ;;  %v3145_v42 = vmax.f32 %v2689_v36, 0.0  ;;  %v4270_v35 = vld [vmem:[%s5543_s0 + $0x7b4] ss:$8 sps:$4 sm:$0xff]  }
 0x1e1   :  { %v2181_v43 = vpop.f32.mrf.mxu0  ;;  %2372 = vmatmul.mubr.bf16.gmra.mxu0 %v4248_v33  ;;  %v2693_v44 = vpop.f32.mrf.mxu1  ;;  %2884 = vmatmul.mubr.bf16.gmra.mxu1 %v4249_v34  ;;  %v4268_v34 = vld [vmem:[%s5543_s0 + $0x3b4] ss:$8 sps:$4 sm:$0xff]  }
 0x1e2   :  { %3273 = vst [vmem:[#allocation2 + $0x1e8] sm:$0xff] %v3017_v41  ;;  %3401 = vst [vmem:[#allocation2 + $0x5e8] sm:$0xff] %v3145_v42  ;;  %v2182_v45 = vadd.f32 %v5076_v53, %v2181_v43  ;;  %v2694_v46 = vadd.f32 %v5076_v53, %v2693_v44  ;;  %3807 = vmatprep.mubr.msk.bf16.mxu0 %vm1507_vm0, %v4250_v37  ;;  %3871 = vmatprep.mubr.msk.bf16.mxu1 %vm1507_vm0, %v4252_v38 }
 0x1e3   :  { %v2183_v47 = vpop.f32.mrf.mxu0  ;;  %v2695_v48 = vpop.f32.mrf.mxu1 }
 0x1e4   :  { %v3018_v49 = vmax.f32 %v2182_v45, 0.0  ;;  %v3146_v50 = vmax.f32 %v2694_v46, 0.0 }
 0x1e5   :  { %v2184_v51 = vpop.f32.mrf.mxu0  ;;  %v2696_v52 = vpop.f32.mrf.mxu1 }
 0x1e6   :  { %3274 = vst [vmem:[#allocation2 + $0x1f0] sm:$0xff] %v3018_v49  ;;  %3402 = vst [vmem:[#allocation2 + $0x5f0] sm:$0xff] %v3146_v50  ;;  %v2185_v56 = vadd.f32 %v5076_v53, %v2184_v51  ;;  %v2697_v57 = vadd.f32 %v5076_v53, %v2696_v52  ;;  %v4272_v50 = vld [vmem:[%s5543_s0 + $0x3b0] ss:$8 sps:$4 sm:$0xff]  }
 0x1e7   :  { %v2186_v60 = vpop.f32.mrf.mxu0  ;;  %v2698_v61 = vpop.f32.mrf.mxu1  ;;  %v4273_v51 = vld [vmem:[%s5543_s0 + $0x7b0] ss:$8 sps:$4 sm:$0xff]  }
 0x1e8   :  { %v3019_v62 = vmax.f32 %v2185_v56, 0.0  ;;  %v3147_v63 = vmax.f32 %v2697_v57, 0.0  ;;  %v4276_v56 = vld [vmem:[%s5543_s0 + $0x7c4] ss:$8 sps:$4 sm:$0xff]  }
 0x1e9   :  { %v2189_v0 = vpop.f32.mrf.mxu0  ;;  %2380 = vmatmul.mubr.bf16.gmra.mxu0 %v4254_v54  ;;  %v2701_v1 = vpop.f32.mrf.mxu1  ;;  %2892 = vmatmul.mubr.bf16.gmra.mxu1 %v4255_v55  ;;  %v4274_v55 = vld [vmem:[%s5543_s0 + $0x3c4] ss:$8 sps:$4 sm:$0xff]  }
 0x1ea   :  { %3275 = vst [vmem:[#allocation2 + $0x1f8] sm:$0xff] %v3019_v62  ;;  %3403 = vst [vmem:[#allocation2 + $0x5f8] sm:$0xff] %v3147_v63  ;;  %v2190_v2 = vadd.f32 %v5076_v53, %v2189_v0  ;;  %v2702_v3 = vadd.f32 %v5076_v53, %v2701_v1  ;;  %3808 = vmatprep.mubr.msk.bf16.mxu0 %vm1507_vm0, %v4256_v58  ;;  %3872 = vmatprep.mubr.msk.bf16.mxu1 %vm1507_vm0, %v4258_v59 }
 0x1eb   :  { %v2191_v4 = vpop.f32.mrf.mxu0  ;;  %v2703_v5 = vpop.f32.mrf.mxu1 }
 0x1ec   :  { %v3020_v6 = vmax.f32 %v2190_v2, 0.0  ;;  %v3148_v7 = vmax.f32 %v2702_v3, 0.0 }
 0x1ed   :  { %v2192_v8 = vpop.f32.mrf.mxu0  ;;  %v2704_v9 = vpop.f32.mrf.mxu1 }
 0x1ee   :  { %3276 = vst [vmem:[#allocation2 + $0x200] sm:$0xff] %v3020_v6  ;;  %3404 = vst [vmem:[#allocation2 + $0x600] sm:$0xff] %v3148_v7  ;;  %v2193_v12 = vadd.f32 %v5076_v53, %v2192_v8  ;;  %v2705_v13 = vadd.f32 %v5076_v53, %v2704_v9  ;;  %v4278_v7 = vld [vmem:[%s5543_s0 + $0x3c0] ss:$8 sps:$4 sm:$0xff]  }
 0x1ef   :  { %v2194_v16 = vpop.f32.mrf.mxu0  ;;  %v2706_v17 = vpop.f32.mrf.mxu1  ;;  %v4279_v8 = vld [vmem:[%s5543_s0 + $0x7c0] ss:$8 sps:$4 sm:$0xff]  }
 0x1f0   :  { %v3021_v18 = vmax.f32 %v2193_v12, 0.0  ;;  %v3149_v19 = vmax.f32 %v2705_v13, 0.0  ;;  %v4282_v12 = vld [vmem:[%s5543_s0 + $0x7d4] ss:$8 sps:$4 sm:$0xff]  }
 0x1f1   :  { %v2197_v20 = vpop.f32.mrf.mxu0  ;;  %2388 = vmatmul.mubr.bf16.gmra.mxu0 %v4260_v10  ;;  %v2709_v21 = vpop.f32.mrf.mxu1  ;;  %2900 = vmatmul.mubr.bf16.gmra.mxu1 %v4261_v11  ;;  %v4280_v11 = vld [vmem:[%s5543_s0 + $0x3d4] ss:$8 sps:$4 sm:$0xff]  }
 0x1f2   :  { %3277 = vst [vmem:[#allocation2 + $0x208] sm:$0xff] %v3021_v18  ;;  %3405 = vst [vmem:[#allocation2 + $0x608] sm:$0xff] %v3149_v19  ;;  %v2198_v22 = vadd.f32 %v5076_v53, %v2197_v20  ;;  %v2710_v23 = vadd.f32 %v5076_v53, %v2709_v21  ;;  %3809 = vmatprep.mubr.msk.bf16.mxu0 %vm1507_vm0, %v4262_v14  ;;  %3873 = vmatprep.mubr.msk.bf16.mxu1 %vm1507_vm0, %v4264_v15 }
 0x1f3   :  { %v2199_v24 = vpop.f32.mrf.mxu0  ;;  %v2711_v25 = vpop.f32.mrf.mxu1 }
 0x1f4   :  { %v3022_v26 = vmax.f32 %v2198_v22, 0.0  ;;  %v3150_v27 = vmax.f32 %v2710_v23, 0.0 }
 0x1f5   :  { %v2200_v28 = vpop.f32.mrf.mxu0  ;;  %v2712_v29 = vpop.f32.mrf.mxu1 }
 0x1f6   :  { %3278 = vst [vmem:[#allocation2 + $0x210] sm:$0xff] %v3022_v26  ;;  %3406 = vst [vmem:[#allocation2 + $0x610] sm:$0xff] %v3150_v27  ;;  %v2201_v32 = vadd.f32 %v5076_v53, %v2200_v28  ;;  %v2713_v33 = vadd.f32 %v5076_v53, %v2712_v29  ;;  %v4284_v27 = vld [vmem:[%s5543_s0 + $0x3d0] ss:$8 sps:$4 sm:$0xff]  }
 0x1f7   :  { %v2202_v36 = vpop.f32.mrf.mxu0  ;;  %v2714_v37 = vpop.f32.mrf.mxu1  ;;  %v4285_v28 = vld [vmem:[%s5543_s0 + $0x7d0] ss:$8 sps:$4 sm:$0xff]  }
 0x1f8   :  { %v3023_v38 = vmax.f32 %v2201_v32, 0.0  ;;  %v3151_v39 = vmax.f32 %v2713_v33, 0.0  ;;  %v4288_v32 = vld [vmem:[%s5543_s0 + $0x7e4] ss:$8 sps:$4 sm:$0xff]  }
 0x1f9   :  { %v2205_v40 = vpop.f32.mrf.mxu0  ;;  %2396 = vmatmul.mubr.bf16.gmra.mxu0 %v4266_v30  ;;  %v2717_v41 = vpop.f32.mrf.mxu1  ;;  %2908 = vmatmul.mubr.bf16.gmra.mxu1 %v4267_v31  ;;  %v4286_v31 = vld [vmem:[%s5543_s0 + $0x3e4] ss:$8 sps:$4 sm:$0xff]  }
 0x1fa   :  { %3279 = vst [vmem:[#allocation2 + $0x218] sm:$0xff] %v3023_v38  ;;  %3407 = vst [vmem:[#allocation2 + $0x618] sm:$0xff] %v3151_v39  ;;  %v2206_v42 = vadd.f32 %v5076_v53, %v2205_v40  ;;  %v2718_v43 = vadd.f32 %v5076_v53, %v2717_v41  ;;  %3810 = vmatprep.mubr.msk.bf16.mxu0 %vm1507_vm0, %v4268_v34  ;;  %3874 = vmatprep.mubr.msk.bf16.mxu1 %vm1507_vm0, %v4270_v35 }
 0x1fb   :  { %v2207_v44 = vpop.f32.mrf.mxu0  ;;  %v2719_v45 = vpop.f32.mrf.mxu1 }
 0x1fc   :  { %v3024_v46 = vmax.f32 %v2206_v42, 0.0  ;;  %v3152_v47 = vmax.f32 %v2718_v43, 0.0 }
 0x1fd   :  { %v2208_v48 = vpop.f32.mrf.mxu0  ;;  %v2720_v49 = vpop.f32.mrf.mxu1 }
 0x1fe   :  { %3280 = vst [vmem:[#allocation2 + $0x220] sm:$0xff] %v3024_v46  ;;  %3408 = vst [vmem:[#allocation2 + $0x620] sm:$0xff] %v3152_v47  ;;  %v2209_v52 = vadd.f32 %v5076_v53, %v2208_v48  ;;  %v2721_v54 = vadd.f32 %v5076_v53, %v2720_v49  ;;  %v4290_v47 = vld [vmem:[%s5543_s0 + $0x3e0] ss:$8 sps:$4 sm:$0xff]  }
 0x1ff   :  { %v2210_v57 = vpop.f32.mrf.mxu0  ;;  %v2722_v58 = vpop.f32.mrf.mxu1  ;;  %v4291_v48 = vld [vmem:[%s5543_s0 + $0x7e0] ss:$8 sps:$4 sm:$0xff]  }
 0x200   :  { %v3025_v59 = vmax.f32 %v2209_v52, 0.0  ;;  %v3153_v60 = vmax.f32 %v2721_v54, 0.0  ;;  %v4294_v52 = vld [vmem:[%s5543_s0 + $0x7f4] ss:$8 sps:$4 sm:$0xff]  }
 0x201   :  { %v2213_v61 = vpop.f32.mrf.mxu0  ;;  %2404 = vmatmul.mubr.bf16.gmra.mxu0 %v4272_v50  ;;  %v2725_v62 = vpop.f32.mrf.mxu1  ;;  %2916 = vmatmul.mubr.bf16.gmra.mxu1 %v4273_v51  ;;  %v4292_v51 = vld [vmem:[%s5543_s0 + $0x3f4] ss:$8 sps:$4 sm:$0xff]  }
 0x202   :  { %3281 = vst [vmem:[#allocation2 + $0x228] sm:$0xff] %v3025_v59  ;;  %3409 = vst [vmem:[#allocation2 + $0x628] sm:$0xff] %v3153_v60  ;;  %v2214_v63 = vadd.f32 %v5076_v53, %v2213_v61  ;;  %v2726_v0 = vadd.f32 %v5076_v53, %v2725_v62  ;;  %3811 = vmatprep.mubr.msk.bf16.mxu0 %vm1507_vm0, %v4274_v55  ;;  %3875 = vmatprep.mubr.msk.bf16.mxu1 %vm1507_vm0, %v4276_v56 }
 0x203   :  { %v2215_v1 = vpop.f32.mrf.mxu0  ;;  %v2727_v2 = vpop.f32.mrf.mxu1 }
 0x204   :  { %v3026_v3 = vmax.f32 %v2214_v63, 0.0  ;;  %v3154_v4 = vmax.f32 %v2726_v0, 0.0 }
 0x205   :  { %v2216_v5 = vpop.f32.mrf.mxu0  ;;  %v2728_v6 = vpop.f32.mrf.mxu1 }
 0x206   :  { %3282 = vst [vmem:[#allocation2 + $0x230] sm:$0xff] %v3026_v3  ;;  %3410 = vst [vmem:[#allocation2 + $0x630] sm:$0xff] %v3154_v4  ;;  %v2217_v9 = vadd.f32 %v5076_v53, %v2216_v5  ;;  %v2729_v10 = vadd.f32 %v5076_v53, %v2728_v6  ;;  %v4296_v4 = vld [vmem:[%s5543_s0 + $0x3f0] ss:$8 sps:$4 sm:$0xff]  }
 0x207   :  { %v2218_v13 = vpop.f32.mrf.mxu0  ;;  %v2730_v14 = vpop.f32.mrf.mxu1  ;;  %v4297_v5 = vld [vmem:[%s5543_s0 + $0x7f0] ss:$8 sps:$4 sm:$0xff]  }
 0x208   :  { %v3027_v15 = vmax.f32 %v2217_v9, 0.0  ;;  %v3155_v16 = vmax.f32 %v2729_v10, 0.0 }
 0x209   :  { %v2221_v17 = vpop.f32.mrf.mxu0  ;;  %2412 = vmatmul.mubr.bf16.gmra.mxu0 %v4278_v7  ;;  %v2733_v18 = vpop.f32.mrf.mxu1  ;;  %2924 = vmatmul.mubr.bf16.gmra.mxu1 %v4279_v8 }
 0x20a   :  { %3283 = vst [vmem:[#allocation2 + $0x238] sm:$0xff] %v3027_v15  ;;  %3411 = vst [vmem:[#allocation2 + $0x638] sm:$0xff] %v3155_v16  ;;  %v2222_v19 = vadd.f32 %v5076_v53, %v2221_v17  ;;  %v2734_v20 = vadd.f32 %v5076_v53, %v2733_v18  ;;  %3812 = vmatprep.mubr.msk.bf16.mxu0 %vm1507_vm0, %v4280_v11  ;;  %3876 = vmatprep.mubr.msk.bf16.mxu1 %vm1507_vm0, %v4282_v12 }
 0x20b   :  { %v2223_v21 = vpop.f32.mrf.mxu0  ;;  %v2735_v22 = vpop.f32.mrf.mxu1 }
 0x20c   :  { %v3028_v23 = vmax.f32 %v2222_v19, 0.0  ;;  %v3156_v24 = vmax.f32 %v2734_v20, 0.0 }
 0x20d   :  { %v2224_v25 = vpop.f32.mrf.mxu0  ;;  %v2736_v26 = vpop.f32.mrf.mxu1 }
 0x20e   :  { %3284 = vst [vmem:[#allocation2 + $0x240] sm:$0xff] %v3028_v23  ;;  %3412 = vst [vmem:[#allocation2 + $0x640] sm:$0xff] %v3156_v24  ;;  %v2225_v29 = vadd.f32 %v5076_v53, %v2224_v25  ;;  %v2737_v30 = vadd.f32 %v5076_v53, %v2736_v26  ;;  %v5413_v53 = vld [vmem:[%s5545_s2] ss:$0 sm:$0xff] }
 0x20f   :  { %v2226_v33 = vpop.f32.mrf.mxu0  ;;  %v2738_v34 = vpop.f32.mrf.mxu1 }
 0x210   :  { %v3029_v35 = vmax.f32 %v2225_v29, 0.0  ;;  %v3157_v36 = vmax.f32 %v2737_v30, 0.0 }
 0x211   :  { %v2229_v37 = vpop.f32.mrf.mxu0  ;;  %2420 = vmatmul.mubr.bf16.gmra.mxu0 %v4284_v27  ;;  %v2741_v38 = vpop.f32.mrf.mxu1  ;;  %2932 = vmatmul.mubr.bf16.gmra.mxu1 %v4285_v28 }
 0x212   :  { %3285 = vst [vmem:[#allocation2 + $0x248] sm:$0xff] %v3029_v35  ;;  %3413 = vst [vmem:[#allocation2 + $0x648] sm:$0xff] %v3157_v36  ;;  %v2230_v39 = vadd.f32 %v5413_v53, %v2229_v37  ;;  %v2742_v40 = vadd.f32 %v5413_v53, %v2741_v38  ;;  %3813 = vmatprep.mubr.msk.bf16.mxu0 %vm1507_vm0, %v4286_v31  ;;  %3877 = vmatprep.mubr.msk.bf16.mxu1 %vm1507_vm0, %v4288_v32 }
 0x213   :  { %v2231_v41 = vpop.f32.mrf.mxu0  ;;  %v2743_v42 = vpop.f32.mrf.mxu1 }
 0x214   :  { %v3030_v43 = vmax.f32 %v2230_v39, 0.0  ;;  %v3158_v44 = vmax.f32 %v2742_v40, 0.0 }
 0x215   :  { %v2232_v45 = vpop.f32.mrf.mxu0  ;;  %v2744_v46 = vpop.f32.mrf.mxu1 }
 0x216   :  { %3286 = vst [vmem:[#allocation2 + $0x250] sm:$0xff] %v3030_v43  ;;  %3414 = vst [vmem:[#allocation2 + $0x650] sm:$0xff] %v3158_v44  ;;  %v2233_v49 = vadd.f32 %v5413_v53, %v2232_v45  ;;  %v2745_v50 = vadd.f32 %v5413_v53, %v2744_v46 }
 0x217   :  { %v2234_v54 = vpop.f32.mrf.mxu0  ;;  %v2746_v55 = vpop.f32.mrf.mxu1 }
 0x218   :  { %v3031_v56 = vmax.f32 %v2233_v49, 0.0  ;;  %v3159_v57 = vmax.f32 %v2745_v50, 0.0 }
 0x219   :  { %v2237_v58 = vpop.f32.mrf.mxu0  ;;  %2428 = vmatmul.mubr.bf16.gmra.mxu0 %v4290_v47  ;;  %v2749_v59 = vpop.f32.mrf.mxu1  ;;  %2940 = vmatmul.mubr.bf16.gmra.mxu1 %v4291_v48 }
 0x21a   :  { %3287 = vst [vmem:[#allocation2 + $0x258] sm:$0xff] %v3031_v56  ;;  %3415 = vst [vmem:[#allocation2 + $0x658] sm:$0xff] %v3159_v57  ;;  %v2238_v60 = vadd.f32 %v5413_v53, %v2237_v58  ;;  %v2750_v61 = vadd.f32 %v5413_v53, %v2749_v59  ;;  %3814 = vmatprep.mubr.msk.bf16.mxu0 %vm1507_vm0, %v4292_v51  ;;  %3878 = vmatprep.mubr.msk.bf16.mxu1 %vm1507_vm0, %v4294_v52 }
 0x21b   :  { %v2239_v62 = vpop.f32.mrf.mxu0  ;;  %v2751_v63 = vpop.f32.mrf.mxu1 }
 0x21c   :  { %v3032_v0 = vmax.f32 %v2238_v60, 0.0  ;;  %v3160_v1 = vmax.f32 %v2750_v61, 0.0 }
 0x21d   :  { %v2240_v2 = vpop.f32.mrf.mxu0  ;;  %v2752_v3 = vpop.f32.mrf.mxu1 }
 0x21e   :  { %3288 = vst [vmem:[#allocation2 + $0x260] sm:$0xff] %v3032_v0  ;;  %3416 = vst [vmem:[#allocation2 + $0x660] sm:$0xff] %v3160_v1  ;;  %v2241_v6 = vadd.f32 %v5413_v53, %v2240_v2  ;;  %v2753_v7 = vadd.f32 %v5413_v53, %v2752_v3 }
 0x21f   :  { %v2242_v8 = vpop.f32.mrf.mxu0  ;;  %v2754_v9 = vpop.f32.mrf.mxu1 }
 0x220   :  { %v3033_v10 = vmax.f32 %v2241_v6, 0.0  ;;  %v3161_v11 = vmax.f32 %v2753_v7, 0.0 }
 0x221   :  { %v2245_v12 = vpop.f32.mrf.mxu0  ;;  %2436 = vmatmul.mubr.bf16.gmra.mxu0 %v4296_v4  ;;  %v2757_v13 = vpop.f32.mrf.mxu1  ;;  %2948 = vmatmul.mubr.bf16.gmra.mxu1 %v4297_v5 }
 0x222   :  { %3289 = vst [vmem:[#allocation2 + $0x268] sm:$0xff] %v3033_v10  ;;  %3417 = vst [vmem:[#allocation2 + $0x668] sm:$0xff] %v3161_v11  ;;  %v2246_v14 = vadd.f32 %v5413_v53, %v2245_v12  ;;  %v2758_v15 = vadd.f32 %v5413_v53, %v2757_v13 }
 0x223   :  { %v2247_v16 = vpop.f32.mrf.mxu0  ;;  %v2759_v17 = vpop.f32.mrf.mxu1 }
 0x224   :  { %v3034_v18 = vmax.f32 %v2246_v14, 0.0  ;;  %v3162_v19 = vmax.f32 %v2758_v15, 0.0 }
 0x225   :  { %v2248_v20 = vpop.f32.mrf.mxu0  ;;  %v2760_v21 = vpop.f32.mrf.mxu1 }
 0x226   :  { %3290 = vst [vmem:[#allocation2 + $0x270] sm:$0xff] %v3034_v18  ;;  %3418 = vst [vmem:[#allocation2 + $0x670] sm:$0xff] %v3162_v19  ;;  %v2249_v22 = vadd.f32 %v5413_v53, %v2248_v20  ;;  %v2761_v23 = vadd.f32 %v5413_v53, %v2760_v21 }
 0x227   :  { %v2250_v24 = vpop.f32.mrf.mxu0  ;;  %v2762_v25 = vpop.f32.mrf.mxu1 }
 0x228   :  { %v3035_v26 = vmax.f32 %v2249_v22, 0.0  ;;  %v3163_v27 = vmax.f32 %v2761_v23, 0.0 }
 0x229   :  { %v2253_v28 = vpop.f32.mrf.mxu0  ;;  %v2765_v29 = vpop.f32.mrf.mxu1 }
 0x22a   :  { %3291 = vst [vmem:[#allocation2 + $0x278] sm:$0xff] %v3035_v26  ;;  %3419 = vst [vmem:[#allocation2 + $0x678] sm:$0xff] %v3163_v27  ;;  %v2254_v30 = vadd.f32 %v5413_v53, %v2253_v28  ;;  %v2766_v31 = vadd.f32 %v5413_v53, %v2765_v29 }
 0x22b   :  { %v2255_v32 = vpop.f32.mrf.mxu0  ;;  %v2767_v33 = vpop.f32.mrf.mxu1 }
 0x22c   :  { %v3036_v34 = vmax.f32 %v2254_v30, 0.0  ;;  %v3164_v35 = vmax.f32 %v2766_v31, 0.0 }
 0x22d   :  { %v2256_v36 = vpop.f32.mrf.mxu0  ;;  %v2768_v37 = vpop.f32.mrf.mxu1 }
 0x22e   :  { %3292 = vst [vmem:[#allocation2 + $0x280] sm:$0xff] %v3036_v34  ;;  %3420 = vst [vmem:[#allocation2 + $0x680] sm:$0xff] %v3164_v35  ;;  %v2257_v38 = vadd.f32 %v5413_v53, %v2256_v36  ;;  %v2769_v39 = vadd.f32 %v5413_v53, %v2768_v37 }
 0x22f   :  { %v2258_v40 = vpop.f32.mrf.mxu0  ;;  %v2770_v41 = vpop.f32.mrf.mxu1 }
 0x230   :  { %v3037_v42 = vmax.f32 %v2257_v38, 0.0  ;;  %v3165_v43 = vmax.f32 %v2769_v39, 0.0 }
 0x231   :  { %v2261_v44 = vpop.f32.mrf.mxu0  ;;  %v2773_v45 = vpop.f32.mrf.mxu1 }
 0x232   :  { %3293 = vst [vmem:[#allocation2 + $0x288] sm:$0xff] %v3037_v42  ;;  %3421 = vst [vmem:[#allocation2 + $0x688] sm:$0xff] %v3165_v43  ;;  %v2262_v46 = vadd.f32 %v5413_v53, %v2261_v44  ;;  %v2774_v47 = vadd.f32 %v5413_v53, %v2773_v45 }
 0x233   :  { %v2263_v48 = vpop.f32.mrf.mxu0  ;;  %v2775_v49 = vpop.f32.mrf.mxu1 }
 0x234   :  { %v3038_v50 = vmax.f32 %v2262_v46, 0.0  ;;  %v3166_v51 = vmax.f32 %v2774_v47, 0.0 }
 0x235   :  { %v2264_v52 = vpop.f32.mrf.mxu0  ;;  %v2776_v54 = vpop.f32.mrf.mxu1 }
 0x236   :  { %3294 = vst [vmem:[#allocation2 + $0x290] sm:$0xff] %v3038_v50  ;;  %3422 = vst [vmem:[#allocation2 + $0x690] sm:$0xff] %v3166_v51  ;;  %v2265_v55 = vadd.f32 %v5413_v53, %v2264_v52  ;;  %v2777_v56 = vadd.f32 %v5413_v53, %v2776_v54 }
 0x237   :  { %v2266_v57 = vpop.f32.mrf.mxu0  ;;  %v2778_v58 = vpop.f32.mrf.mxu1 }
 0x238   :  { %v3039_v59 = vmax.f32 %v2265_v55, 0.0  ;;  %v3167_v60 = vmax.f32 %v2777_v56, 0.0 }
 0x239   :  { %v2269_v61 = vpop.f32.mrf.mxu0  ;;  %v2781_v62 = vpop.f32.mrf.mxu1 }
 0x23a   :  { %3295 = vst [vmem:[#allocation2 + $0x298] sm:$0xff] %v3039_v59  ;;  %3423 = vst [vmem:[#allocation2 + $0x698] sm:$0xff] %v3167_v60  ;;  %v2270_v63 = vadd.f32 %v5413_v53, %v2269_v61  ;;  %v2782_v0 = vadd.f32 %v5413_v53, %v2781_v62 }
 0x23b   :  { %v2271_v1 = vpop.f32.mrf.mxu0  ;;  %v2783_v2 = vpop.f32.mrf.mxu1 }
 0x23c   :  { %v3040_v3 = vmax.f32 %v2270_v63, 0.0  ;;  %v3168_v4 = vmax.f32 %v2782_v0, 0.0 }
 0x23d   :  { %v2272_v5 = vpop.f32.mrf.mxu0  ;;  %v2784_v6 = vpop.f32.mrf.mxu1 }
 0x23e   :  { %3296 = vst [vmem:[#allocation2 + $0x2a0] sm:$0xff] %v3040_v3  ;;  %3424 = vst [vmem:[#allocation2 + $0x6a0] sm:$0xff] %v3168_v4  ;;  %v2273_v7 = vadd.f32 %v5413_v53, %v2272_v5  ;;  %v2785_v8 = vadd.f32 %v5413_v53, %v2784_v6 }
 0x23f   :  { %v2274_v9 = vpop.f32.mrf.mxu0  ;;  %v2786_v10 = vpop.f32.mrf.mxu1 }
 0x240   :  { %v3041_v11 = vmax.f32 %v2273_v7, 0.0  ;;  %v3169_v12 = vmax.f32 %v2785_v8, 0.0 }
 0x241   :  { %v2277_v13 = vpop.f32.mrf.mxu0  ;;  %v2789_v14 = vpop.f32.mrf.mxu1 }
 0x242   :  { %3297 = vst [vmem:[#allocation2 + $0x2a8] sm:$0xff] %v3041_v11  ;;  %3425 = vst [vmem:[#allocation2 + $0x6a8] sm:$0xff] %v3169_v12  ;;  %v2278_v15 = vadd.f32 %v5413_v53, %v2277_v13  ;;  %v2790_v16 = vadd.f32 %v5413_v53, %v2789_v14 }
 0x243   :  { %v2279_v17 = vpop.f32.mrf.mxu0  ;;  %v2791_v18 = vpop.f32.mrf.mxu1 }
 0x244   :  { %v3042_v19 = vmax.f32 %v2278_v15, 0.0  ;;  %v3170_v20 = vmax.f32 %v2790_v16, 0.0 }
 0x245   :  { %v2280_v21 = vpop.f32.mrf.mxu0  ;;  %v2792_v22 = vpop.f32.mrf.mxu1 }
 0x246   :  { %3298 = vst [vmem:[#allocation2 + $0x2b0] sm:$0xff] %v3042_v19  ;;  %3426 = vst [vmem:[#allocation2 + $0x6b0] sm:$0xff] %v3170_v20  ;;  %v2281_v23 = vadd.f32 %v5413_v53, %v2280_v21  ;;  %v2793_v24 = vadd.f32 %v5413_v53, %v2792_v22 }
 0x247   :  { %v2282_v25 = vpop.f32.mrf.mxu0  ;;  %v2794_v26 = vpop.f32.mrf.mxu1 }
 0x248   :  { %v3043_v27 = vmax.f32 %v2281_v23, 0.0  ;;  %v3171_v28 = vmax.f32 %v2793_v24, 0.0 }
 0x249   :  { %v2285_v29 = vpop.f32.mrf.mxu0  ;;  %v2797_v30 = vpop.f32.mrf.mxu1 }
 0x24a   :  { %3299 = vst [vmem:[#allocation2 + $0x2b8] sm:$0xff] %v3043_v27  ;;  %3427 = vst [vmem:[#allocation2 + $0x6b8] sm:$0xff] %v3171_v28  ;;  %v2286_v31 = vadd.f32 %v5413_v53, %v2285_v29  ;;  %v2798_v32 = vadd.f32 %v5413_v53, %v2797_v30 }
 0x24b   :  { %v2287_v33 = vpop.f32.mrf.mxu0  ;;  %v2799_v34 = vpop.f32.mrf.mxu1 }
 0x24c   :  { %v3044_v35 = vmax.f32 %v2286_v31, 0.0  ;;  %v3172_v36 = vmax.f32 %v2798_v32, 0.0 }
 0x24d   :  { %v2288_v37 = vpop.f32.mrf.mxu0  ;;  %v2800_v38 = vpop.f32.mrf.mxu1 }
 0x24e   :  { %3300 = vst [vmem:[#allocation2 + $0x2c0] sm:$0xff] %v3044_v35  ;;  %3428 = vst [vmem:[#allocation2 + $0x6c0] sm:$0xff] %v3172_v36  ;;  %v2289_v39 = vadd.f32 %v5413_v53, %v2288_v37  ;;  %v2801_v40 = vadd.f32 %v5413_v53, %v2800_v38 }
 0x24f   :  { %v2290_v41 = vpop.f32.mrf.mxu0  ;;  %v2802_v42 = vpop.f32.mrf.mxu1 }
 0x250   :  { %v3045_v43 = vmax.f32 %v2289_v39, 0.0  ;;  %v3173_v44 = vmax.f32 %v2801_v40, 0.0 }
 0x251   :  { %v2293_v45 = vpop.f32.mrf.mxu0  ;;  %v2805_v46 = vpop.f32.mrf.mxu1 }
 0x252   :  { %3301 = vst [vmem:[#allocation2 + $0x2c8] sm:$0xff] %v3045_v43  ;;  %3429 = vst [vmem:[#allocation2 + $0x6c8] sm:$0xff] %v3173_v44  ;;  %v2294_v47 = vadd.f32 %v5413_v53, %v2293_v45  ;;  %v2806_v48 = vadd.f32 %v5413_v53, %v2805_v46 }
 0x253   :  { %v2295_v49 = vpop.f32.mrf.mxu0  ;;  %v2807_v50 = vpop.f32.mrf.mxu1 }
 0x254   :  { %v3046_v51 = vmax.f32 %v2294_v47, 0.0  ;;  %v3174_v52 = vmax.f32 %v2806_v48, 0.0 }
 0x255   :  { %v2296_v54 = vpop.f32.mrf.mxu0  ;;  %v2808_v55 = vpop.f32.mrf.mxu1 }
 0x256   :  { %3302 = vst [vmem:[#allocation2 + $0x2d0] sm:$0xff] %v3046_v51  ;;  %3430 = vst [vmem:[#allocation2 + $0x6d0] sm:$0xff] %v3174_v52  ;;  %v2297_v56 = vadd.f32 %v5413_v53, %v2296_v54  ;;  %v2809_v57 = vadd.f32 %v5413_v53, %v2808_v55 }
 0x257   :  { %v2298_v58 = vpop.f32.mrf.mxu0  ;;  %v2810_v59 = vpop.f32.mrf.mxu1 }
 0x258   :  { %v3047_v60 = vmax.f32 %v2297_v56, 0.0  ;;  %v3175_v61 = vmax.f32 %v2809_v57, 0.0 }
 0x259   :  { %v2301_v62 = vpop.f32.mrf.mxu0  ;;  %v2813_v63 = vpop.f32.mrf.mxu1 }
 0x25a   :  { %3303 = vst [vmem:[#allocation2 + $0x2d8] sm:$0xff] %v3047_v60  ;;  %3431 = vst [vmem:[#allocation2 + $0x6d8] sm:$0xff] %v3175_v61  ;;  %v2302_v0 = vadd.f32 %v5413_v53, %v2301_v62  ;;  %v2814_v1 = vadd.f32 %v5413_v53, %v2813_v63 }
 0x25b   :  { %v2303_v2 = vpop.f32.mrf.mxu0  ;;  %v2815_v3 = vpop.f32.mrf.mxu1 }
 0x25c   :  { %v3048_v4 = vmax.f32 %v2302_v0, 0.0  ;;  %v3176_v5 = vmax.f32 %v2814_v1, 0.0 }
 0x25d   :  { %v2304_v6 = vpop.f32.mrf.mxu0  ;;  %v2816_v7 = vpop.f32.mrf.mxu1 }
 0x25e   :  { %3304 = vst [vmem:[#allocation2 + $0x2e0] sm:$0xff] %v3048_v4  ;;  %3432 = vst [vmem:[#allocation2 + $0x6e0] sm:$0xff] %v3176_v5  ;;  %v2305_v8 = vadd.f32 %v5413_v53, %v2304_v6  ;;  %v2817_v9 = vadd.f32 %v5413_v53, %v2816_v7 }
 0x25f   :  { %v2306_v10 = vpop.f32.mrf.mxu0  ;;  %v2818_v11 = vpop.f32.mrf.mxu1 }
 0x260   :  { %v3049_v12 = vmax.f32 %v2305_v8, 0.0  ;;  %v3177_v13 = vmax.f32 %v2817_v9, 0.0 }
 0x261   :  { %v2309_v14 = vpop.f32.mrf.mxu0  ;;  %v2821_v15 = vpop.f32.mrf.mxu1 }
 0x262   :  { %3305 = vst [vmem:[#allocation2 + $0x2e8] sm:$0xff] %v3049_v12  ;;  %3433 = vst [vmem:[#allocation2 + $0x6e8] sm:$0xff] %v3177_v13  ;;  %v2310_v16 = vadd.f32 %v5413_v53, %v2309_v14  ;;  %v2822_v17 = vadd.f32 %v5413_v53, %v2821_v15 }
 0x263   :  { %v2311_v18 = vpop.f32.mrf.mxu0  ;;  %v2823_v19 = vpop.f32.mrf.mxu1 }
 0x264   :  { %v3050_v20 = vmax.f32 %v2310_v16, 0.0  ;;  %v3178_v21 = vmax.f32 %v2822_v17, 0.0 }
 0x265   :  { %v2312_v22 = vpop.f32.mrf.mxu0  ;;  %v2824_v23 = vpop.f32.mrf.mxu1 }
 0x266   :  { %3306 = vst [vmem:[#allocation2 + $0x2f0] sm:$0xff] %v3050_v20  ;;  %3434 = vst [vmem:[#allocation2 + $0x6f0] sm:$0xff] %v3178_v21  ;;  %v2313_v24 = vadd.f32 %v5413_v53, %v2312_v22  ;;  %v2825_v25 = vadd.f32 %v5413_v53, %v2824_v23 }
 0x267   :  { %v2314_v26 = vpop.f32.mrf.mxu0  ;;  %v2826_v27 = vpop.f32.mrf.mxu1 }
 0x268   :  { %v3051_v28 = vmax.f32 %v2313_v24, 0.0  ;;  %v3179_v29 = vmax.f32 %v2825_v25, 0.0 }
 0x269   :  { %v2317_v30 = vpop.f32.mrf.mxu0  ;;  %v2829_v31 = vpop.f32.mrf.mxu1 }
 0x26a   :  { %3307 = vst [vmem:[#allocation2 + $0x2f8] sm:$0xff] %v3051_v28  ;;  %3435 = vst [vmem:[#allocation2 + $0x6f8] sm:$0xff] %v3179_v29  ;;  %v2318_v32 = vadd.f32 %v5413_v53, %v2317_v30  ;;  %v2830_v33 = vadd.f32 %v5413_v53, %v2829_v31 }
 0x26b   :  { %v2319_v34 = vpop.f32.mrf.mxu0  ;;  %v2831_v35 = vpop.f32.mrf.mxu1 }
 0x26c   :  { %v3052_v36 = vmax.f32 %v2318_v32, 0.0  ;;  %v3180_v37 = vmax.f32 %v2830_v33, 0.0 }
 0x26d   :  { %v2320_v38 = vpop.f32.mrf.mxu0  ;;  %v2832_v39 = vpop.f32.mrf.mxu1 }
 0x26e   :  { %3308 = vst [vmem:[#allocation2 + $0x300] sm:$0xff] %v3052_v36  ;;  %3436 = vst [vmem:[#allocation2 + $0x700] sm:$0xff] %v3180_v37  ;;  %v2321_v40 = vadd.f32 %v5413_v53, %v2320_v38  ;;  %v2833_v41 = vadd.f32 %v5413_v53, %v2832_v39 }
 0x26f   :  { %v2322_v42 = vpop.f32.mrf.mxu0  ;;  %v2834_v43 = vpop.f32.mrf.mxu1 }
 0x270   :  { %v3053_v44 = vmax.f32 %v2321_v40, 0.0  ;;  %v3181_v45 = vmax.f32 %v2833_v41, 0.0 }
 0x271   :  { %v2325_v46 = vpop.f32.mrf.mxu0  ;;  %v2837_v47 = vpop.f32.mrf.mxu1 }
 0x272   :  { %3309 = vst [vmem:[#allocation2 + $0x308] sm:$0xff] %v3053_v44  ;;  %3437 = vst [vmem:[#allocation2 + $0x708] sm:$0xff] %v3181_v45  ;;  %v2326_v48 = vadd.f32 %v5413_v53, %v2325_v46  ;;  %v2838_v49 = vadd.f32 %v5413_v53, %v2837_v47 }
 0x273   :  { %v2327_v50 = vpop.f32.mrf.mxu0  ;;  %v2839_v51 = vpop.f32.mrf.mxu1 }
 0x274   :  { %v3054_v52 = vmax.f32 %v2326_v48, 0.0  ;;  %v3182_v54 = vmax.f32 %v2838_v49, 0.0 }
 0x275   :  { %v2328_v55 = vpop.f32.mrf.mxu0  ;;  %v2840_v56 = vpop.f32.mrf.mxu1 }
 0x276   :  { %3310 = vst [vmem:[#allocation2 + $0x310] sm:$0xff] %v3054_v52  ;;  %3438 = vst [vmem:[#allocation2 + $0x710] sm:$0xff] %v3182_v54  ;;  %v2329_v57 = vadd.f32 %v5413_v53, %v2328_v55  ;;  %v2841_v58 = vadd.f32 %v5413_v53, %v2840_v56 }
 0x277   :  { %v2330_v59 = vpop.f32.mrf.mxu0  ;;  %v2842_v60 = vpop.f32.mrf.mxu1 }
 0x278   :  { %v3055_v61 = vmax.f32 %v2329_v57, 0.0  ;;  %v3183_v62 = vmax.f32 %v2841_v58, 0.0 }
 0x279   :  { %v2333_v63 = vpop.f32.mrf.mxu0  ;;  %v2845_v0 = vpop.f32.mrf.mxu1 }
 0x27a   :  { %3311 = vst [vmem:[#allocation2 + $0x318] sm:$0xff] %v3055_v61  ;;  %3439 = vst [vmem:[#allocation2 + $0x718] sm:$0xff] %v3183_v62  ;;  %v2334_v1 = vadd.f32 %v5413_v53, %v2333_v63  ;;  %v2846_v2 = vadd.f32 %v5413_v53, %v2845_v0 }
 0x27b   :  { %v2335_v3 = vpop.f32.mrf.mxu0  ;;  %v2847_v4 = vpop.f32.mrf.mxu1 }
 0x27c   :  { %v3056_v5 = vmax.f32 %v2334_v1, 0.0  ;;  %v3184_v6 = vmax.f32 %v2846_v2, 0.0 }
 0x27d   :  { %v2336_v7 = vpop.f32.mrf.mxu0  ;;  %v2848_v8 = vpop.f32.mrf.mxu1 }
 0x27e   :  { %3312 = vst [vmem:[#allocation2 + $0x320] sm:$0xff] %v3056_v5  ;;  %3440 = vst [vmem:[#allocation2 + $0x720] sm:$0xff] %v3184_v6  ;;  %v2337_v9 = vadd.f32 %v5413_v53, %v2336_v7  ;;  %v2849_v10 = vadd.f32 %v5413_v53, %v2848_v8 }
 0x27f   :  { %v2338_v11 = vpop.f32.mrf.mxu0  ;;  %v2850_v12 = vpop.f32.mrf.mxu1 }
 0x280   :  { %v3057_v13 = vmax.f32 %v2337_v9, 0.0  ;;  %v3185_v14 = vmax.f32 %v2849_v10, 0.0 }
 0x281   :  { %v2341_v15 = vpop.f32.mrf.mxu0  ;;  %v2853_v16 = vpop.f32.mrf.mxu1 }
 0x282   :  { %3313 = vst [vmem:[#allocation2 + $0x328] sm:$0xff] %v3057_v13  ;;  %3441 = vst [vmem:[#allocation2 + $0x728] sm:$0xff] %v3185_v14  ;;  %v2342_v17 = vadd.f32 %v5413_v53, %v2341_v15  ;;  %v2854_v18 = vadd.f32 %v5413_v53, %v2853_v16 }
 0x283   :  { %v2343_v19 = vpop.f32.mrf.mxu0  ;;  %v2855_v20 = vpop.f32.mrf.mxu1 }
 0x284   :  { %v3058_v21 = vmax.f32 %v2342_v17, 0.0  ;;  %v3186_v22 = vmax.f32 %v2854_v18, 0.0 }
 0x285   :  { %v2344_v23 = vpop.f32.mrf.mxu0  ;;  %v2856_v24 = vpop.f32.mrf.mxu1 }
 0x286   :  { %3314 = vst [vmem:[#allocation2 + $0x330] sm:$0xff] %v3058_v21  ;;  %3442 = vst [vmem:[#allocation2 + $0x730] sm:$0xff] %v3186_v22  ;;  %v2345_v25 = vadd.f32 %v5413_v53, %v2344_v23  ;;  %v2857_v26 = vadd.f32 %v5413_v53, %v2856_v24 }
 0x287   :  { %v2346_v27 = vpop.f32.mrf.mxu0  ;;  %v2858_v28 = vpop.f32.mrf.mxu1 }
 0x288   :  { %v3059_v29 = vmax.f32 %v2345_v25, 0.0  ;;  %v3187_v30 = vmax.f32 %v2857_v26, 0.0 }
 0x289   :  { %v2349_v31 = vpop.f32.mrf.mxu0  ;;  %v2861_v32 = vpop.f32.mrf.mxu1 }
 0x28a   :  { %3315 = vst [vmem:[#allocation2 + $0x338] sm:$0xff] %v3059_v29  ;;  %3443 = vst [vmem:[#allocation2 + $0x738] sm:$0xff] %v3187_v30  ;;  %v2350_v33 = vadd.f32 %v5413_v53, %v2349_v31  ;;  %v2862_v34 = vadd.f32 %v5413_v53, %v2861_v32 }
 0x28b   :  { %v2351_v35 = vpop.f32.mrf.mxu0  ;;  %v2863_v36 = vpop.f32.mrf.mxu1 }
 0x28c   :  { %v3060_v37 = vmax.f32 %v2350_v33, 0.0  ;;  %v3188_v38 = vmax.f32 %v2862_v34, 0.0 }
 0x28d   :  { %v2352_v39 = vpop.f32.mrf.mxu0  ;;  %v2864_v40 = vpop.f32.mrf.mxu1 }
 0x28e   :  { %3316 = vst [vmem:[#allocation2 + $0x340] sm:$0xff] %v3060_v37  ;;  %3444 = vst [vmem:[#allocation2 + $0x740] sm:$0xff] %v3188_v38  ;;  %v2353_v41 = vadd.f32 %v5413_v53, %v2352_v39  ;;  %v2865_v42 = vadd.f32 %v5413_v53, %v2864_v40 }
 0x28f   :  { %v2354_v43 = vpop.f32.mrf.mxu0  ;;  %v2866_v44 = vpop.f32.mrf.mxu1 }
 0x290   :  { %v3061_v45 = vmax.f32 %v2353_v41, 0.0  ;;  %v3189_v46 = vmax.f32 %v2865_v42, 0.0 }
 0x291   :  { %v2357_v47 = vpop.f32.mrf.mxu0  ;;  %v2869_v48 = vpop.f32.mrf.mxu1 }
 0x292   :  { %3317 = vst [vmem:[#allocation2 + $0x348] sm:$0xff] %v3061_v45  ;;  %3445 = vst [vmem:[#allocation2 + $0x748] sm:$0xff] %v3189_v46  ;;  %v2358_v49 = vadd.f32 %v5413_v53, %v2357_v47  ;;  %v2870_v50 = vadd.f32 %v5413_v53, %v2869_v48 }
 0x293   :  { %v2359_v51 = vpop.f32.mrf.mxu0  ;;  %v2871_v52 = vpop.f32.mrf.mxu1 }
 0x294   :  { %v3062_v54 = vmax.f32 %v2358_v49, 0.0  ;;  %v3190_v55 = vmax.f32 %v2870_v50, 0.0 }
 0x295   :  { %v2360_v56 = vpop.f32.mrf.mxu0  ;;  %v2872_v57 = vpop.f32.mrf.mxu1 }
 0x296   :  { %3318 = vst [vmem:[#allocation2 + $0x350] sm:$0xff] %v3062_v54  ;;  %3446 = vst [vmem:[#allocation2 + $0x750] sm:$0xff] %v3190_v55  ;;  %v2361_v58 = vadd.f32 %v5413_v53, %v2360_v56  ;;  %v2873_v59 = vadd.f32 %v5413_v53, %v2872_v57 }
 0x297   :  { %v2362_v60 = vpop.f32.mrf.mxu0  ;;  %v2874_v61 = vpop.f32.mrf.mxu1 }
 0x298   :  { %v3063_v62 = vmax.f32 %v2361_v58, 0.0  ;;  %v3191_v63 = vmax.f32 %v2873_v59, 0.0 }
 0x299   :  { %v2365_v0 = vpop.f32.mrf.mxu0  ;;  %v2877_v1 = vpop.f32.mrf.mxu1 }
 0x29a   :  { %3319 = vst [vmem:[#allocation2 + $0x358] sm:$0xff] %v3063_v62  ;;  %3447 = vst [vmem:[#allocation2 + $0x758] sm:$0xff] %v3191_v63  ;;  %v2366_v2 = vadd.f32 %v5413_v53, %v2365_v0  ;;  %v2878_v3 = vadd.f32 %v5413_v53, %v2877_v1 }
 0x29b   :  { %v2367_v4 = vpop.f32.mrf.mxu0  ;;  %v2879_v5 = vpop.f32.mrf.mxu1 }
 0x29c   :  { %v3064_v6 = vmax.f32 %v2366_v2, 0.0  ;;  %v3192_v7 = vmax.f32 %v2878_v3, 0.0 }
 0x29d   :  { %v2368_v8 = vpop.f32.mrf.mxu0  ;;  %v2880_v9 = vpop.f32.mrf.mxu1 }
 0x29e   :  { %3320 = vst [vmem:[#allocation2 + $0x360] sm:$0xff] %v3064_v6  ;;  %3448 = vst [vmem:[#allocation2 + $0x760] sm:$0xff] %v3192_v7  ;;  %v2369_v10 = vadd.f32 %v5413_v53, %v2368_v8  ;;  %v2881_v11 = vadd.f32 %v5413_v53, %v2880_v9 }
 0x29f   :  { %v2370_v12 = vpop.f32.mrf.mxu0  ;;  %v2882_v13 = vpop.f32.mrf.mxu1 }
 0x2a0   :  { %v3065_v14 = vmax.f32 %v2369_v10, 0.0  ;;  %v3193_v15 = vmax.f32 %v2881_v11, 0.0 }
 0x2a1   :  { %v2373_v16 = vpop.f32.mrf.mxu0  ;;  %v2885_v17 = vpop.f32.mrf.mxu1 }
 0x2a2   :  { %3321 = vst [vmem:[#allocation2 + $0x368] sm:$0xff] %v3065_v14  ;;  %3449 = vst [vmem:[#allocation2 + $0x768] sm:$0xff] %v3193_v15  ;;  %v2374_v18 = vadd.f32 %v5413_v53, %v2373_v16  ;;  %v2886_v19 = vadd.f32 %v5413_v53, %v2885_v17 }
 0x2a3   :  { %v2375_v20 = vpop.f32.mrf.mxu0  ;;  %v2887_v21 = vpop.f32.mrf.mxu1 }
 0x2a4   :  { %v3066_v22 = vmax.f32 %v2374_v18, 0.0  ;;  %v3194_v23 = vmax.f32 %v2886_v19, 0.0 }
 0x2a5   :  { %v2376_v24 = vpop.f32.mrf.mxu0  ;;  %v2888_v25 = vpop.f32.mrf.mxu1 }
 0x2a6   :  { %3322 = vst [vmem:[#allocation2 + $0x370] sm:$0xff] %v3066_v22  ;;  %3450 = vst [vmem:[#allocation2 + $0x770] sm:$0xff] %v3194_v23  ;;  %v2377_v26 = vadd.f32 %v5413_v53, %v2376_v24  ;;  %v2889_v27 = vadd.f32 %v5413_v53, %v2888_v25 }
 0x2a7   :  { %v2378_v28 = vpop.f32.mrf.mxu0  ;;  %v2890_v29 = vpop.f32.mrf.mxu1 }
 0x2a8   :  { %v3067_v30 = vmax.f32 %v2377_v26, 0.0  ;;  %v3195_v31 = vmax.f32 %v2889_v27, 0.0 }
 0x2a9   :  { %v2381_v32 = vpop.f32.mrf.mxu0  ;;  %v2893_v33 = vpop.f32.mrf.mxu1 }
 0x2aa   :  { %3323 = vst [vmem:[#allocation2 + $0x378] sm:$0xff] %v3067_v30  ;;  %3451 = vst [vmem:[#allocation2 + $0x778] sm:$0xff] %v3195_v31  ;;  %v2382_v34 = vadd.f32 %v5413_v53, %v2381_v32  ;;  %v2894_v35 = vadd.f32 %v5413_v53, %v2893_v33 }
 0x2ab   :  { %v2383_v36 = vpop.f32.mrf.mxu0  ;;  %v2895_v37 = vpop.f32.mrf.mxu1 }
 0x2ac   :  { %v3068_v38 = vmax.f32 %v2382_v34, 0.0  ;;  %v3196_v39 = vmax.f32 %v2894_v35, 0.0 }
 0x2ad   :  { %v2384_v40 = vpop.f32.mrf.mxu0  ;;  %v2896_v41 = vpop.f32.mrf.mxu1 }
 0x2ae   :  { %3324 = vst [vmem:[#allocation2 + $0x380] sm:$0xff] %v3068_v38  ;;  %3452 = vst [vmem:[#allocation2 + $0x780] sm:$0xff] %v3196_v39  ;;  %v2385_v42 = vadd.f32 %v5413_v53, %v2384_v40  ;;  %v2897_v43 = vadd.f32 %v5413_v53, %v2896_v41 }
 0x2af   :  { %v2386_v44 = vpop.f32.mrf.mxu0  ;;  %v2898_v45 = vpop.f32.mrf.mxu1 }
 0x2b0   :  { %v3069_v46 = vmax.f32 %v2385_v42, 0.0  ;;  %v3197_v47 = vmax.f32 %v2897_v43, 0.0 }
 0x2b1   :  { %v2389_v48 = vpop.f32.mrf.mxu0  ;;  %v2901_v49 = vpop.f32.mrf.mxu1 }
 0x2b2   :  { %3325 = vst [vmem:[#allocation2 + $0x388] sm:$0xff] %v3069_v46  ;;  %3453 = vst [vmem:[#allocation2 + $0x788] sm:$0xff] %v3197_v47  ;;  %v2390_v50 = vadd.f32 %v5413_v53, %v2389_v48  ;;  %v2902_v51 = vadd.f32 %v5413_v53, %v2901_v49 }
 0x2b3   :  { %v2391_v52 = vpop.f32.mrf.mxu0  ;;  %v2903_v54 = vpop.f32.mrf.mxu1 }
 0x2b4   :  { %v3070_v55 = vmax.f32 %v2390_v50, 0.0  ;;  %v3198_v56 = vmax.f32 %v2902_v51, 0.0 }
 0x2b5   :  { %v2392_v57 = vpop.f32.mrf.mxu0  ;;  %v2904_v58 = vpop.f32.mrf.mxu1 }
 0x2b6   :  { %3326 = vst [vmem:[#allocation2 + $0x390] sm:$0xff] %v3070_v55  ;;  %3454 = vst [vmem:[#allocation2 + $0x790] sm:$0xff] %v3198_v56  ;;  %v2393_v59 = vadd.f32 %v5413_v53, %v2392_v57  ;;  %v2905_v60 = vadd.f32 %v5413_v53, %v2904_v58 }
 0x2b7   :  { %v2394_v61 = vpop.f32.mrf.mxu0  ;;  %v2906_v62 = vpop.f32.mrf.mxu1 }
 0x2b8   :  { %v3071_v63 = vmax.f32 %v2393_v59, 0.0  ;;  %v3199_v0 = vmax.f32 %v2905_v60, 0.0 }
 0x2b9   :  { %v2397_v1 = vpop.f32.mrf.mxu0  ;;  %v2909_v2 = vpop.f32.mrf.mxu1 }
 0x2ba   :  { %3327 = vst [vmem:[#allocation2 + $0x398] sm:$0xff] %v3071_v63  ;;  %3455 = vst [vmem:[#allocation2 + $0x798] sm:$0xff] %v3199_v0  ;;  %v2398_v3 = vadd.f32 %v5413_v53, %v2397_v1  ;;  %v2910_v4 = vadd.f32 %v5413_v53, %v2909_v2 }
 0x2bb   :  { %v2399_v5 = vpop.f32.mrf.mxu0  ;;  %v2911_v6 = vpop.f32.mrf.mxu1 }
 0x2bc   :  { %v3072_v7 = vmax.f32 %v2398_v3, 0.0  ;;  %v3200_v8 = vmax.f32 %v2910_v4, 0.0  ;;  %v4300_v4 = vld [vmem:[%s5545_s2] ss:$0 sm:$0xff]  ;;  %s4325_s2 = smov [#allocation2]  }
 0x2bd   :  { %v2400_v9 = vpop.f32.mrf.mxu0  ;;  %v2912_v10 = vpop.f32.mrf.mxu1  ;;  %s3473_s19 = sshll.u32 %s4325_s2, 4  ;;  %s3474_s19 = int_to_ptr.vmem [resolvable:$true] %s3473_s19 }
 0x2be   :  { %3328 = vst [vmem:[#allocation2 + $0x3a0] sm:$0xff] %v3072_v7  ;;  %3456 = vst [vmem:[#allocation2 + $0x7a0] sm:$0xff] %v3200_v8  ;;  %v2401_v11 = vadd.f32 %v5413_v53, %v2400_v9  ;;  %v2913_v12 = vadd.f32 %v5413_v53, %v2912_v10  ;;  %s4301_s20 = scalar_lea.vmem %s3474_s19, 32768  ;;  %p4306_p1 = scmp.lt.s32.totalorder %s3474_s19, %s3474_s19 }
 0x2bf   :  { %v2402_v13 = vpop.f32.mrf.mxu0  ;;  %v2914_v14 = vpop.f32.mrf.mxu1  ;;  %p4302_p0 = scmp.ne.s32.totalorder %s3474_s19, %s4301_s20  ;;  %p4307_p2 = scmp.lt.s32.totalorder %s4301_s20, %s4301_s20 }
 0x2c0   :  { %v3073_v15 = vmax.f32 %v2401_v11, 0.0  ;;  %v3201_v16 = vmax.f32 %v2913_v12, 0.0 }
 0x2c1   :  { %v2405_v17 = vpop.f32.mrf.mxu0  ;;  %v2917_v18 = vpop.f32.mrf.mxu1  ;;  %p4308_p3 = por %p4307_p2, %p4306_p1 }
 0x2c2   :  { %3329 = vst [vmem:[#allocation2 + $0x3a8] sm:$0xff] %v3073_v15  ;;  %3457 = vst [vmem:[#allocation2 + $0x7a8] sm:$0xff] %v3201_v16  ;;  %v2406_v19 = vadd.f32 %v5413_v53, %v2405_v17  ;;  %v2918_v20 = vadd.f32 %v5413_v53, %v2917_v18 }
 0x2c3   :  { %v2407_v21 = vpop.f32.mrf.mxu0  ;;  %v2919_v22 = vpop.f32.mrf.mxu1  ;;  %p4309_p4 = pnand %p4308_p3, %p4302_p0 }
 0x2c4   :  { %v3074_v23 = vmax.f32 %v2406_v19, 0.0  ;;  %v3202_v24 = vmax.f32 %v2918_v20, 0.0 }
 0x2c5   :  { %v2408_v25 = vpop.f32.mrf.mxu0  ;;  %v2920_v26 = vpop.f32.mrf.mxu1 }
 0x2c6   :  { %3330 = vst [vmem:[#allocation2 + $0x3b0] sm:$0xff] %v3074_v23  ;;  %3458 = vst [vmem:[#allocation2 + $0x7b0] sm:$0xff] %v3202_v24  ;;  %v2409_v27 = vadd.f32 %v5413_v53, %v2408_v25  ;;  %v2921_v28 = vadd.f32 %v5413_v53, %v2920_v26 }
 0x2c7   :  { %v2410_v29 = vpop.f32.mrf.mxu0  ;;  %v2922_v30 = vpop.f32.mrf.mxu1 }
 0x2c8   :  { %v3075_v31 = vmax.f32 %v2409_v27, 0.0  ;;  %v3203_v32 = vmax.f32 %v2921_v28, 0.0 }
 0x2c9   :  { %v2413_v33 = vpop.f32.mrf.mxu0  ;;  %v2925_v34 = vpop.f32.mrf.mxu1 }
 0x2ca   :  { %3331 = vst [vmem:[#allocation2 + $0x3b8] sm:$0xff] %v3075_v31  ;;  %3459 = vst [vmem:[#allocation2 + $0x7b8] sm:$0xff] %v3203_v32  ;;  %v2414_v35 = vadd.f32 %v5413_v53, %v2413_v33  ;;  %v2926_v36 = vadd.f32 %v5413_v53, %v2925_v34 }
 0x2cb   :  { %v2415_v37 = vpop.f32.mrf.mxu0  ;;  %v2927_v38 = vpop.f32.mrf.mxu1 }
 0x2cc   :  { %v3076_v39 = vmax.f32 %v2414_v35, 0.0  ;;  %v3204_v40 = vmax.f32 %v2926_v36, 0.0 }
 0x2cd   :  { %v2416_v41 = vpop.f32.mrf.mxu0  ;;  %v2928_v42 = vpop.f32.mrf.mxu1 }
 0x2ce   :  { %3332 = vst [vmem:[#allocation2 + $0x3c0] sm:$0xff] %v3076_v39  ;;  %3460 = vst [vmem:[#allocation2 + $0x7c0] sm:$0xff] %v3204_v40  ;;  %v2417_v43 = vadd.f32 %v5413_v53, %v2416_v41  ;;  %v2929_v44 = vadd.f32 %v5413_v53, %v2928_v42 }
 0x2cf   :  { %v2418_v45 = vpop.f32.mrf.mxu0  ;;  %v2930_v46 = vpop.f32.mrf.mxu1 }
 0x2d0   :  { %v3077_v47 = vmax.f32 %v2417_v43, 0.0  ;;  %v3205_v48 = vmax.f32 %v2929_v44, 0.0 }
 0x2d1   :  { %v2421_v49 = vpop.f32.mrf.mxu0  ;;  %v2933_v50 = vpop.f32.mrf.mxu1 }
 0x2d2   :  { %3333 = vst [vmem:[#allocation2 + $0x3c8] sm:$0xff] %v3077_v47  ;;  %3461 = vst [vmem:[#allocation2 + $0x7c8] sm:$0xff] %v3205_v48  ;;  %v2422_v51 = vadd.f32 %v5413_v53, %v2421_v49  ;;  %v2934_v52 = vadd.f32 %v5413_v53, %v2933_v50 }
 0x2d3   :  { %v2423_v54 = vpop.f32.mrf.mxu0  ;;  %v2935_v55 = vpop.f32.mrf.mxu1 }
 0x2d4   :  { %v3078_v56 = vmax.f32 %v2422_v51, 0.0  ;;  %v3206_v57 = vmax.f32 %v2934_v52, 0.0 }
 0x2d5   :  { %v2424_v58 = vpop.f32.mrf.mxu0  ;;  %v2936_v59 = vpop.f32.mrf.mxu1 }
 0x2d6   :  { %3334 = vst [vmem:[#allocation2 + $0x3d0] sm:$0xff] %v3078_v56  ;;  %3462 = vst [vmem:[#allocation2 + $0x7d0] sm:$0xff] %v3206_v57  ;;  %v2425_v60 = vadd.f32 %v5413_v53, %v2424_v58  ;;  %v2937_v61 = vadd.f32 %v5413_v53, %v2936_v59 }
 0x2d7   :  { %v2426_v62 = vpop.f32.mrf.mxu0  ;;  %v2938_v63 = vpop.f32.mrf.mxu1 }
 0x2d8   :  { %v3079_v0 = vmax.f32 %v2425_v60, 0.0  ;;  %v3207_v1 = vmax.f32 %v2937_v61, 0.0 }
 0x2d9   :  { %v2429_v2 = vpop.f32.mrf.mxu0  ;;  %v2941_v3 = vpop.f32.mrf.mxu1 }
 0x2da   :  { %3335 = vst [vmem:[#allocation2 + $0x3d8] sm:$0xff] %v3079_v0  ;;  %3463 = vst [vmem:[#allocation2 + $0x7d8] sm:$0xff] %v3207_v1  ;;  %v2430_v5 = vadd.f32 %v4300_v4, %v2429_v2  ;;  %v2942_v6 = vadd.f32 %v4300_v4, %v2941_v3 }
 0x2db   :  { %v2431_v7 = vpop.f32.mrf.mxu0  ;;  %v2943_v8 = vpop.f32.mrf.mxu1 }
 0x2dc   :  { %v3080_v9 = vmax.f32 %v2430_v5, 0.0  ;;  %v3208_v10 = vmax.f32 %v2942_v6, 0.0 }
 0x2dd   :  { %v2432_v11 = vpop.f32.mrf.mxu0  ;;  %v2944_v53 = vpop.f32.mrf.mxu1 }
 0x2de   :  { %3336 = vst [vmem:[#allocation2 + $0x3e0] sm:$0xff] %v3080_v9  ;;  %3464 = vst [vmem:[#allocation2 + $0x7e0] sm:$0xff] %v3208_v10  ;;  %v2433_v12 = vadd.f32 %v4300_v4, %v2432_v11  ;;  %v2945_v13 = vadd.f32 %v4300_v4, %v2944_v53 }
 0x2df   :  { %v2434_v14 = vpop.f32.mrf.mxu0  ;;  %v2946_v15 = vpop.f32.mrf.mxu1 }
 0x2e0   :  { %v3081_v16 = vmax.f32 %v2433_v12, 0.0  ;;  %v3209_v17 = vmax.f32 %v2945_v13, 0.0 }
 0x2e1   :  { %v2437_v18 = vpop.f32.mrf.mxu0  ;;  %v2949_v19 = vpop.f32.mrf.mxu1 }
 0x2e2   :  { %3337 = vst [vmem:[#allocation2 + $0x3e8] sm:$0xff] %v3081_v16  ;;  %3465 = vst [vmem:[#allocation2 + $0x7e8] sm:$0xff] %v3209_v17  ;;  %v2438_v20 = vadd.f32 %v4300_v4, %v2437_v18  ;;  %v2950_v21 = vadd.f32 %v4300_v4, %v2949_v19 }
 0x2e3   :  { %v2439_v22 = vpop.f32.mrf.mxu0  ;;  %v2951_v23 = vpop.f32.mrf.mxu1 }
 0x2e4   :  { %v3082_v24 = vmax.f32 %v2438_v20, 0.0  ;;  %v3210_v25 = vmax.f32 %v2950_v21, 0.0 }
 0x2e5   :  { %v2440_v26 = vpop.f32.mrf.mxu0  ;;  %v2952_v27 = vpop.f32.mrf.mxu1 }
 0x2e6   :  { %3338 = vst [vmem:[#allocation2 + $0x3f0] sm:$0xff] %v3082_v24  ;;  %3466 = vst [vmem:[#allocation2 + $0x7f0] sm:$0xff] %v3210_v25  ;;  %v2441_v28 = vadd.f32 %v4300_v4, %v2440_v26  ;;  %v2953_v29 = vadd.f32 %v4300_v4, %v2952_v27 }
 0x2e7   :  { %v2442_v30 = vpop.f32.mrf.mxu0  ;;  %v2954_v31 = vpop.f32.mrf.mxu1 }
 0x2e8   :  { %v3083_v32 = vmax.f32 %v2441_v28, 0.0  ;;  %v3211_v33 = vmax.f32 %v2953_v29, 0.0 }
 0x2ea   :  { %3339 = vst [vmem:[#allocation2 + $0x3f8] sm:$0xff] %v3083_v32  ;;  %3467 = vst [vmem:[#allocation2 + $0x7f8] sm:$0xff] %v3211_v33 }
 0x2eb   :  { %4312 = shalt.err (!%p4309_p4)
}
 0x2ec   :  { %s4326_s21 = smov 128   ;;  %s4327_s22 = smov 8  }
 0x2ed   :  { %3479 = dma.vmem_to_hbm [thread:$0]  %s3474_s19, 32768, %s5546_s3, [#allocation3], %s4326_s21, %s4326_s21, %s4327_s22  }
 0x2ee   :  { %4321 = dma.done.wait [#allocation3], 32768  }
 0x2ef   :  { %4322 = vsyncadd [#allocation3], 4294934528 }
 0x2f0   :  { %3483 = vsyncpa [#allocation3], 1 }

</bundles_post_ra>
